<compile_context>
chip_gen: v7x
topology: tpu7x:2x2x1
jax: 0.10.0
libtpu: 0.0.40
codegen_flags: <defaults>
</compile_context>

<pallas_src>
import functools
import math

import jax
import jax.numpy as jnp
from jax import lax
from jax.experimental import pallas as pl
from jax.experimental.pallas import tpu as pltpu

EPS = 1e-5
COMPUTE_DTYPE = jnp.bfloat16        # MXU operand dtype (accumulation stays f32)


@functools.lru_cache(maxsize=None)
def _vmem_limit_bytes():
    """Chip-aware scoped-VMEM budget (v5e/v6e: 128 MiB phys, v7x: 64 MiB phys)."""
    try:
        cap = pltpu.get_tpu_info().vmem_capacity_bytes
    except Exception:
        cap = 128 * 1024 * 1024
    return int(min(100 * 1024 * 1024, (cap * 3) // 4))


def _pick_tile(n, target, quantum):
    """Largest tile <= target that divides n and is `quantum`-aligned (else full n)."""
    if n <= target:
        return n
    t = (target // quantum) * quantum
    while t >= quantum:
        if n % t == 0:
            return t
        t -= quantum
    return n


# --------------------------------------------------------------------------
# 1. ln_x + Q/K/V projections (q pre-scaled)
# --------------------------------------------------------------------------
def _qkv_kernel(x_ref, wq_ref, wk_ref, wv_ref, q_ref, k_ref, v_ref, *, scale):
    x = x_ref[...].astype(jnp.float32)
    ms = jnp.mean(x * x, axis=-1, keepdims=True)
    xn = (x * lax.rsqrt(ms + EPS)).astype(COMPUTE_DTYPE)
    q = jnp.dot(xn, wq_ref[...], preferred_element_type=jnp.float32) * scale
    k = jnp.dot(xn, wk_ref[...], preferred_element_type=jnp.float32)
    v = jnp.dot(xn, wv_ref[...], preferred_element_type=jnp.float32)
    q_ref[...] = q.astype(q_ref.dtype)
    k_ref[...] = k.astype(k_ref.dtype)
    v_ref[...] = v.astype(v_ref.dtype)


def qkv_proj(x2d, wq, wk, wv, *, scale, tm):
    M, D = x2d.shape
    row = pl.BlockSpec((tm, D), lambda i: (i, 0))
    w = pl.BlockSpec((D, D), lambda i: (0, 0))
    return pl.pallas_call(
        functools.partial(_qkv_kernel, scale=scale),
        out_shape=[jax.ShapeDtypeStruct((M, D), COMPUTE_DTYPE)] * 3,
        grid=(M // tm,),
        in_specs=[row, w, w, w],
        out_specs=[row, row, row],
        compiler_params=pltpu.CompilerParams(dimension_semantics=("parallel",)),
    )(x2d, wq, wk, wv)


# --------------------------------------------------------------------------
# 2. flash-style differential attention (fused bias norm, subln, wo, residual)
# --------------------------------------------------------------------------
def _diff_attn_kernel(lam_ref, q_ref, k_ref, v_ref, t_ref, x_ref, wo_ref, sub_ref,
                      o_ref, m_s, l_s, acc_s, *, num_heads, head_dim, out_scale):
    H, hd = num_heads, head_dim
    ki = pl.program_id(2)

    @pl.when(ki == 0)
    def _():
        m_s[...] = jnp.full_like(m_s, -jnp.inf)
        l_s[...] = jnp.zeros_like(l_s)
        acc_s[...] = jnp.zeros_like(acc_s)

    q = q_ref[0]                              # (tq, D) bf16, pre-scaled by 1/sqrt(hd)
    k = k_ref[0]                              # (tk, D) bf16
    v = v_ref[0]                              # (tk, D) bf16

    # Fused ln_t: RMS-norm of the pair tensor over its channel axis (leading axis of
    # the channel-major tile) -> pure VPU work, applied per map (no full normalized
    # copy of the tile is materialized).
    tb = t_ref[0].astype(jnp.float32)                         # (2H, tq, tk)
    inv_rms = lax.rsqrt(jnp.mean(tb * tb, axis=0) + EPS)      # (tq, tk)

    dims = (((1,), (1,)), ((), ()))           # contract last dims (q @ k^T)
    for h in range(H):
        vh = v[:, h * 2 * hd:(h + 1) * 2 * hd]                    # (tk, 2hd)
        for m in range(2):
            idx = 2 * h + m
            qm = q[:, idx * hd:(idx + 1) * hd]                    # (tq, hd)
            km = k[:, idx * hd:(idx + 1) * hd]                    # (tk, hd)
            s = lax.dot_general(qm, km, dims,
                                preferred_element_type=jnp.float32)
            s = s + tb[idx] * inv_rms
            m_prev = m_s[idx]                                     # (tq, 1)
            m_new = jnp.maximum(m_prev, jnp.max(s, axis=-1, keepdims=True))
            alpha = jnp.exp(m_prev - m_new)
            p = jnp.exp(s - m_new)
            l_s[idx] = alpha * l_s[idx] + jnp.sum(p, axis=-1, keepdims=True)
            acc_s[idx] = alpha * acc_s[idx] + jnp.dot(
                p.astype(COMPUTE_DTYPE), vh, preferred_element_type=jnp.float32)
            m_s[idx] = m_new

    @pl.when(ki == pl.num_programs(2) - 1)
    def _():
        lam = lam_ref[0]
        heads = []
        for h in range(H):
            o1 = acc_s[2 * h] * pl.reciprocal(l_s[2 * h], approx=True)
            o2 = acc_s[2 * h + 1] * pl.reciprocal(l_s[2 * h + 1], approx=True)
            oh = o1 - lam * o2                                    # (tq, 2hd)
            msn = jnp.mean(oh * oh, axis=-1, keepdims=True)       # per-head sub RMSNorm
            oh = oh * lax.rsqrt(msn + EPS) * sub_ref[...] * out_scale
            heads.append(oh)
        attn = jnp.concatenate(heads, axis=-1).astype(COMPUTE_DTYPE)   # (tq, D)
        y = x_ref[0].astype(jnp.float32) + jnp.dot(
            attn, wo_ref[...], preferred_element_type=jnp.float32)
        o_ref[0] = y.astype(o_ref.dtype)


def diff_attn(q, k, v, t_cm, x, wo, subln_w, lam, *, num_heads, head_dim,
              lambda_init, tq, tk):
    B, L, D = q.shape
    E = t_cm.shape[1]
    kernel = functools.partial(_diff_attn_kernel, num_heads=num_heads,
                               head_dim=head_dim, out_scale=1.0 - lambda_init)
    return pl.pallas_call(
        kernel,
        out_shape=jax.ShapeDtypeStruct((B, L, D), jnp.float32),
        grid=(B, L // tq, L // tk),
        in_specs=[
            pl.BlockSpec(memory_space=pltpu.MemorySpace.SMEM),              # lam (1,)
            pl.BlockSpec((1, tq, D), lambda b, qi, ki: (b, qi, 0)),         # q
            pl.BlockSpec((1, tk, D), lambda b, qi, ki: (b, ki, 0)),         # k
            pl.BlockSpec((1, tk, D), lambda b, qi, ki: (b, ki, 0)),         # v
            pl.BlockSpec((1, E, tq, tk), lambda b, qi, ki: (b, 0, qi, ki)),  # t_cm bias
            pl.BlockSpec((1, tq, D), lambda b, qi, ki: (b, qi, 0)),         # x residual
            pl.BlockSpec((D, D), lambda b, qi, ki: (0, 0)),                 # wo
            pl.BlockSpec((1, 2 * head_dim), lambda b, qi, ki: (0, 0)),      # subln_w
        ],
        out_specs=pl.BlockSpec((1, tq, D), lambda b, qi, ki: (b, qi, 0)),
        scratch_shapes=[
            pltpu.VMEM((E, tq, 1), jnp.float32),             # running max per map
            pltpu.VMEM((E, tq, 1), jnp.float32),             # running denom per map
            pltpu.VMEM((E, tq, 2 * head_dim), jnp.float32),  # accumulators per map
        ],
        compiler_params=pltpu.CompilerParams(
            dimension_semantics=("parallel", "parallel", "arbitrary"),
            vmem_limit_bytes=_vmem_limit_bytes()),
    )(lam, q, k, v, t_cm, x, wo, subln_w)


# --------------------------------------------------------------------------
# 3. ln_y + SwiGLU + residual  ->  x_out, then fused OuterProduct LayerNorm + emb_a/b
# --------------------------------------------------------------------------
def _ffn_embed_kernel(y_ref, w1_ref, w2_ref, g_ref, be_ref, wa_ref, wb_ref,
                      x_ref, a_ref, b_ref):
    y = y_ref[...].astype(jnp.float32)
    ms = jnp.mean(y * y, axis=-1, keepdims=True)
    yn = (y * lax.rsqrt(ms + EPS)).astype(COMPUTE_DTYPE)
    xp1 = jnp.dot(yn, w1_ref[...], preferred_element_type=jnp.float32)   # proj_1
    xp2 = jnp.dot(yn, w2_ref[...], preferred_element_type=jnp.float32)   # proj_2
    x = y + xp1 * (xp2 * jax.nn.sigmoid(xp2))                            # SwiGLU + res
    x_ref[...] = x.astype(x_ref.dtype)

    # OuterProduct input LayerNorm + embeddings, fused so x never re-reads from HBM.
    mu = jnp.mean(x, axis=-1, keepdims=True)
    var = jnp.mean(jnp.square(x - mu), axis=-1, keepdims=True)
    xn = ((x - mu) * lax.rsqrt(var + EPS) * g_ref[...] + be_ref[...]).astype(COMPUTE_DTYPE)
    a_ref[...] = jnp.dot(xn, wa_ref[...],
                         preferred_element_type=jnp.float32).astype(a_ref.dtype)
    b_ref[...] = jnp.dot(xn, wb_ref[...],
                         preferred_element_type=jnp.float32).astype(b_ref.dtype)


def ffn_embed(y2d, w1, w2, gamma, beta, wa, wb, *, tm):
    M, D = y2d.shape
    Hd = wa.shape[1]
    row = pl.BlockSpec((tm, D), lambda i: (i, 0))
    row_hd = pl.BlockSpec((tm, Hd), lambda i: (i, 0))
    w = pl.BlockSpec((D, D), lambda i: (0, 0))
    w_ab = pl.BlockSpec((D, Hd), lambda i: (0, 0))
    vec = pl.BlockSpec((1, D), lambda i: (0, 0))
    return pl.pallas_call(
        _ffn_embed_kernel,
        out_shape=[jax.ShapeDtypeStruct((M, D), jnp.float32),
                   jax.ShapeDtypeStruct((M, Hd), COMPUTE_DTYPE),
                   jax.ShapeDtypeStruct((M, Hd), COMPUTE_DTYPE)],
        grid=(M // tm,),
        in_specs=[row, w, w, vec, vec, w_ab, w_ab],
        out_specs=[row, row_hd, row_hd],
        compiler_params=pltpu.CompilerParams(
            dimension_semantics=("parallel",),
            vmem_limit_bytes=_vmem_limit_bytes()),
    )(y2d, w1, w2, gamma.reshape(1, D), beta.reshape(1, D), wa, wb)


# --------------------------------------------------------------------------
# 4. OuterProduct core: z = a @ W @ b^T, fused + bias + ln_t(t) residual
# --------------------------------------------------------------------------
def _outer_kernel(bo_ref, a_ref, b_ref, w2_ref, t_ref, o_ref, *, hidden_dim):
    Hd = hidden_dim
    E = t_ref.shape[1]
    a = a_ref[0]                                      # (ti, Hd) bf16
    b = b_ref[0]                                      # (L,  Hd) bf16
    # one wide MXU call: u[i, e*Hd + d] = sum_c a[i,c] * W[(c,d), e]
    u = jnp.dot(a, w2_ref[...],
                preferred_element_type=jnp.float32).astype(COMPUTE_DTYPE)  # (ti, E*Hd)

    # fused ln_t of the residual (channel-major -> reduce over leading axis, pure VPU)
    tb = t_ref[0].astype(jnp.float32)                         # (E, ti, L)
    inv_rms = lax.rsqrt(jnp.mean(tb * tb, axis=0) + EPS)      # (ti, L)

    dims = (((1,), (1,)), ((), ()))                   # contract d: u_e @ b^T
    for e in range(E):
        ue = u[:, e * Hd:(e + 1) * Hd]                                    # (ti, Hd)
        ze = lax.dot_general(ue, b, dims, preferred_element_type=jnp.float32)
        o_ref[0, e] = (ze + bo_ref[e] + tb[e] * inv_rms).astype(o_ref.dtype)


def outer_product(a, b, w2, t_cm, bo, *, ti):
    B, L, Hd = a.shape
    E = t_cm.shape[1]
    return pl.pallas_call(
        functools.partial(_outer_kernel, hidden_dim=Hd),
        out_shape=jax.ShapeDtypeStruct((B, E, L, L), jnp.float32),
        grid=(B, L // ti),
        in_specs=[
            pl.BlockSpec(memory_space=pltpu.MemorySpace.SMEM),          # bo (E,)
            pl.BlockSpec((1, ti, Hd), lambda bi, i: (bi, i, 0)),        # a tile
            pl.BlockSpec((1, L, Hd), lambda bi, i: (bi, 0, 0)),         # b (all rows)
            pl.BlockSpec((Hd, E * Hd), lambda bi, i: (0, 0)),           # packed W
            pl.BlockSpec((1, E, ti, L), lambda bi, i: (bi, 0, i, 0)),   # t residual
        ],
        out_specs=pl.BlockSpec((1, E, ti, L), lambda bi, i: (bi, 0, i, 0)),
        compiler_params=pltpu.CompilerParams(
            dimension_semantics=("parallel", "parallel"),
            vmem_limit_bytes=_vmem_limit_bytes()),
    )(bo, a, b, w2, t_cm)


# --------------------------------------------------------------------------
# DyBlock forward (thin JAX glue; all heavy math in the Pallas kernels above)
# --------------------------------------------------------------------------
def dyblock_forward(params, x, t):
    B, L, D = x.shape
    H = params["num_heads"]
    hd = D // H // 2
    lam_init = params["lambda_init"]
    cd = COMPUTE_DTYPE

    tm = _pick_tile(B * L, 256, 16)
    tq = _pick_tile(L, 256, 16)
    tk = _pick_tile(L, 256, 128)
    ti = _pick_tile(L, 128, 16)

    # Single transpose of the pair tensor to channel-major; the ln_t RMS-norm itself is
    # fused into the attention and outer-product kernels (no normalized copy in HBM).
    t_cm = jnp.transpose(t, (0, 3, 1, 2))                        # (B, 2H, L, L)

    # ---- DiffAttention(ln_x(x), ln_t(t)) + residual, fully fused ----
    scale = 1.0 / math.sqrt(hd)
    q2d, k2d, v2d = qkv_proj(x.reshape(B * L, D),
                             params["wq"].astype(cd), params["wk"].astype(cd),
                             params["wv"].astype(cd), scale=scale, tm=tm)
    q = q2d.reshape(B, L, D)
    k = k2d.reshape(B, L, D)
    v = v2d.reshape(B, L, D)

    lam1 = jnp.exp(jnp.sum(params["lambda_q1"] * params["lambda_k1"]))
    lam2 = jnp.exp(jnp.sum(params["lambda_q2"] * params["lambda_k2"]))
    lam = (lam1 - lam2 + lam_init).reshape(1).astype(jnp.float32)

    y = diff_attn(q, k, v, t_cm, x,
                  params["wo"].astype(cd),
                  params["subln_w"].reshape(1, 2 * hd).astype(jnp.float32),
                  lam, num_heads=H, head_dim=hd, lambda_init=lam_init,
                  tq=tq, tk=tk)                                  # y = x + attn_out

    # ---- SwiGLU(ln_y(y)) + residual, fused with OuterProduct LayerNorm + emb_a/b ----
    x2d, a2d, b2d = ffn_embed(y.reshape(B * L, D),
                              params["swi_w1"].astype(cd), params["swi_w2"].astype(cd),
                              params["op_ln_g"], params["op_ln_b"],
                              params["op_wa"].astype(cd), params["op_wb"].astype(cd),
                              tm=tm)
    x_out = x2d.reshape(B, L, D)

    # ---- t = ln_t(t) + OuterProduct(x_out) ----
    Hd = params["op_wa"].shape[1]
    t_out_cm = outer_product(a2d.reshape(B, L, Hd), b2d.reshape(B, L, Hd),
                             params["op_w2"].astype(cd), t_cm,
                             params["op_bo"].astype(jnp.float32), ti=ti)
    t_out = jnp.transpose(t_out_cm, (0, 2, 3, 1))                # (B, L, L, 2H)
    return x_out, t_out


# --------------------------------------------------------------------------
def init_params(key, dim, num_heads, depth):
    hd = dim // num_heads // 2
    Et = 2 * num_heads
    ks = jax.random.split(key, 16)

    def lin(k, din, dout):
        return (jax.random.normal(k, (din, dout), jnp.float32)
                / jnp.sqrt(jnp.float32(din)))

    # to_out weight of OuterProduct, pre-packed to (Hd, E*Hd) with
    # W2[c, e*Hd + d] = W_flat[c*Hd + d, e]  so the kernel's first contraction is one
    # wide MXU matmul.
    wo_flat = lin(ks[11], dim * dim, Et)
    op_w2 = wo_flat.reshape(dim, dim, Et).transpose(0, 2, 1).reshape(dim, Et * dim)

    params = {
        "num_heads": num_heads,
        "lambda_init": float(0.8 - 0.6 * math.exp(-0.3 * depth)),
        "wq": lin(ks[0], dim, dim),
        "wk": lin(ks[1], dim, dim),
        "wv": lin(ks[2], dim, dim),
        "wo": lin(ks[3], dim, dim),
        "lambda_q1": 0.1 * jax.random.normal(ks[4], (hd,), jnp.float32),
        "lambda_k1": 0.1 * jax.random.normal(ks[5], (hd,), jnp.float32),
        "lambda_q2": 0.1 * jax.random.normal(ks[6], (hd,), jnp.float32),
        "lambda_k2": 0.1 * jax.random.normal(ks[7], (hd,), jnp.float32),
        "subln_w": 1.0 + 0.1 * jax.random.normal(ks[8], (2 * hd,), jnp.float32),
        "swi_w1": lin(ks[9], dim, dim),
        "swi_w2": lin(ks[10], dim, dim),
        "op_ln_g": 1.0 + 0.1 * jax.random.normal(ks[12], (dim,), jnp.float32),
        "op_ln_b": 0.1 * jax.random.normal(ks[13], (dim,), jnp.float32),
        "op_wa": lin(ks[14], dim, dim),
        "op_wb": lin(ks[15], dim, dim),
        "op_w2": op_w2,
        "op_bo": 0.1 * jax.random.normal(jax.random.fold_in(key, 99),
                                         (Et,), jnp.float32),
    }
    return params


if __name__ == "__main__":
    B, L, dim, num_heads, depth = 2, 8, 32, 2, 1
    key = jax.random.PRNGKey(0)
    kx, kt, kp = jax.random.split(key, 3)
    x = jax.random.normal(kx, (B, L, dim), jnp.float32)
    t = jax.random.normal(kt, (B, L, L, 2 * num_heads), jnp.float32)
    params = init_params(kp, dim, num_heads, depth)

    fwd = jax.jit(functools.partial(dyblock_forward, params))
    x_out, t_out = fwd(x, t)
    jax.block_until_ready((x_out, t_out))
    assert x_out.shape == (B, L, dim)
    assert t_out.shape == (B, L, L, 2 * num_heads)
    print("KERNEL_OK")
</pallas_src>

<mosaic_0001>
module attributes {stable_mosaic.version = 11 : i64} {
  func.func @_ffn_embed_kernel(%arg0: i32, %arg1: memref<16x32xf32, #tpu.memory_space<vmem>>, %arg2: memref<32x32xbf16, #tpu.memory_space<vmem>>, %arg3: memref<32x32xbf16, #tpu.memory_space<vmem>>, %arg4: memref<1x32xf32, #tpu.memory_space<vmem>>, %arg5: memref<1x32xf32, #tpu.memory_space<vmem>>, %arg6: memref<32x32xbf16, #tpu.memory_space<vmem>>, %arg7: memref<32x32xbf16, #tpu.memory_space<vmem>>, %arg8: memref<16x32xf32, #tpu.memory_space<vmem>>, %arg9: memref<16x32xbf16, #tpu.memory_space<vmem>>, %arg10: memref<16x32xbf16, #tpu.memory_space<vmem>>) attributes {dimension_semantics = [#tpu.dimension_semantics<parallel>], iteration_bounds = array<i64: 1>, scalar_prefetch = 0 : i64, scratch_operands = 0 : i64, tpu.core_type = #tpu.core_type<tc>, window_params = [{transform_indices = @transform_0, window_bounds = array<i64: 16, 32>}, {pipeline_mode = #tpu.pipeline_mode<synchronous>, transform_indices = @transform_1, window_bounds = array<i64: 32, 32>}, {pipeline_mode = #tpu.pipeline_mode<synchronous>, transform_indices = @transform_2, window_bounds = array<i64: 32, 32>}, {pipeline_mode = #tpu.pipeline_mode<synchronous>, transform_indices = @transform_3, window_bounds = array<i64: 1, 32>}, {pipeline_mode = #tpu.pipeline_mode<synchronous>, transform_indices = @transform_4, window_bounds = array<i64: 1, 32>}, {pipeline_mode = #tpu.pipeline_mode<synchronous>, transform_indices = @transform_5, window_bounds = array<i64: 32, 32>}, {pipeline_mode = #tpu.pipeline_mode<synchronous>, transform_indices = @transform_6, window_bounds = array<i64: 32, 32>}, {transform_indices = @transform_7, window_bounds = array<i64: 16, 32>}, {transform_indices = @transform_8, window_bounds = array<i64: 16, 32>}, {transform_indices = @transform_9, window_bounds = array<i64: 16, 32>}]} {
    %c0 = arith.constant 0 : index
    %c0_0 = arith.constant 0 : index
    %0 = vector.load %arg1[%c0, %c0_0] : memref<16x32xf32, #tpu.memory_space<vmem>>, vector<16x32xf32>
    %1 = arith.mulf %0, %0 : vector<16x32xf32>
    %cst = arith.constant dense<0.000000e+00> : vector<16xf32>
    %2 = vector.multi_reduction <add>, %1, %cst [1] : vector<16x32xf32> to vector<16xf32>
    %3 = vector.shape_cast %2 : vector<16xf32> to vector<16x1xf32>
    %cst_1 = arith.constant 3.200000e+01 : f32
    %4 = vector.broadcast %cst_1 : f32 to vector<16x1xf32>
    %5 = arith.divf %3, %4 : vector<16x1xf32>
    %cst_2 = arith.constant 9.99999974E-6 : f32
    %6 = vector.broadcast %cst_2 : f32 to vector<16x1xf32>
    %7 = arith.addf %5, %6 : vector<16x1xf32>
    %8 = math.rsqrt %7 : vector<16x1xf32>
    %9 = vector.broadcast %8 : vector<16x1xf32> to vector<16x32xf32>
    %10 = arith.mulf %0, %9 : vector<16x32xf32>
    %11 = arith.truncf %10 : vector<16x32xf32> to vector<16x32xbf16>
    %c0_3 = arith.constant 0 : index
    %c0_4 = arith.constant 0 : index
    %12 = vector.load %arg2[%c0_3, %c0_4] : memref<32x32xbf16, #tpu.memory_space<vmem>>, vector<32x32xbf16>
    %cst_5 = arith.constant dense<0.000000e+00> : vector<16x32xf32>
    %13 = tpu.matmul %11, %12, %cst_5 {dimension_numbers = #tpu.dot_dimension_numbers<[1], [0], [0], [1], [0, 0, 1, 1], [], []>} : vector<16x32xbf16>, vector<32x32xbf16>, vector<16x32xf32> -> vector<16x32xf32>
    %c0_6 = arith.constant 0 : index
    %c0_7 = arith.constant 0 : index
    %14 = vector.load %arg3[%c0_6, %c0_7] : memref<32x32xbf16, #tpu.memory_space<vmem>>, vector<32x32xbf16>
    %cst_8 = arith.constant dense<0.000000e+00> : vector<16x32xf32>
    %15 = tpu.matmul %11, %14, %cst_8 {dimension_numbers = #tpu.dot_dimension_numbers<[1], [0], [0], [1], [0, 0, 1, 1], [], []>} : vector<16x32xbf16>, vector<32x32xbf16>, vector<16x32xf32> -> vector<16x32xf32>
    %16 = arith.negf %15 : vector<16x32xf32>
    %17 = math.exp %16 : vector<16x32xf32>
    %cst_9 = arith.constant 1.000000e+00 : f32
    %18 = vector.broadcast %cst_9 : f32 to vector<16x32xf32>
    %19 = arith.addf %18, %17 : vector<16x32xf32>
    %20 = arith.divf %18, %19 : vector<16x32xf32>
    %21 = arith.mulf %15, %20 : vector<16x32xf32>
    %22 = arith.mulf %13, %21 : vector<16x32xf32>
    %23 = arith.addf %0, %22 : vector<16x32xf32>
    %c0_10 = arith.constant 0 : index
    %c0_11 = arith.constant 0 : index
    %24 = vector.load %arg8[%c0_10, %c0_11] : memref<16x32xf32, #tpu.memory_space<vmem>>, vector<16x32xf32>
    tpu.vector_store %arg8[%c0_10, %c0_11], %23 {strides = array<i32>} : memref<16x32xf32, #tpu.memory_space<vmem>>, vector<16x32xf32>,
    %cst_12 = arith.constant dense<0.000000e+00> : vector<16xf32>
    %25 = vector.multi_reduction <add>, %23, %cst_12 [1] : vector<16x32xf32> to vector<16xf32>
    %26 = vector.shape_cast %25 : vector<16xf32> to vector<16x1xf32>
    %cst_13 = arith.constant 3.200000e+01 : f32
    %27 = vector.broadcast %cst_13 : f32 to vector<16x1xf32>
    %28 = arith.divf %26, %27 : vector<16x1xf32>
    %29 = vector.broadcast %28 : vector<16x1xf32> to vector<16x32xf32>
    %30 = arith.subf %23, %29 : vector<16x32xf32>
    %31 = arith.mulf %30, %30 : vector<16x32xf32>
    %cst_14 = arith.constant dense<0.000000e+00> : vector<16xf32>
    %32 = vector.multi_reduction <add>, %31, %cst_14 [1] : vector<16x32xf32> to vector<16xf32>
    %33 = vector.shape_cast %32 : vector<16xf32> to vector<16x1xf32>
    %cst_15 = arith.constant 3.200000e+01 : f32
    %34 = vector.broadcast %cst_15 : f32 to vector<16x1xf32>
    %35 = arith.divf %33, %34 : vector<16x1xf32>
    %36 = vector.broadcast %28 : vector<16x1xf32> to vector<16x32xf32>
    %37 = arith.subf %23, %36 : vector<16x32xf32>
    %cst_16 = arith.constant 9.99999974E-6 : f32
    %38 = vector.broadcast %cst_16 : f32 to vector<16x1xf32>
    %39 = arith.addf %35, %38 : vector<16x1xf32>
    %40 = math.rsqrt %39 : vector<16x1xf32>
    %41 = vector.broadcast %40 : vector<16x1xf32> to vector<16x32xf32>
    %42 = arith.mulf %37, %41 : vector<16x32xf32>
    %c0_17 = arith.constant 0 : index
    %c0_18 = arith.constant 0 : index
    %43 = vector.load %arg4[%c0_17, %c0_18] : memref<1x32xf32, #tpu.memory_space<vmem>>, vector<1x32xf32>
    %44 = vector.broadcast %43 : vector<1x32xf32> to vector<16x32xf32>
    %45 = arith.mulf %42, %44 : vector<16x32xf32>
    %c0_19 = arith.constant 0 : index
    %c0_20 = arith.constant 0 : index
    %46 = vector.load %arg5[%c0_19, %c0_20] : memref<1x32xf32, #tpu.memory_space<vmem>>, vector<1x32xf32>
    %47 = vector.broadcast %46 : vector<1x32xf32> to vector<16x32xf32>
    %48 = arith.addf %45, %47 : vector<16x32xf32>
    %49 = arith.truncf %48 : vector<16x32xf32> to vector<16x32xbf16>
    %c0_21 = arith.constant 0 : index
    %c0_22 = arith.constant 0 : index
    %50 = vector.load %arg6[%c0_21, %c0_22] : memref<32x32xbf16, #tpu.memory_space<vmem>>, vector<32x32xbf16>
    %cst_23 = arith.constant dense<0.000000e+00> : vector<16x32xf32>
    %51 = tpu.matmul %49, %50, %cst_23 {dimension_numbers = #tpu.dot_dimension_numbers<[1], [0], [0], [1], [0, 0, 1, 1], [], []>} : vector<16x32xbf16>, vector<32x32xbf16>, vector<16x32xf32> -> vector<16x32xf32>
    %52 = arith.truncf %51 : vector<16x32xf32> to vector<16x32xbf16>
    %c0_24 = arith.constant 0 : index
    %c0_25 = arith.constant 0 : index
    %53 = vector.load %arg9[%c0_24, %c0_25] : memref<16x32xbf16, #tpu.memory_space<vmem>>, vector<16x32xbf16>
    tpu.vector_store %arg9[%c0_24, %c0_25], %52 {strides = array<i32>} : memref<16x32xbf16, #tpu.memory_space<vmem>>, vector<16x32xbf16>,
    %c0_26 = arith.constant 0 : index
    %c0_27 = arith.constant 0 : index
    %54 = vector.load %arg7[%c0_26, %c0_27] : memref<32x32xbf16, #tpu.memory_space<vmem>>, vector<32x32xbf16>
    %cst_28 = arith.constant dense<0.000000e+00> : vector<16x32xf32>
    %55 = tpu.matmul %49, %54, %cst_28 {dimension_numbers = #tpu.dot_dimension_numbers<[1], [0], [0], [1], [0, 0, 1, 1], [], []>} : vector<16x32xbf16>, vector<32x32xbf16>, vector<16x32xf32> -> vector<16x32xf32>
    %56 = arith.truncf %55 : vector<16x32xf32> to vector<16x32xbf16>
    %c0_29 = arith.constant 0 : index
    %c0_30 = arith.constant 0 : index
    %57 = vector.load %arg10[%c0_29, %c0_30] : memref<16x32xbf16, #tpu.memory_space<vmem>>, vector<16x32xbf16>
    tpu.vector_store %arg10[%c0_29, %c0_30], %56 {strides = array<i32>} : memref<16x32xbf16, #tpu.memory_space<vmem>>, vector<16x32xbf16>,
    return
  }
  func.func @transform_0(%arg0: i32) -> (i32, i32) {
    %c0_i32 = arith.constant 0 : i32
    %c0_i32_0 = arith.constant 0 : i32
    return %arg0, %c0_i32 : i32, i32
  }
  func.func @transform_1(%arg0: i32) -> (i32, i32) {
    %c0_i32 = arith.constant 0 : i32
    %c0_i32_0 = arith.constant 0 : i32
    %c0_i32_1 = arith.constant 0 : i32
    return %c0_i32, %c0_i32_0 : i32, i32
  }
  func.func @transform_2(%arg0: i32) -> (i32, i32) {
    %c0_i32 = arith.constant 0 : i32
    %c0_i32_0 = arith.constant 0 : i32
    %c0_i32_1 = arith.constant 0 : i32
    return %c0_i32, %c0_i32_0 : i32, i32
  }
  func.func @transform_3(%arg0: i32) -> (i32, i32) {
    %c0_i32 = arith.constant 0 : i32
    %c0_i32_0 = arith.constant 0 : i32
    %c0_i32_1 = arith.constant 0 : i32
    return %c0_i32, %c0_i32_0 : i32, i32
  }
  func.func @transform_4(%arg0: i32) -> (i32, i32) {
    %c0_i32 = arith.constant 0 : i32
    %c0_i32_0 = arith.constant 0 : i32
    %c0_i32_1 = arith.constant 0 : i32
    return %c0_i32, %c0_i32_0 : i32, i32
  }
  func.func @transform_5(%arg0: i32) -> (i32, i32) {
    %c0_i32 = arith.constant 0 : i32
    %c0_i32_0 = arith.constant 0 : i32
    %c0_i32_1 = arith.constant 0 : i32
    return %c0_i32, %c0_i32_0 : i32, i32
  }
  func.func @transform_6(%arg0: i32) -> (i32, i32) {
    %c0_i32 = arith.constant 0 : i32
    %c0_i32_0 = arith.constant 0 : i32
    %c0_i32_1 = arith.constant 0 : i32
    return %c0_i32, %c0_i32_0 : i32, i32
  }
  func.func @transform_7(%arg0: i32) -> (i32, i32) {
    %c0_i32 = arith.constant 0 : i32
    %c0_i32_0 = arith.constant 0 : i32
    return %arg0, %c0_i32 : i32, i32
  }
  func.func @transform_8(%arg0: i32) -> (i32, i32) {
    %c0_i32 = arith.constant 0 : i32
    %c0_i32_0 = arith.constant 0 : i32
    return %arg0, %c0_i32 : i32, i32
  }
  func.func @transform_9(%arg0: i32) -> (i32, i32) {
    %c0_i32 = arith.constant 0 : i32
    %c0_i32_0 = arith.constant 0 : i32
    return %arg0, %c0_i32 : i32, i32
  }
}

module attributes {stable_mosaic.version = 11 : i64} {
  func.func @_qkv_kernel(%arg0: i32, %arg1: memref<16x32xf32, #tpu.memory_space<vmem>>, %arg2: memref<32x32xbf16, #tpu.memory_space<vmem>>, %arg3: memref<32x32xbf16, #tpu.memory_space<vmem>>, %arg4: memref<32x32xbf16, #tpu.memory_space<vmem>>, %arg5: memref<16x32xbf16, #tpu.memory_space<vmem>>, %arg6: memref<16x32xbf16, #tpu.memory_space<vmem>>, %arg7: memref<16x32xbf16, #tpu.memory_space<vmem>>) attributes {dimension_semantics = [#tpu.dimension_semantics<parallel>], iteration_bounds = array<i64: 1>, scalar_prefetch = 0 : i64, scratch_operands = 0 : i64, tpu.core_type = #tpu.core_type<tc>, window_params = [{transform_indices = @transform_0, window_bounds = array<i64: 16, 32>}, {pipeline_mode = #tpu.pipeline_mode<synchronous>, transform_indices = @transform_1, window_bounds = array<i64: 32, 32>}, {pipeline_mode = #tpu.pipeline_mode<synchronous>, transform_indices = @transform_2, window_bounds = array<i64: 32, 32>}, {pipeline_mode = #tpu.pipeline_mode<synchronous>, transform_indices = @transform_3, window_bounds = array<i64: 32, 32>}, {transform_indices = @transform_4, window_bounds = array<i64: 16, 32>}, {transform_indices = @transform_5, window_bounds = array<i64: 16, 32>}, {transform_indices = @transform_6, window_bounds = array<i64: 16, 32>}]} {
    %c0 = arith.constant 0 : index
    %c0_0 = arith.constant 0 : index
    %0 = vector.load %arg1[%c0, %c0_0] : memref<16x32xf32, #tpu.memory_space<vmem>>, vector<16x32xf32>
    %1 = arith.mulf %0, %0 : vector<16x32xf32>
    %cst = arith.constant dense<0.000000e+00> : vector<16xf32>
    %2 = vector.multi_reduction <add>, %1, %cst [1] : vector<16x32xf32> to vector<16xf32>
    %3 = vector.shape_cast %2 : vector<16xf32> to vector<16x1xf32>
    %cst_1 = arith.constant 3.200000e+01 : f32
    %4 = vector.broadcast %cst_1 : f32 to vector<16x1xf32>
    %5 = arith.divf %3, %4 : vector<16x1xf32>
    %cst_2 = arith.constant 9.99999974E-6 : f32
    %6 = vector.broadcast %cst_2 : f32 to vector<16x1xf32>
    %7 = arith.addf %5, %6 : vector<16x1xf32>
    %8 = math.rsqrt %7 : vector<16x1xf32>
    %9 = vector.broadcast %8 : vector<16x1xf32> to vector<16x32xf32>
    %10 = arith.mulf %0, %9 : vector<16x32xf32>
    %11 = arith.truncf %10 : vector<16x32xf32> to vector<16x32xbf16>
    %c0_3 = arith.constant 0 : index
    %c0_4 = arith.constant 0 : index
    %12 = vector.load %arg2[%c0_3, %c0_4] : memref<32x32xbf16, #tpu.memory_space<vmem>>, vector<32x32xbf16>
    %cst_5 = arith.constant dense<0.000000e+00> : vector<16x32xf32>
    %13 = tpu.matmul %11, %12, %cst_5 {dimension_numbers = #tpu.dot_dimension_numbers<[1], [0], [0], [1], [0, 0, 1, 1], [], []>} : vector<16x32xbf16>, vector<32x32xbf16>, vector<16x32xf32> -> vector<16x32xf32>
    %cst_6 = arith.constant 0.353553385 : f32
    %14 = vector.broadcast %cst_6 : f32 to vector<16x32xf32>
    %15 = arith.mulf %13, %14 : vector<16x32xf32>
    %c0_7 = arith.constant 0 : index
    %c0_8 = arith.constant 0 : index
    %16 = vector.load %arg3[%c0_7, %c0_8] : memref<32x32xbf16, #tpu.memory_space<vmem>>, vector<32x32xbf16>
    %cst_9 = arith.constant dense<0.000000e+00> : vector<16x32xf32>
    %17 = tpu.matmul %11, %16, %cst_9 {dimension_numbers = #tpu.dot_dimension_numbers<[1], [0], [0], [1], [0, 0, 1, 1], [], []>} : vector<16x32xbf16>, vector<32x32xbf16>, vector<16x32xf32> -> vector<16x32xf32>
    %c0_10 = arith.constant 0 : index
    %c0_11 = arith.constant 0 : index
    %18 = vector.load %arg4[%c0_10, %c0_11] : memref<32x32xbf16, #tpu.memory_space<vmem>>, vector<32x32xbf16>
    %cst_12 = arith.constant dense<0.000000e+00> : vector<16x32xf32>
    %19 = tpu.matmul %11, %18, %cst_12 {dimension_numbers = #tpu.dot_dimension_numbers<[1], [0], [0], [1], [0, 0, 1, 1], [], []>} : vector<16x32xbf16>, vector<32x32xbf16>, vector<16x32xf32> -> vector<16x32xf32>
    %20 = arith.truncf %15 : vector<16x32xf32> to vector<16x32xbf16>
    %c0_13 = arith.constant 0 : index
    %c0_14 = arith.constant 0 : index
    %21 = vector.load %arg5[%c0_13, %c0_14] : memref<16x32xbf16, #tpu.memory_space<vmem>>, vector<16x32xbf16>
    tpu.vector_store %arg5[%c0_13, %c0_14], %20 {strides = array<i32>} : memref<16x32xbf16, #tpu.memory_space<vmem>>, vector<16x32xbf16>,
    %22 = arith.truncf %17 : vector<16x32xf32> to vector<16x32xbf16>
    %c0_15 = arith.constant 0 : index
    %c0_16 = arith.constant 0 : index
    %23 = vector.load %arg6[%c0_15, %c0_16] : memref<16x32xbf16, #tpu.memory_space<vmem>>, vector<16x32xbf16>
    tpu.vector_store %arg6[%c0_15, %c0_16], %22 {strides = array<i32>} : memref<16x32xbf16, #tpu.memory_space<vmem>>, vector<16x32xbf16>,
    %24 = arith.truncf %19 : vector<16x32xf32> to vector<16x32xbf16>
    %c0_17 = arith.constant 0 : index
    %c0_18 = arith.constant 0 : index
    %25 = vector.load %arg7[%c0_17, %c0_18] : memref<16x32xbf16, #tpu.memory_space<vmem>>, vector<16x32xbf16>
    tpu.vector_store %arg7[%c0_17, %c0_18], %24 {strides = array<i32>} : memref<16x32xbf16, #tpu.memory_space<vmem>>, vector<16x32xbf16>,
    return
  }
  func.func @transform_0(%arg0: i32) -> (i32, i32) {
    %c0_i32 = arith.constant 0 : i32
    %c0_i32_0 = arith.constant 0 : i32
    return %arg0, %c0_i32 : i32, i32
  }
  func.func @transform_1(%arg0: i32) -> (i32, i32) {
    %c0_i32 = arith.constant 0 : i32
    %c0_i32_0 = arith.constant 0 : i32
    %c0_i32_1 = arith.constant 0 : i32
    return %c0_i32, %c0_i32_0 : i32, i32
  }
  func.func @transform_2(%arg0: i32) -> (i32, i32) {
    %c0_i32 = arith.constant 0 : i32
    %c0_i32_0 = arith.constant 0 : i32
    %c0_i32_1 = arith.constant 0 : i32
    return %c0_i32, %c0_i32_0 : i32, i32
  }
  func.func @transform_3(%arg0: i32) -> (i32, i32) {
    %c0_i32 = arith.constant 0 : i32
    %c0_i32_0 = arith.constant 0 : i32
    %c0_i32_1 = arith.constant 0 : i32
    return %c0_i32, %c0_i32_0 : i32, i32
  }
  func.func @transform_4(%arg0: i32) -> (i32, i32) {
    %c0_i32 = arith.constant 0 : i32
    %c0_i32_0 = arith.constant 0 : i32
    return %arg0, %c0_i32 : i32, i32
  }
  func.func @transform_5(%arg0: i32) -> (i32, i32) {
    %c0_i32 = arith.constant 0 : i32
    %c0_i32_0 = arith.constant 0 : i32
    return %arg0, %c0_i32 : i32, i32
  }
  func.func @transform_6(%arg0: i32) -> (i32, i32) {
    %c0_i32 = arith.constant 0 : i32
    %c0_i32_0 = arith.constant 0 : i32
    return %arg0, %c0_i32 : i32, i32
  }
}

module attributes {stable_mosaic.version = 11 : i64} {
  func.func @_diff_attn_kernel(%arg0: i32, %arg1: i32, %arg2: i32, %arg3: memref<1xf32, #tpu.memory_space<smem>>, %arg4: memref<1x8x32xbf16, #tpu.memory_space<vmem>>, %arg5: memref<1x8x32xbf16, #tpu.memory_space<vmem>>, %arg6: memref<1x8x32xbf16, #tpu.memory_space<vmem>>, %arg7: memref<1x4x8x8xf32, #tpu.memory_space<vmem>>, %arg8: memref<1x8x32xf32, #tpu.memory_space<vmem>>, %arg9: memref<32x32xbf16, #tpu.memory_space<vmem>>, %arg10: memref<1x16xf32, #tpu.memory_space<vmem>>, %arg11: memref<1x8x32xf32, #tpu.memory_space<vmem>>, %arg12: memref<4x8x1xf32, #tpu.memory_space<vmem>>, %arg13: memref<4x8x1xf32, #tpu.memory_space<vmem>>, %arg14: memref<4x8x16xf32, #tpu.memory_space<vmem>>) attributes {dimension_semantics = [#tpu.dimension_semantics<parallel>, #tpu.dimension_semantics<parallel>, #tpu.dimension_semantics<arbitrary>], iteration_bounds = array<i64: 2, 1, 1>, scalar_prefetch = 0 : i64, scratch_operands = 3 : i64, tpu.core_type = #tpu.core_type<tc>, window_params = [{transform_indices = @transform_0, window_bounds = array<i64: 1>}, {transform_indices = @transform_1, window_bounds = array<i64: 1, 8, 32>}, {transform_indices = @transform_2, window_bounds = array<i64: 1, 8, 32>}, {transform_indices = @transform_3, window_bounds = array<i64: 1, 8, 32>}, {transform_indices = @transform_4, window_bounds = array<i64: 1, 4, 8, 8>}, {transform_indices = @transform_5, window_bounds = array<i64: 1, 8, 32>}, {pipeline_mode = #tpu.pipeline_mode<synchronous>, transform_indices = @transform_6, window_bounds = array<i64: 32, 32>}, {pipeline_mode = #tpu.pipeline_mode<synchronous>, transform_indices = @transform_7, window_bounds = array<i64: 1, 16>}, {transform_indices = @transform_8, window_bounds = array<i64: 1, 8, 32>}]} {
    %c0_i32 = arith.constant 0 : i32
    %0 = arith.cmpi eq, %arg2, %c0_i32 : i32
    %1 = arith.extui %0 : i1 to i32
    %c0_i32_0 = arith.constant 0 : i32
    %2 = arith.cmpi ne, %1, %c0_i32_0 : i32
    scf.if %2 {
      %cst_102 = arith.constant 0xFF800000 : f32
      %179 = vector.broadcast %cst_102 : f32 to vector<4x8x1xf32>
      %c0_103 = arith.constant 0 : index
      %c0_104 = arith.constant 0 : index
      %c0_105 = arith.constant 0 : index
      %180 = vector.load %arg12[%c0_103, %c0_104, %c0_105] : memref<4x8x1xf32, #tpu.memory_space<vmem>>, vector<4x8x1xf32>
      tpu.vector_store %arg12[%c0_103, %c0_104, %c0_105], %179 {strides = array<i32>} : memref<4x8x1xf32, #tpu.memory_space<vmem>>, vector<4x8x1xf32>,
      %cst_106 = arith.constant 0.000000e+00 : f32
      %181 = vector.broadcast %cst_106 : f32 to vector<4x8x1xf32>
      %c0_107 = arith.constant 0 : index
      %c0_108 = arith.constant 0 : index
      %c0_109 = arith.constant 0 : index
      %182 = vector.load %arg13[%c0_107, %c0_108, %c0_109] : memref<4x8x1xf32, #tpu.memory_space<vmem>>, vector<4x8x1xf32>
      tpu.vector_store %arg13[%c0_107, %c0_108, %c0_109], %181 {strides = array<i32>} : memref<4x8x1xf32, #tpu.memory_space<vmem>>, vector<4x8x1xf32>,
      %cst_110 = arith.constant 0.000000e+00 : f32
      %183 = vector.broadcast %cst_110 : f32 to vector<4x8x16xf32>
      %c0_111 = arith.constant 0 : index
      %c0_112 = arith.constant 0 : index
      %c0_113 = arith.constant 0 : index
      %184 = vector.load %arg14[%c0_111, %c0_112, %c0_113] : memref<4x8x16xf32, #tpu.memory_space<vmem>>, vector<4x8x16xf32>
      tpu.vector_store %arg14[%c0_111, %c0_112, %c0_113], %183 {strides = array<i32>} : memref<4x8x16xf32, #tpu.memory_space<vmem>>, vector<4x8x16xf32>,
    } else {
    }
    %c0 = arith.constant 0 : index
    %c0_1 = arith.constant 0 : index
    %c0_2 = arith.constant 0 : index
    %3 = vector.load %arg4[%c0, %c0_1, %c0_2] : memref<1x8x32xbf16, #tpu.memory_space<vmem>>, vector<1x8x32xbf16>
    %4 = vector.shape_cast %3 : vector<1x8x32xbf16> to vector<8x32xbf16>
    %c0_3 = arith.constant 0 : index
    %c0_4 = arith.constant 0 : index
    %c0_5 = arith.constant 0 : index
    %5 = vector.load %arg5[%c0_3, %c0_4, %c0_5] : memref<1x8x32xbf16, #tpu.memory_space<vmem>>, vector<1x8x32xbf16>
    %6 = vector.shape_cast %5 : vector<1x8x32xbf16> to vector<8x32xbf16>
    %c0_6 = arith.constant 0 : index
    %c0_7 = arith.constant 0 : index
    %c0_8 = arith.constant 0 : index
    %7 = vector.load %arg6[%c0_6, %c0_7, %c0_8] : memref<1x8x32xbf16, #tpu.memory_space<vmem>>, vector<1x8x32xbf16>
    %8 = vector.shape_cast %7 : vector<1x8x32xbf16> to vector<8x32xbf16>
    %c0_9 = arith.constant 0 : index
    %c0_10 = arith.constant 0 : index
    %c0_11 = arith.constant 0 : index
    %c0_12 = arith.constant 0 : index
    %9 = vector.load %arg7[%c0_9, %c0_10, %c0_11, %c0_12] : memref<1x4x8x8xf32, #tpu.memory_space<vmem>>, vector<1x4x8x8xf32>
    %10 = vector.shape_cast %9 : vector<1x4x8x8xf32> to vector<4x8x8xf32>
    %11 = arith.mulf %10, %10 : vector<4x8x8xf32>
    %cst = arith.constant dense<0.000000e+00> : vector<8x8xf32>
    %12 = vector.multi_reduction <add>, %11, %cst [0] : vector<4x8x8xf32> to vector<8x8xf32>
    %cst_13 = arith.constant 4.000000e+00 : f32
    %13 = vector.broadcast %cst_13 : f32 to vector<8x8xf32>
    %14 = arith.divf %12, %13 : vector<8x8xf32>
    %cst_14 = arith.constant 9.99999974E-6 : f32
    %15 = vector.broadcast %cst_14 : f32 to vector<8x8xf32>
    %16 = arith.addf %14, %15 : vector<8x8xf32>
    %17 = math.rsqrt %16 : vector<8x8xf32>
    %18 = vector.extract_strided_slice %8 {offsets = [0, 0], sizes = [8, 16], strides = [1, 1]} : vector<8x32xbf16> to vector<8x16xbf16>
    %19 = vector.extract_strided_slice %4 {offsets = [0, 0], sizes = [8, 8], strides = [1, 1]} : vector<8x32xbf16> to vector<8x8xbf16>
    %20 = vector.extract_strided_slice %6 {offsets = [0, 0], sizes = [8, 8], strides = [1, 1]} : vector<8x32xbf16> to vector<8x8xbf16>
    %cst_15 = arith.constant dense<0.000000e+00> : vector<8x8xf32>
    %21 = tpu.matmul %19, %20, %cst_15 {dimension_numbers = #tpu.dot_dimension_numbers<[1], [1], [0], [0], [0, 0, 1, 0], [], []>} : vector<8x8xbf16>, vector<8x8xbf16>, vector<8x8xf32> -> vector<8x8xf32>
    %22 = vector.extract_strided_slice %10 {offsets = [0, 0, 0], sizes = [1, 8, 8], strides = [1, 1, 1]} : vector<4x8x8xf32> to vector<1x8x8xf32>
    %23 = vector.shape_cast %22 : vector<1x8x8xf32> to vector<8x8xf32>
    %24 = arith.mulf %23, %17 : vector<8x8xf32>
    %25 = arith.addf %21, %24 : vector<8x8xf32>
    %c0_16 = arith.constant 0 : index
    %c0_17 = arith.constant 0 : index
    %c0_18 = arith.constant 0 : index
    %26 = vector.load %arg12[%c0_16, %c0_17, %c0_18] : memref<4x8x1xf32, #tpu.memory_space<vmem>>, vector<1x8x1xf32>
    %27 = vector.shape_cast %26 : vector<1x8x1xf32> to vector<8x1xf32>
    %cst_19 = arith.constant dense<0xFF800000> : vector<8xf32>
    %28 = vector.multi_reduction <maximumf>, %25, %cst_19 [1] : vector<8x8xf32> to vector<8xf32>
    %29 = vector.shape_cast %28 : vector<8xf32> to vector<8x1xf32>
    %30 = arith.maximumf %27, %29 : vector<8x1xf32>
    %31 = arith.subf %27, %30 : vector<8x1xf32>
    %32 = math.exp %31 : vector<8x1xf32>
    %33 = vector.broadcast %30 : vector<8x1xf32> to vector<8x8xf32>
    %34 = arith.subf %25, %33 : vector<8x8xf32>
    %35 = math.exp %34 : vector<8x8xf32>
    %c0_20 = arith.constant 0 : index
    %c0_21 = arith.constant 0 : index
    %c0_22 = arith.constant 0 : index
    %36 = vector.load %arg13[%c0_20, %c0_21, %c0_22] : memref<4x8x1xf32, #tpu.memory_space<vmem>>, vector<1x8x1xf32>
    %37 = vector.shape_cast %36 : vector<1x8x1xf32> to vector<8x1xf32>
    %38 = arith.mulf %32, %37 : vector<8x1xf32>
    %cst_23 = arith.constant dense<0.000000e+00> : vector<8xf32>
    %39 = vector.multi_reduction <add>, %35, %cst_23 [1] : vector<8x8xf32> to vector<8xf32>
    %40 = vector.shape_cast %39 : vector<8xf32> to vector<8x1xf32>
    %41 = arith.addf %38, %40 : vector<8x1xf32>
    %c0_24 = arith.constant 0 : index
    %c0_25 = arith.constant 0 : index
    %c0_26 = arith.constant 0 : index
    %42 = vector.load %arg13[%c0_24, %c0_25, %c0_26] : memref<4x8x1xf32, #tpu.memory_space<vmem>>, vector<1x8x1xf32>
    %43 = vector.shape_cast %42 : vector<1x8x1xf32> to vector<8x1xf32>
    %44 = vector.shape_cast %41 : vector<8x1xf32> to vector<1x8x1xf32>
    tpu.vector_store %arg13[%c0_24, %c0_25, %c0_26], %44 {strides = array<i32>} : memref<4x8x1xf32, #tpu.memory_space<vmem>>, vector<1x8x1xf32>,
    %c0_27 = arith.constant 0 : index
    %c0_28 = arith.constant 0 : index
    %c0_29 = arith.constant 0 : index
    %45 = vector.load %arg14[%c0_27, %c0_28, %c0_29] : memref<4x8x16xf32, #tpu.memory_space<vmem>>, vector<1x8x16xf32>
    %46 = vector.shape_cast %45 : vector<1x8x16xf32> to vector<8x16xf32>
    %47 = vector.broadcast %32 : vector<8x1xf32> to vector<8x16xf32>
    %48 = arith.mulf %47, %46 : vector<8x16xf32>
    %49 = arith.truncf %35 : vector<8x8xf32> to vector<8x8xbf16>
    %cst_30 = arith.constant dense<0.000000e+00> : vector<8x16xf32>
    %50 = tpu.matmul %49, %18, %cst_30 {dimension_numbers = #tpu.dot_dimension_numbers<[1], [0], [0], [1], [0, 0, 1, 1], [], []>} : vector<8x8xbf16>, vector<8x16xbf16>, vector<8x16xf32> -> vector<8x16xf32>
    %51 = arith.addf %48, %50 : vector<8x16xf32>
    %c0_31 = arith.constant 0 : index
    %c0_32 = arith.constant 0 : index
    %c0_33 = arith.constant 0 : index
    %52 = vector.load %arg14[%c0_31, %c0_32, %c0_33] : memref<4x8x16xf32, #tpu.memory_space<vmem>>, vector<1x8x16xf32>
    %53 = vector.shape_cast %52 : vector<1x8x16xf32> to vector<8x16xf32>
    %54 = vector.shape_cast %51 : vector<8x16xf32> to vector<1x8x16xf32>
    tpu.vector_store %arg14[%c0_31, %c0_32, %c0_33], %54 {strides = array<i32>} : memref<4x8x16xf32, #tpu.memory_space<vmem>>, vector<1x8x16xf32>,
    %c0_34 = arith.constant 0 : index
    %c0_35 = arith.constant 0 : index
    %c0_36 = arith.constant 0 : index
    %55 = vector.load %arg12[%c0_34, %c0_35, %c0_36] : memref<4x8x1xf32, #tpu.memory_space<vmem>>, vector<1x8x1xf32>
    %56 = vector.shape_cast %55 : vector<1x8x1xf32> to vector<8x1xf32>
    %57 = vector.shape_cast %30 : vector<8x1xf32> to vector<1x8x1xf32>
    tpu.vector_store %arg12[%c0_34, %c0_35, %c0_36], %57 {strides = array<i32>} : memref<4x8x1xf32, #tpu.memory_space<vmem>>, vector<1x8x1xf32>,
    %58 = vector.extract_strided_slice %4 {offsets = [0, 8], sizes = [8, 8], strides = [1, 1]} : vector<8x32xbf16> to vector<8x8xbf16>
    %59 = vector.extract_strided_slice %6 {offsets = [0, 8], sizes = [8, 8], strides = [1, 1]} : vector<8x32xbf16> to vector<8x8xbf16>
    %cst_37 = arith.constant dense<0.000000e+00> : vector<8x8xf32>
    %60 = tpu.matmul %58, %59, %cst_37 {dimension_numbers = #tpu.dot_dimension_numbers<[1], [1], [0], [0], [0, 0, 1, 0], [], []>} : vector<8x8xbf16>, vector<8x8xbf16>, vector<8x8xf32> -> vector<8x8xf32>
    %61 = vector.extract_strided_slice %10 {offsets = [1, 0, 0], sizes = [1, 8, 8], strides = [1, 1, 1]} : vector<4x8x8xf32> to vector<1x8x8xf32>
    %62 = vector.shape_cast %61 : vector<1x8x8xf32> to vector<8x8xf32>
    %63 = arith.mulf %62, %17 : vector<8x8xf32>
    %64 = arith.addf %60, %63 : vector<8x8xf32>
    %c1 = arith.constant 1 : index
    %c0_38 = arith.constant 0 : index
    %c0_39 = arith.constant 0 : index
    %65 = vector.load %arg12[%c1, %c0_38, %c0_39] : memref<4x8x1xf32, #tpu.memory_space<vmem>>, vector<1x8x1xf32>
    %66 = vector.shape_cast %65 : vector<1x8x1xf32> to vector<8x1xf32>
    %cst_40 = arith.constant dense<0xFF800000> : vector<8xf32>
    %67 = vector.multi_reduction <maximumf>, %64, %cst_40 [1] : vector<8x8xf32> to vector<8xf32>
    %68 = vector.shape_cast %67 : vector<8xf32> to vector<8x1xf32>
    %69 = arith.maximumf %66, %68 : vector<8x1xf32>
    %70 = arith.subf %66, %69 : vector<8x1xf32>
    %71 = math.exp %70 : vector<8x1xf32>
    %72 = vector.broadcast %69 : vector<8x1xf32> to vector<8x8xf32>
    %73 = arith.subf %64, %72 : vector<8x8xf32>
    %74 = math.exp %73 : vector<8x8xf32>
    %c1_41 = arith.constant 1 : index
    %c0_42 = arith.constant 0 : index
    %c0_43 = arith.constant 0 : index
    %75 = vector.load %arg13[%c1_41, %c0_42, %c0_43] : memref<4x8x1xf32, #tpu.memory_space<vmem>>, vector<1x8x1xf32>
    %76 = vector.shape_cast %75 : vector<1x8x1xf32> to vector<8x1xf32>
    %77 = arith.mulf %71, %76 : vector<8x1xf32>
    %cst_44 = arith.constant dense<0.000000e+00> : vector<8xf32>
    %78 = vector.multi_reduction <add>, %74, %cst_44 [1] : vector<8x8xf32> to vector<8xf32>
    %79 = vector.shape_cast %78 : vector<8xf32> to vector<8x1xf32>
    %80 = arith.addf %77, %79 : vector<8x1xf32>
    %c1_45 = arith.constant 1 : index
    %c0_46 = arith.constant 0 : index
    %c0_47 = arith.constant 0 : index
    %81 = vector.load %arg13[%c1_45, %c0_46, %c0_47] : memref<4x8x1xf32, #tpu.memory_space<vmem>>, vector<1x8x1xf32>
    %82 = vector.shape_cast %81 : vector<1x8x1xf32> to vector<8x1xf32>
    %83 = vector.shape_cast %80 : vector<8x1xf32> to vector<1x8x1xf32>
    tpu.vector_store %arg13[%c1_45, %c0_46, %c0_47], %83 {strides = array<i32>} : memref<4x8x1xf32, #tpu.memory_space<vmem>>, vector<1x8x1xf32>,
    %c1_48 = arith.constant 1 : index
    %c0_49 = arith.constant 0 : index
    %c0_50 = arith.constant 0 : index
    %84 = vector.load %arg14[%c1_48, %c0_49, %c0_50] : memref<4x8x16xf32, #tpu.memory_space<vmem>>, vector<1x8x16xf32>
    %85 = vector.shape_cast %84 : vector<1x8x16xf32> to vector<8x16xf32>
    %86 = vector.broadcast %71 : vector<8x1xf32> to vector<8x16xf32>
    %87 = arith.mulf %86, %85 : vector<8x16xf32>
    %88 = arith.truncf %74 : vector<8x8xf32> to vector<8x8xbf16>
    %cst_51 = arith.constant dense<0.000000e+00> : vector<8x16xf32>
    %89 = tpu.matmul %88, %18, %cst_51 {dimension_numbers = #tpu.dot_dimension_numbers<[1], [0], [0], [1], [0, 0, 1, 1], [], []>} : vector<8x8xbf16>, vector<8x16xbf16>, vector<8x16xf32> -> vector<8x16xf32>
    %90 = arith.addf %87, %89 : vector<8x16xf32>
    %c1_52 = arith.constant 1 : index
    %c0_53 = arith.constant 0 : index
    %c0_54 = arith.constant 0 : index
    %91 = vector.load %arg14[%c1_52, %c0_53, %c0_54] : memref<4x8x16xf32, #tpu.memory_space<vmem>>, vector<1x8x16xf32>
    %92 = vector.shape_cast %91 : vector<1x8x16xf32> to vector<8x16xf32>
    %93 = vector.shape_cast %90 : vector<8x16xf32> to vector<1x8x16xf32>
    tpu.vector_store %arg14[%c1_52, %c0_53, %c0_54], %93 {strides = array<i32>} : memref<4x8x16xf32, #tpu.memory_space<vmem>>, vector<1x8x16xf32>,
    %c1_55 = arith.constant 1 : index
    %c0_56 = arith.constant 0 : index
    %c0_57 = arith.constant 0 : index
    %94 = vector.load %arg12[%c1_55, %c0_56, %c0_57] : memref<4x8x1xf32, #tpu.memory_space<vmem>>, vector<1x8x1xf32>
    %95 = vector.shape_cast %94 : vector<1x8x1xf32> to vector<8x1xf32>
    %96 = vector.shape_cast %69 : vector<8x1xf32> to vector<1x8x1xf32>
    tpu.vector_store %arg12[%c1_55, %c0_56, %c0_57], %96 {strides = array<i32>} : memref<4x8x1xf32, #tpu.memory_space<vmem>>, vector<1x8x1xf32>,
    %97 = vector.extract_strided_slice %8 {offsets = [0, 16], sizes = [8, 16], strides = [1, 1]} : vector<8x32xbf16> to vector<8x16xbf16>
    %98 = vector.extract_strided_slice %4 {offsets = [0, 16], sizes = [8, 8], strides = [1, 1]} : vector<8x32xbf16> to vector<8x8xbf16>
    %99 = vector.extract_strided_slice %6 {offsets = [0, 16], sizes = [8, 8], strides = [1, 1]} : vector<8x32xbf16> to vector<8x8xbf16>
    %cst_58 = arith.constant dense<0.000000e+00> : vector<8x8xf32>
    %100 = tpu.matmul %98, %99, %cst_58 {dimension_numbers = #tpu.dot_dimension_numbers<[1], [1], [0], [0], [0, 0, 1, 0], [], []>} : vector<8x8xbf16>, vector<8x8xbf16>, vector<8x8xf32> -> vector<8x8xf32>
    %101 = vector.extract_strided_slice %10 {offsets = [2, 0, 0], sizes = [1, 8, 8], strides = [1, 1, 1]} : vector<4x8x8xf32> to vector<1x8x8xf32>
    %102 = vector.shape_cast %101 : vector<1x8x8xf32> to vector<8x8xf32>
    %103 = arith.mulf %102, %17 : vector<8x8xf32>
    %104 = arith.addf %100, %103 : vector<8x8xf32>
    %c2 = arith.constant 2 : index
    %c0_59 = arith.constant 0 : index
    %c0_60 = arith.constant 0 : index
    %105 = vector.load %arg12[%c2, %c0_59, %c0_60] : memref<4x8x1xf32, #tpu.memory_space<vmem>>, vector<1x8x1xf32>
    %106 = vector.shape_cast %105 : vector<1x8x1xf32> to vector<8x1xf32>
    %cst_61 = arith.constant dense<0xFF800000> : vector<8xf32>
    %107 = vector.multi_reduction <maximumf>, %104, %cst_61 [1] : vector<8x8xf32> to vector<8xf32>
    %108 = vector.shape_cast %107 : vector<8xf32> to vector<8x1xf32>
    %109 = arith.maximumf %106, %108 : vector<8x1xf32>
    %110 = arith.subf %106, %109 : vector<8x1xf32>
    %111 = math.exp %110 : vector<8x1xf32>
    %112 = vector.broadcast %109 : vector<8x1xf32> to vector<8x8xf32>
    %113 = arith.subf %104, %112 : vector<8x8xf32>
    %114 = math.exp %113 : vector<8x8xf32>
    %c2_62 = arith.constant 2 : index
    %c0_63 = arith.constant 0 : index
    %c0_64 = arith.constant 0 : index
    %115 = vector.load %arg13[%c2_62, %c0_63, %c0_64] : memref<4x8x1xf32, #tpu.memory_space<vmem>>, vector<1x8x1xf32>
    %116 = vector.shape_cast %115 : vector<1x8x1xf32> to vector<8x1xf32>
    %117 = arith.mulf %111, %116 : vector<8x1xf32>
    %cst_65 = arith.constant dense<0.000000e+00> : vector<8xf32>
    %118 = vector.multi_reduction <add>, %114, %cst_65 [1] : vector<8x8xf32> to vector<8xf32>
    %119 = vector.shape_cast %118 : vector<8xf32> to vector<8x1xf32>
    %120 = arith.addf %117, %119 : vector<8x1xf32>
    %c2_66 = arith.constant 2 : index
    %c0_67 = arith.constant 0 : index
    %c0_68 = arith.constant 0 : index
    %121 = vector.load %arg13[%c2_66, %c0_67, %c0_68] : memref<4x8x1xf32, #tpu.memory_space<vmem>>, vector<1x8x1xf32>
    %122 = vector.shape_cast %121 : vector<1x8x1xf32> to vector<8x1xf32>
    %123 = vector.shape_cast %120 : vector<8x1xf32> to vector<1x8x1xf32>
    tpu.vector_store %arg13[%c2_66, %c0_67, %c0_68], %123 {strides = array<i32>} : memref<4x8x1xf32, #tpu.memory_space<vmem>>, vector<1x8x1xf32>,
    %c2_69 = arith.constant 2 : index
    %c0_70 = arith.constant 0 : index
    %c0_71 = arith.constant 0 : index
    %124 = vector.load %arg14[%c2_69, %c0_70, %c0_71] : memref<4x8x16xf32, #tpu.memory_space<vmem>>, vector<1x8x16xf32>
    %125 = vector.shape_cast %124 : vector<1x8x16xf32> to vector<8x16xf32>
    %126 = vector.broadcast %111 : vector<8x1xf32> to vector<8x16xf32>
    %127 = arith.mulf %126, %125 : vector<8x16xf32>
    %128 = arith.truncf %114 : vector<8x8xf32> to vector<8x8xbf16>
    %cst_72 = arith.constant dense<0.000000e+00> : vector<8x16xf32>
    %129 = tpu.matmul %128, %97, %cst_72 {dimension_numbers = #tpu.dot_dimension_numbers<[1], [0], [0], [1], [0, 0, 1, 1], [], []>} : vector<8x8xbf16>, vector<8x16xbf16>, vector<8x16xf32> -> vector<8x16xf32>
    %130 = arith.addf %127, %129 : vector<8x16xf32>
    %c2_73 = arith.constant 2 : index
    %c0_74 = arith.constant 0 : index
    %c0_75 = arith.constant 0 : index
    %131 = vector.load %arg14[%c2_73, %c0_74, %c0_75] : memref<4x8x16xf32, #tpu.memory_space<vmem>>, vector<1x8x16xf32>
    %132 = vector.shape_cast %131 : vector<1x8x16xf32> to vector<8x16xf32>
    %133 = vector.shape_cast %130 : vector<8x16xf32> to vector<1x8x16xf32>
    tpu.vector_store %arg14[%c2_73, %c0_74, %c0_75], %133 {strides = array<i32>} : memref<4x8x16xf32, #tpu.memory_space<vmem>>, vector<1x8x16xf32>,
    %c2_76 = arith.constant 2 : index
    %c0_77 = arith.constant 0 : index
    %c0_78 = arith.constant 0 : index
    %134 = vector.load %arg12[%c2_76, %c0_77, %c0_78] : memref<4x8x1xf32, #tpu.memory_space<vmem>>, vector<1x8x1xf32>
    %135 = vector.shape_cast %134 : vector<1x8x1xf32> to vector<8x1xf32>
    %136 = vector.shape_cast %109 : vector<8x1xf32> to vector<1x8x1xf32>
    tpu.vector_store %arg12[%c2_76, %c0_77, %c0_78], %136 {strides = array<i32>} : memref<4x8x1xf32, #tpu.memory_space<vmem>>, vector<1x8x1xf32>,
    %137 = vector.extract_strided_slice %4 {offsets = [0, 24], sizes = [8, 8], strides = [1, 1]} : vector<8x32xbf16> to vector<8x8xbf16>
    %138 = vector.extract_strided_slice %6 {offsets = [0, 24], sizes = [8, 8], strides = [1, 1]} : vector<8x32xbf16> to vector<8x8xbf16>
    %cst_79 = arith.constant dense<0.000000e+00> : vector<8x8xf32>
    %139 = tpu.matmul %137, %138, %cst_79 {dimension_numbers = #tpu.dot_dimension_numbers<[1], [1], [0], [0], [0, 0, 1, 0], [], []>} : vector<8x8xbf16>, vector<8x8xbf16>, vector<8x8xf32> -> vector<8x8xf32>
    %140 = vector.extract_strided_slice %10 {offsets = [3, 0, 0], sizes = [1, 8, 8], strides = [1, 1, 1]} : vector<4x8x8xf32> to vector<1x8x8xf32>
    %141 = vector.shape_cast %140 : vector<1x8x8xf32> to vector<8x8xf32>
    %142 = arith.mulf %141, %17 : vector<8x8xf32>
    %143 = arith.addf %139, %142 : vector<8x8xf32>
    %c3 = arith.constant 3 : index
    %c0_80 = arith.constant 0 : index
    %c0_81 = arith.constant 0 : index
    %144 = vector.load %arg12[%c3, %c0_80, %c0_81] : memref<4x8x1xf32, #tpu.memory_space<vmem>>, vector<1x8x1xf32>
    %145 = vector.shape_cast %144 : vector<1x8x1xf32> to vector<8x1xf32>
    %cst_82 = arith.constant dense<0xFF800000> : vector<8xf32>
    %146 = vector.multi_reduction <maximumf>, %143, %cst_82 [1] : vector<8x8xf32> to vector<8xf32>
    %147 = vector.shape_cast %146 : vector<8xf32> to vector<8x1xf32>
    %148 = arith.maximumf %145, %147 : vector<8x1xf32>
    %149 = arith.subf %145, %148 : vector<8x1xf32>
    %150 = math.exp %149 : vector<8x1xf32>
    %151 = vector.broadcast %148 : vector<8x1xf32> to vector<8x8xf32>
    %152 = arith.subf %143, %151 : vector<8x8xf32>
    %153 = math.exp %152 : vector<8x8xf32>
    %c3_83 = arith.constant 3 : index
    %c0_84 = arith.constant 0 : index
    %c0_85 = arith.constant 0 : index
    %154 = vector.load %arg13[%c3_83, %c0_84, %c0_85] : memref<4x8x1xf32, #tpu.memory_space<vmem>>, vector<1x8x1xf32>
    %155 = vector.shape_cast %154 : vector<1x8x1xf32> to vector<8x1xf32>
    %156 = arith.mulf %150, %155 : vector<8x1xf32>
    %cst_86 = arith.constant dense<0.000000e+00> : vector<8xf32>
    %157 = vector.multi_reduction <add>, %153, %cst_86 [1] : vector<8x8xf32> to vector<8xf32>
    %158 = vector.shape_cast %157 : vector<8xf32> to vector<8x1xf32>
    %159 = arith.addf %156, %158 : vector<8x1xf32>
    %c3_87 = arith.constant 3 : index
    %c0_88 = arith.constant 0 : index
    %c0_89 = arith.constant 0 : index
    %160 = vector.load %arg13[%c3_87, %c0_88, %c0_89] : memref<4x8x1xf32, #tpu.memory_space<vmem>>, vector<1x8x1xf32>
    %161 = vector.shape_cast %160 : vector<1x8x1xf32> to vector<8x1xf32>
    %162 = vector.shape_cast %159 : vector<8x1xf32> to vector<1x8x1xf32>
    tpu.vector_store %arg13[%c3_87, %c0_88, %c0_89], %162 {strides = array<i32>} : memref<4x8x1xf32, #tpu.memory_space<vmem>>, vector<1x8x1xf32>,
    %c3_90 = arith.constant 3 : index
    %c0_91 = arith.constant 0 : index
    %c0_92 = arith.constant 0 : index
    %163 = vector.load %arg14[%c3_90, %c0_91, %c0_92] : memref<4x8x16xf32, #tpu.memory_space<vmem>>, vector<1x8x16xf32>
    %164 = vector.shape_cast %163 : vector<1x8x16xf32> to vector<8x16xf32>
    %165 = vector.broadcast %150 : vector<8x1xf32> to vector<8x16xf32>
    %166 = arith.mulf %165, %164 : vector<8x16xf32>
    %167 = arith.truncf %153 : vector<8x8xf32> to vector<8x8xbf16>
    %cst_93 = arith.constant dense<0.000000e+00> : vector<8x16xf32>
    %168 = tpu.matmul %167, %97, %cst_93 {dimension_numbers = #tpu.dot_dimension_numbers<[1], [0], [0], [1], [0, 0, 1, 1], [], []>} : vector<8x8xbf16>, vector<8x16xbf16>, vector<8x16xf32> -> vector<8x16xf32>
    %169 = arith.addf %166, %168 : vector<8x16xf32>
    %c3_94 = arith.constant 3 : index
    %c0_95 = arith.constant 0 : index
    %c0_96 = arith.constant 0 : index
    %170 = vector.load %arg14[%c3_94, %c0_95, %c0_96] : memref<4x8x16xf32, #tpu.memory_space<vmem>>, vector<1x8x16xf32>
    %171 = vector.shape_cast %170 : vector<1x8x16xf32> to vector<8x16xf32>
    %172 = vector.shape_cast %169 : vector<8x16xf32> to vector<1x8x16xf32>
    tpu.vector_store %arg14[%c3_94, %c0_95, %c0_96], %172 {strides = array<i32>} : memref<4x8x16xf32, #tpu.memory_space<vmem>>, vector<1x8x16xf32>,
    %c3_97 = arith.constant 3 : index
    %c0_98 = arith.constant 0 : index
    %c0_99 = arith.constant 0 : index
    %173 = vector.load %arg12[%c3_97, %c0_98, %c0_99] : memref<4x8x1xf32, #tpu.memory_space<vmem>>, vector<1x8x1xf32>
    %174 = vector.shape_cast %173 : vector<1x8x1xf32> to vector<8x1xf32>
    %175 = vector.shape_cast %148 : vector<8x1xf32> to vector<1x8x1xf32>
    tpu.vector_store %arg12[%c3_97, %c0_98, %c0_99], %175 {strides = array<i32>} : memref<4x8x1xf32, #tpu.memory_space<vmem>>, vector<1x8x1xf32>,
    %c0_i32_100 = arith.constant 0 : i32
    %176 = arith.cmpi eq, %arg2, %c0_i32_100 : i32
    %177 = arith.extui %176 : i1 to i32
    %c0_i32_101 = arith.constant 0 : i32
    %178 = arith.cmpi ne, %177, %c0_i32_101 : i32
    scf.if %178 {
      %c0_102 = arith.constant 0 : index
      %179 = memref.load %arg3[%c0_102] : memref<1xf32, #tpu.memory_space<smem>>
      %c0_103 = arith.constant 0 : index
      %c0_104 = arith.constant 0 : index
      %c0_105 = arith.constant 0 : index
      %180 = vector.load %arg14[%c0_103, %c0_104, %c0_105] : memref<4x8x16xf32, #tpu.memory_space<vmem>>, vector<1x8x16xf32>
      %181 = vector.shape_cast %180 : vector<1x8x16xf32> to vector<8x16xf32>
      %c0_106 = arith.constant 0 : index
      %c0_107 = arith.constant 0 : index
      %c0_108 = arith.constant 0 : index
      %182 = vector.load %arg13[%c0_106, %c0_107, %c0_108] : memref<4x8x1xf32, #tpu.memory_space<vmem>>, vector<1x8x1xf32>
      %183 = vector.shape_cast %182 : vector<1x8x1xf32> to vector<8x1xf32>
      %184 = tpu.reciprocal %183 {approx = true} : vector<8x1xf32> -> vector<8x1xf32>
      %185 = vector.broadcast %184 : vector<8x1xf32> to vector<8x16xf32>
      %186 = arith.mulf %181, %185 : vector<8x16xf32>
      %c1_109 = arith.constant 1 : index
      %c0_110 = arith.constant 0 : index
      %c0_111 = arith.constant 0 : index
      %187 = vector.load %arg14[%c1_109, %c0_110, %c0_111] : memref<4x8x16xf32, #tpu.memory_space<vmem>>, vector<1x8x16xf32>
      %188 = vector.shape_cast %187 : vector<1x8x16xf32> to vector<8x16xf32>
      %c1_112 = arith.constant 1 : index
      %c0_113 = arith.constant 0 : index
      %c0_114 = arith.constant 0 : index
      %189 = vector.load %arg13[%c1_112, %c0_113, %c0_114] : memref<4x8x1xf32, #tpu.memory_space<vmem>>, vector<1x8x1xf32>
      %190 = vector.shape_cast %189 : vector<1x8x1xf32> to vector<8x1xf32>
      %191 = tpu.reciprocal %190 {approx = true} : vector<8x1xf32> -> vector<8x1xf32>
      %192 = vector.broadcast %191 : vector<8x1xf32> to vector<8x16xf32>
      %193 = arith.mulf %188, %192 : vector<8x16xf32>
      %194 = vector.broadcast %179 : f32 to vector<8x16xf32>
      %195 = arith.mulf %194, %193 : vector<8x16xf32>
      %196 = arith.subf %186, %195 : vector<8x16xf32>
      %197 = arith.mulf %196, %196 : vector<8x16xf32>
      %cst_115 = arith.constant dense<0.000000e+00> : vector<8xf32>
      %198 = vector.multi_reduction <add>, %197, %cst_115 [1] : vector<8x16xf32> to vector<8xf32>
      %199 = vector.shape_cast %198 : vector<8xf32> to vector<8x1xf32>
      %cst_116 = arith.constant 1.600000e+01 : f32
      %200 = vector.broadcast %cst_116 : f32 to vector<8x1xf32>
      %201 = arith.divf %199, %200 : vector<8x1xf32>
      %cst_117 = arith.constant 9.99999974E-6 : f32
      %202 = vector.broadcast %cst_117 : f32 to vector<8x1xf32>
      %203 = arith.addf %201, %202 : vector<8x1xf32>
      %204 = math.rsqrt %203 : vector<8x1xf32>
      %205 = vector.broadcast %204 : vector<8x1xf32> to vector<8x16xf32>
      %206 = arith.mulf %196, %205 : vector<8x16xf32>
      %c0_118 = arith.constant 0 : index
      %c0_119 = arith.constant 0 : index
      %207 = vector.load %arg10[%c0_118, %c0_119] : memref<1x16xf32, #tpu.memory_space<vmem>>, vector<1x16xf32>
      %208 = vector.broadcast %207 : vector<1x16xf32> to vector<8x16xf32>
      %209 = arith.mulf %206, %208 : vector<8x16xf32>
      %cst_120 = arith.constant 0.644490957 : f32
      %210 = vector.broadcast %cst_120 : f32 to vector<8x16xf32>
      %211 = arith.mulf %209, %210 : vector<8x16xf32>
      %c2_121 = arith.constant 2 : index
      %c0_122 = arith.constant 0 : index
      %c0_123 = arith.constant 0 : index
      %212 = vector.load %arg14[%c2_121, %c0_122, %c0_123] : memref<4x8x16xf32, #tpu.memory_space<vmem>>, vector<1x8x16xf32>
      %213 = vector.shape_cast %212 : vector<1x8x16xf32> to vector<8x16xf32>
      %c2_124 = arith.constant 2 : index
      %c0_125 = arith.constant 0 : index
      %c0_126 = arith.constant 0 : index
      %214 = vector.load %arg13[%c2_124, %c0_125, %c0_126] : memref<4x8x1xf32, #tpu.memory_space<vmem>>, vector<1x8x1xf32>
      %215 = vector.shape_cast %214 : vector<1x8x1xf32> to vector<8x1xf32>
      %216 = tpu.reciprocal %215 {approx = true} : vector<8x1xf32> -> vector<8x1xf32>
      %217 = vector.broadcast %216 : vector<8x1xf32> to vector<8x16xf32>
      %218 = arith.mulf %213, %217 : vector<8x16xf32>
      %c3_127 = arith.constant 3 : index
      %c0_128 = arith.constant 0 : index
      %c0_129 = arith.constant 0 : index
      %219 = vector.load %arg14[%c3_127, %c0_128, %c0_129] : memref<4x8x16xf32, #tpu.memory_space<vmem>>, vector<1x8x16xf32>
      %220 = vector.shape_cast %219 : vector<1x8x16xf32> to vector<8x16xf32>
      %c3_130 = arith.constant 3 : index
      %c0_131 = arith.constant 0 : index
      %c0_132 = arith.constant 0 : index
      %221 = vector.load %arg13[%c3_130, %c0_131, %c0_132] : memref<4x8x1xf32, #tpu.memory_space<vmem>>, vector<1x8x1xf32>
      %222 = vector.shape_cast %221 : vector<1x8x1xf32> to vector<8x1xf32>
      %223 = tpu.reciprocal %222 {approx = true} : vector<8x1xf32> -> vector<8x1xf32>
      %224 = vector.broadcast %223 : vector<8x1xf32> to vector<8x16xf32>
      %225 = arith.mulf %220, %224 : vector<8x16xf32>
      %226 = vector.broadcast %179 : f32 to vector<8x16xf32>
      %227 = arith.mulf %226, %225 : vector<8x16xf32>
      %228 = arith.subf %218, %227 : vector<8x16xf32>
      %229 = arith.mulf %228, %228 : vector<8x16xf32>
      %cst_133 = arith.constant dense<0.000000e+00> : vector<8xf32>
      %230 = vector.multi_reduction <add>, %229, %cst_133 [1] : vector<8x16xf32> to vector<8xf32>
      %231 = vector.shape_cast %230 : vector<8xf32> to vector<8x1xf32>
      %cst_134 = arith.constant 1.600000e+01 : f32
      %232 = vector.broadcast %cst_134 : f32 to vector<8x1xf32>
      %233 = arith.divf %231, %232 : vector<8x1xf32>
      %cst_135 = arith.constant 9.99999974E-6 : f32
      %234 = vector.broadcast %cst_135 : f32 to vector<8x1xf32>
      %235 = arith.addf %233, %234 : vector<8x1xf32>
      %236 = math.rsqrt %235 : vector<8x1xf32>
      %237 = vector.broadcast %236 : vector<8x1xf32> to vector<8x16xf32>
      %238 = arith.mulf %228, %237 : vector<8x16xf32>
      %c0_136 = arith.constant 0 : index
      %c0_137 = arith.constant 0 : index
      %239 = vector.load %arg10[%c0_136, %c0_137] : memref<1x16xf32, #tpu.memory_space<vmem>>, vector<1x16xf32>
      %240 = vector.broadcast %239 : vector<1x16xf32> to vector<8x16xf32>
      %241 = arith.mulf %238, %240 : vector<8x16xf32>
      %cst_138 = arith.constant 0.644490957 : f32
      %242 = vector.broadcast %cst_138 : f32 to vector<8x16xf32>
      %243 = arith.mulf %241, %242 : vector<8x16xf32>
      %244 = tpu.concatenate %211, %243 in 1 : vector<8x16xf32>, vector<8x16xf32> -> vector<8x32xf32>
      %245 = arith.truncf %244 : vector<8x32xf32> to vector<8x32xbf16>
      %c0_139 = arith.constant 0 : index
      %c0_140 = arith.constant 0 : index
      %c0_141 = arith.constant 0 : index
      %246 = vector.load %arg8[%c0_139, %c0_140, %c0_141] : memref<1x8x32xf32, #tpu.memory_space<vmem>>, vector<1x8x32xf32>
      %247 = vector.shape_cast %246 : vector<1x8x32xf32> to vector<8x32xf32>
      %c0_142 = arith.constant 0 : index
      %c0_143 = arith.constant 0 : index
      %248 = vector.load %arg9[%c0_142, %c0_143] : memref<32x32xbf16, #tpu.memory_space<vmem>>, vector<32x32xbf16>
      %cst_144 = arith.constant dense<0.000000e+00> : vector<8x32xf32>
      %249 = tpu.matmul %245, %248, %cst_144 {dimension_numbers = #tpu.dot_dimension_numbers<[1], [0], [0], [1], [0, 0, 1, 1], [], []>} : vector<8x32xbf16>, vector<32x32xbf16>, vector<8x32xf32> -> vector<8x32xf32>
      %250 = arith.addf %247, %249 : vector<8x32xf32>
      %c0_145 = arith.constant 0 : index
      %c0_146 = arith.constant 0 : index
      %c0_147 = arith.constant 0 : index
      %251 = vector.load %arg11[%c0_145, %c0_146, %c0_147] : memref<1x8x32xf32, #tpu.memory_space<vmem>>, vector<1x8x32xf32>
      %252 = vector.shape_cast %251 : vector<1x8x32xf32> to vector<8x32xf32>
      %253 = vector.shape_cast %250 : vector<8x32xf32> to vector<1x8x32xf32>
      tpu.vector_store %arg11[%c0_145, %c0_146, %c0_147], %253 {strides = array<i32>} : memref<1x8x32xf32, #tpu.memory_space<vmem>>, vector<1x8x32xf32>,
    } else {
    }
    return
  }
  func.func @transform_0(%arg0: i32, %arg1: i32, %arg2: i32) -> i32 {
    %c0_i32 = arith.constant 0 : i32
    %c0_i32_0 = arith.constant 0 : i32
    return %c0_i32 : i32
  }
  func.func @transform_1(%arg0: i32, %arg1: i32, %arg2: i32) -> (i32, i32, i32) {
    %c0_i32 = arith.constant 0 : i32
    %c0_i32_0 = arith.constant 0 : i32
    return %arg0, %arg1, %c0_i32 : i32, i32, i32
  }
  func.func @transform_2(%arg0: i32, %arg1: i32, %arg2: i32) -> (i32, i32, i32) {
    %c0_i32 = arith.constant 0 : i32
    %c0_i32_0 = arith.constant 0 : i32
    return %arg0, %arg2, %c0_i32 : i32, i32, i32
  }
  func.func @transform_3(%arg0: i32, %arg1: i32, %arg2: i32) -> (i32, i32, i32) {
    %c0_i32 = arith.constant 0 : i32
    %c0_i32_0 = arith.constant 0 : i32
    return %arg0, %arg2, %c0_i32 : i32, i32, i32
  }
  func.func @transform_4(%arg0: i32, %arg1: i32, %arg2: i32) -> (i32, i32, i32, i32) {
    %c0_i32 = arith.constant 0 : i32
    %c0_i32_0 = arith.constant 0 : i32
    return %arg0, %c0_i32, %arg1, %arg2 : i32, i32, i32, i32
  }
  func.func @transform_5(%arg0: i32, %arg1: i32, %arg2: i32) -> (i32, i32, i32) {
    %c0_i32 = arith.constant 0 : i32
    %c0_i32_0 = arith.constant 0 : i32
    return %arg0, %arg1, %c0_i32 : i32, i32, i32
  }
  func.func @transform_6(%arg0: i32, %arg1: i32, %arg2: i32) -> (i32, i32) {
    %c0_i32 = arith.constant 0 : i32
    %c0_i32_0 = arith.constant 0 : i32
    %c0_i32_1 = arith.constant 0 : i32
    return %c0_i32, %c0_i32_0 : i32, i32
  }
  func.func @transform_7(%arg0: i32, %arg1: i32, %arg2: i32) -> (i32, i32) {
    %c0_i32 = arith.constant 0 : i32
    %c0_i32_0 = arith.constant 0 : i32
    %c0_i32_1 = arith.constant 0 : i32
    return %c0_i32, %c0_i32_0 : i32, i32
  }
  func.func @transform_8(%arg0: i32, %arg1: i32, %arg2: i32) -> (i32, i32, i32) {
    %c0_i32 = arith.constant 0 : i32
    %c0_i32_0 = arith.constant 0 : i32
    return %arg0, %arg1, %c0_i32 : i32, i32, i32
  }
}

module attributes {stable_mosaic.version = 11 : i64} {
  func.func @_outer_kernel(%arg0: i32, %arg1: i32, %arg2: memref<4xf32, #tpu.memory_space<smem>>, %arg3: memref<1x8x32xbf16, #tpu.memory_space<vmem>>, %arg4: memref<1x8x32xbf16, #tpu.memory_space<vmem>>, %arg5: memref<32x128xbf16, #tpu.memory_space<vmem>>, %arg6: memref<1x4x8x8xf32, #tpu.memory_space<vmem>>, %arg7: memref<1x4x8x8xf32, #tpu.memory_space<vmem>>) attributes {dimension_semantics = [#tpu.dimension_semantics<parallel>, #tpu.dimension_semantics<parallel>], iteration_bounds = array<i64: 2, 1>, scalar_prefetch = 0 : i64, scratch_operands = 0 : i64, tpu.core_type = #tpu.core_type<tc>, window_params = [{transform_indices = @transform_0, window_bounds = array<i64: 4>}, {transform_indices = @transform_1, window_bounds = array<i64: 1, 8, 32>}, {transform_indices = @transform_2, window_bounds = array<i64: 1, 8, 32>}, {pipeline_mode = #tpu.pipeline_mode<synchronous>, transform_indices = @transform_3, window_bounds = array<i64: 32, 128>}, {transform_indices = @transform_4, window_bounds = array<i64: 1, 4, 8, 8>}, {transform_indices = @transform_5, window_bounds = array<i64: 1, 4, 8, 8>}]} {
    %c0 = arith.constant 0 : index
    %c0_0 = arith.constant 0 : index
    %c0_1 = arith.constant 0 : index
    %0 = vector.load %arg3[%c0, %c0_0, %c0_1] : memref<1x8x32xbf16, #tpu.memory_space<vmem>>, vector<1x8x32xbf16>
    %1 = vector.shape_cast %0 : vector<1x8x32xbf16> to vector<8x32xbf16>
    %c0_2 = arith.constant 0 : index
    %c0_3 = arith.constant 0 : index
    %c0_4 = arith.constant 0 : index
    %2 = vector.load %arg4[%c0_2, %c0_3, %c0_4] : memref<1x8x32xbf16, #tpu.memory_space<vmem>>, vector<1x8x32xbf16>
    %3 = vector.shape_cast %2 : vector<1x8x32xbf16> to vector<8x32xbf16>
    %c0_5 = arith.constant 0 : index
    %c0_6 = arith.constant 0 : index
    %4 = vector.load %arg5[%c0_5, %c0_6] : memref<32x128xbf16, #tpu.memory_space<vmem>>, vector<32x128xbf16>
    %cst = arith.constant dense<0.000000e+00> : vector<8x128xf32>
    %5 = tpu.matmul %1, %4, %cst {dimension_numbers = #tpu.dot_dimension_numbers<[1], [0], [0], [1], [0, 0, 1, 1], [], []>} : vector<8x32xbf16>, vector<32x128xbf16>, vector<8x128xf32> -> vector<8x128xf32>
    %6 = arith.truncf %5 : vector<8x128xf32> to vector<8x128xbf16>
    %c0_7 = arith.constant 0 : index
    %c0_8 = arith.constant 0 : index
    %c0_9 = arith.constant 0 : index
    %c0_10 = arith.constant 0 : index
    %7 = vector.load %arg6[%c0_7, %c0_8, %c0_9, %c0_10] : memref<1x4x8x8xf32, #tpu.memory_space<vmem>>, vector<1x4x8x8xf32>
    %8 = vector.shape_cast %7 : vector<1x4x8x8xf32> to vector<4x8x8xf32>
    %9 = arith.mulf %8, %8 : vector<4x8x8xf32>
    %cst_11 = arith.constant dense<0.000000e+00> : vector<8x8xf32>
    %10 = vector.multi_reduction <add>, %9, %cst_11 [0] : vector<4x8x8xf32> to vector<8x8xf32>
    %cst_12 = arith.constant 4.000000e+00 : f32
    %11 = vector.broadcast %cst_12 : f32 to vector<8x8xf32>
    %12 = arith.divf %10, %11 : vector<8x8xf32>
    %cst_13 = arith.constant 9.99999974E-6 : f32
    %13 = vector.broadcast %cst_13 : f32 to vector<8x8xf32>
    %14 = arith.addf %12, %13 : vector<8x8xf32>
    %15 = math.rsqrt %14 : vector<8x8xf32>
    %16 = vector.extract_strided_slice %6 {offsets = [0, 0], sizes = [8, 32], strides = [1, 1]} : vector<8x128xbf16> to vector<8x32xbf16>
    %cst_14 = arith.constant dense<0.000000e+00> : vector<8x8xf32>
    %17 = tpu.matmul %16, %3, %cst_14 {dimension_numbers = #tpu.dot_dimension_numbers<[1], [1], [0], [0], [0, 0, 1, 0], [], []>} : vector<8x32xbf16>, vector<8x32xbf16>, vector<8x8xf32> -> vector<8x8xf32>
    %c0_15 = arith.constant 0 : index
    %18 = memref.load %arg2[%c0_15] : memref<4xf32, #tpu.memory_space<smem>>
    %19 = vector.broadcast %18 : f32 to vector<8x8xf32>
    %20 = arith.addf %17, %19 : vector<8x8xf32>
    %21 = vector.extract_strided_slice %8 {offsets = [0, 0, 0], sizes = [1, 8, 8], strides = [1, 1, 1]} : vector<4x8x8xf32> to vector<1x8x8xf32>
    %22 = vector.shape_cast %21 : vector<1x8x8xf32> to vector<8x8xf32>
    %23 = arith.mulf %22, %15 : vector<8x8xf32>
    %24 = arith.addf %20, %23 : vector<8x8xf32>
    %c0_16 = arith.constant 0 : index
    %c0_17 = arith.constant 0 : index
    %c0_18 = arith.constant 0 : index
    %c0_19 = arith.constant 0 : index
    %25 = vector.load %arg7[%c0_16, %c0_17, %c0_18, %c0_19] : memref<1x4x8x8xf32, #tpu.memory_space<vmem>>, vector<1x1x8x8xf32>
    %26 = vector.shape_cast %25 : vector<1x1x8x8xf32> to vector<8x8xf32>
    %27 = vector.shape_cast %24 : vector<8x8xf32> to vector<1x1x8x8xf32>
    tpu.vector_store %arg7[%c0_16, %c0_17, %c0_18, %c0_19], %27 {strides = array<i32>} : memref<1x4x8x8xf32, #tpu.memory_space<vmem>>, vector<1x1x8x8xf32>,
    %28 = vector.extract_strided_slice %6 {offsets = [0, 32], sizes = [8, 32], strides = [1, 1]} : vector<8x128xbf16> to vector<8x32xbf16>
    %cst_20 = arith.constant dense<0.000000e+00> : vector<8x8xf32>
    %29 = tpu.matmul %28, %3, %cst_20 {dimension_numbers = #tpu.dot_dimension_numbers<[1], [1], [0], [0], [0, 0, 1, 0], [], []>} : vector<8x32xbf16>, vector<8x32xbf16>, vector<8x8xf32> -> vector<8x8xf32>
    %c1 = arith.constant 1 : index
    %30 = memref.load %arg2[%c1] : memref<4xf32, #tpu.memory_space<smem>>
    %31 = vector.broadcast %30 : f32 to vector<8x8xf32>
    %32 = arith.addf %29, %31 : vector<8x8xf32>
    %33 = vector.extract_strided_slice %8 {offsets = [1, 0, 0], sizes = [1, 8, 8], strides = [1, 1, 1]} : vector<4x8x8xf32> to vector<1x8x8xf32>
    %34 = vector.shape_cast %33 : vector<1x8x8xf32> to vector<8x8xf32>
    %35 = arith.mulf %34, %15 : vector<8x8xf32>
    %36 = arith.addf %32, %35 : vector<8x8xf32>
    %c0_21 = arith.constant 0 : index
    %c1_22 = arith.constant 1 : index
    %c0_23 = arith.constant 0 : index
    %c0_24 = arith.constant 0 : index
    %37 = vector.load %arg7[%c0_21, %c1_22, %c0_23, %c0_24] : memref<1x4x8x8xf32, #tpu.memory_space<vmem>>, vector<1x1x8x8xf32>
    %38 = vector.shape_cast %37 : vector<1x1x8x8xf32> to vector<8x8xf32>
    %39 = vector.shape_cast %36 : vector<8x8xf32> to vector<1x1x8x8xf32>
    tpu.vector_store %arg7[%c0_21, %c1_22, %c0_23, %c0_24], %39 {strides = array<i32>} : memref<1x4x8x8xf32, #tpu.memory_space<vmem>>, vector<1x1x8x8xf32>,
    %40 = vector.extract_strided_slice %6 {offsets = [0, 64], sizes = [8, 32], strides = [1, 1]} : vector<8x128xbf16> to vector<8x32xbf16>
    %cst_25 = arith.constant dense<0.000000e+00> : vector<8x8xf32>
    %41 = tpu.matmul %40, %3, %cst_25 {dimension_numbers = #tpu.dot_dimension_numbers<[1], [1], [0], [0], [0, 0, 1, 0], [], []>} : vector<8x32xbf16>, vector<8x32xbf16>, vector<8x8xf32> -> vector<8x8xf32>
    %c2 = arith.constant 2 : index
    %42 = memref.load %arg2[%c2] : memref<4xf32, #tpu.memory_space<smem>>
    %43 = vector.broadcast %42 : f32 to vector<8x8xf32>
    %44 = arith.addf %41, %43 : vector<8x8xf32>
    %45 = vector.extract_strided_slice %8 {offsets = [2, 0, 0], sizes = [1, 8, 8], strides = [1, 1, 1]} : vector<4x8x8xf32> to vector<1x8x8xf32>
    %46 = vector.shape_cast %45 : vector<1x8x8xf32> to vector<8x8xf32>
    %47 = arith.mulf %46, %15 : vector<8x8xf32>
    %48 = arith.addf %44, %47 : vector<8x8xf32>
    %c0_26 = arith.constant 0 : index
    %c2_27 = arith.constant 2 : index
    %c0_28 = arith.constant 0 : index
    %c0_29 = arith.constant 0 : index
    %49 = vector.load %arg7[%c0_26, %c2_27, %c0_28, %c0_29] : memref<1x4x8x8xf32, #tpu.memory_space<vmem>>, vector<1x1x8x8xf32>
    %50 = vector.shape_cast %49 : vector<1x1x8x8xf32> to vector<8x8xf32>
    %51 = vector.shape_cast %48 : vector<8x8xf32> to vector<1x1x8x8xf32>
    tpu.vector_store %arg7[%c0_26, %c2_27, %c0_28, %c0_29], %51 {strides = array<i32>} : memref<1x4x8x8xf32, #tpu.memory_space<vmem>>, vector<1x1x8x8xf32>,
    %52 = vector.extract_strided_slice %6 {offsets = [0, 96], sizes = [8, 32], strides = [1, 1]} : vector<8x128xbf16> to vector<8x32xbf16>
    %cst_30 = arith.constant dense<0.000000e+00> : vector<8x8xf32>
    %53 = tpu.matmul %52, %3, %cst_30 {dimension_numbers = #tpu.dot_dimension_numbers<[1], [1], [0], [0], [0, 0, 1, 0], [], []>} : vector<8x32xbf16>, vector<8x32xbf16>, vector<8x8xf32> -> vector<8x8xf32>
    %c3 = arith.constant 3 : index
    %54 = memref.load %arg2[%c3] : memref<4xf32, #tpu.memory_space<smem>>
    %55 = vector.broadcast %54 : f32 to vector<8x8xf32>
    %56 = arith.addf %53, %55 : vector<8x8xf32>
    %57 = vector.extract_strided_slice %8 {offsets = [3, 0, 0], sizes = [1, 8, 8], strides = [1, 1, 1]} : vector<4x8x8xf32> to vector<1x8x8xf32>
    %58 = vector.shape_cast %57 : vector<1x8x8xf32> to vector<8x8xf32>
    %59 = arith.mulf %58, %15 : vector<8x8xf32>
    %60 = arith.addf %56, %59 : vector<8x8xf32>
    %c0_31 = arith.constant 0 : index
    %c3_32 = arith.constant 3 : index
    %c0_33 = arith.constant 0 : index
    %c0_34 = arith.constant 0 : index
    %61 = vector.load %arg7[%c0_31, %c3_32, %c0_33, %c0_34] : memref<1x4x8x8xf32, #tpu.memory_space<vmem>>, vector<1x1x8x8xf32>
    %62 = vector.shape_cast %61 : vector<1x1x8x8xf32> to vector<8x8xf32>
    %63 = vector.shape_cast %60 : vector<8x8xf32> to vector<1x1x8x8xf32>
    tpu.vector_store %arg7[%c0_31, %c3_32, %c0_33, %c0_34], %63 {strides = array<i32>} : memref<1x4x8x8xf32, #tpu.memory_space<vmem>>, vector<1x1x8x8xf32>,
    return
  }
  func.func @transform_0(%arg0: i32, %arg1: i32) -> i32 {
    %c0_i32 = arith.constant 0 : i32
    %c0_i32_0 = arith.constant 0 : i32
    return %c0_i32 : i32
  }
  func.func @transform_1(%arg0: i32, %arg1: i32) -> (i32, i32, i32) {
    %c0_i32 = arith.constant 0 : i32
    %c0_i32_0 = arith.constant 0 : i32
    return %arg0, %arg1, %c0_i32 : i32, i32, i32
  }
  func.func @transform_2(%arg0: i32, %arg1: i32) -> (i32, i32, i32) {
    %c0_i32 = arith.constant 0 : i32
    %c0_i32_0 = arith.constant 0 : i32
    %c0_i32_1 = arith.constant 0 : i32
    return %arg0, %c0_i32, %c0_i32_0 : i32, i32, i32
  }
  func.func @transform_3(%arg0: i32, %arg1: i32) -> (i32, i32) {
    %c0_i32 = arith.constant 0 : i32
    %c0_i32_0 = arith.constant 0 : i32
    %c0_i32_1 = arith.constant 0 : i32
    return %c0_i32, %c0_i32_0 : i32, i32
  }
  func.func @transform_4(%arg0: i32, %arg1: i32) -> (i32, i32, i32, i32) {
    %c0_i32 = arith.constant 0 : i32
    %c0_i32_0 = arith.constant 0 : i32
    %c0_i32_1 = arith.constant 0 : i32
    return %arg0, %c0_i32, %arg1, %c0_i32_0 : i32, i32, i32, i32
  }
  func.func @transform_5(%arg0: i32, %arg1: i32) -> (i32, i32, i32, i32) {
    %c0_i32 = arith.constant 0 : i32
    %c0_i32_0 = arith.constant 0 : i32
    %c0_i32_1 = arith.constant 0 : i32
    return %arg0, %c0_i32, %arg1, %c0_i32_0 : i32, i32, i32, i32
  }
}

</mosaic_0001>

<bundles_post_ra>
// kernel: dyblock_forward.4
= control target key start
LH: loop header
LB: loop body
LE: loop exit
PB: predicated region body
PF: predicated region fallthrough
CT: control target
= control target key end

     0   :  { %12 = vsyncpa [#allocation3], 0  ;;  %vm27_vm0 = vcmask 261120   ;;  %s571_s0 = inlined_call_operand.vmem [shape: f32[16,32], index: 0, kind: input, shape index: {}]   ;;  %s572_s1 = inlined_call_operand.vmem [shape: bf16[32,32], index: 1, kind: input, shape index: {}]   ;;  %s573_s2 = inlined_call_operand.vmem [shape: bf16[32,32], index: 2, kind: input, shape index: {}]   ;;  %s574_s3 = inlined_call_operand.vmem [shape: bf16[32,32], index: 3, kind: input, shape index: {}]   ;;  %s575_s4 = inlined_call_operand.hbm [shape: bf16[16,32], index: 4, kind: output, shape index: {0}]   ;;  %s576_s5 = inlined_call_operand.hbm [shape: bf16[16,32], index: 5, kind: output, shape index: {1}]   ;;  %s577_s6 = inlined_call_operand.hbm [shape: bf16[16,32], index: 6, kind: output, shape index: {2}]  }
   0x1   :  { %v23_v0 = vld [vmem:[%s571_s0] sm:$0xff]  ;;  %v24_v1 = vld [vmem:[%s571_s0 + $0x8] sm:$0xff] }
   0x2   :  { %v25_v2 = vmul.f32 %v23_v0, %v23_v0  ;;  %v26_v3 = vmul.f32 %v24_v1, %v24_v1 }
   0x4   :  { %v28_v4 = vsel %vm27_vm0, %v25_v2, 0.0  ;;  %v31_v5 = vsel %vm27_vm0, %v26_v3, 0.0 }
   0x5   :  { %29 = vadd.xlane.f32.xlu0 %v28_v4 }
   0x6   :  { %13 = vsyncpa [#allocation5], 0  ;;  %v359_v6 = vld [vmem:[%s572_s1] sm:$0xff]   ;;  %v439_v8 = vmov 0.0   ;;  %v361_v9 = vld [vmem:[%s572_s1 + $0x8] sm:$0xff]   ;;  %vm440_vm1 = vmmov 0  }
   0x7   :  { %v360_v7 = vld [vmem:[%s573_s2] sm:$0xff]   ;;  %328 = vmatprep.subr.bf16.mxu0 %v439_v8  ;;  %336 = vmatprep.subr.bf16.mxu1 %v439_v8  ;;  %v362_v10 = vld [vmem:[%s573_s2 + $0x8] sm:$0xff]   ;;  %vm228_vm2 = vcmask 257024   ;;  %s441_s10 = smov [#allocation4]   ;;  %s442_s12 = smov [#allocation2]  }
   0x8   :  { %329 = vmatpush3.bf16.msra.mxu0 %v359_v6  ;;  %337 = vmatpush3.bf16.msra.mxu1 %v360_v7  ;;  %v363_v21 = vld [vmem:[%s574_s3] sm:$0xff]   ;;  %v364_v23 = vld [vmem:[%s574_s3 + $0x8] sm:$0xff]   ;;  %s268_s11 = sshll.u32 %s441_s10, 4  ;;  %s256_s13 = sshll.u32 %s442_s12, 4  ;;  %s269_s11 = int_to_ptr.vmem [resolvable:$true] %s268_s11  ;;  %s516_s13 = int_to_ptr.vmem [resolvable:$true] %s256_s13 }
   0x9   :  { %32 = vadd.xlane.f32.xlu0 %v31_v5  ;;  %330 = vmatprep.subr.bf16.mxu0 %v439_v8  ;;  %s369_s3 = scalar_lea.vmem %s269_s11, 128  ;;  %p374_p1 = scmp.lt.s32.totalorder %s269_s11, %s269_s11 }
   0xa   :  { %338 = vmatprep.subr.bf16.mxu1 %v439_v8  ;;  %332 = vmatprep.mubr.msk.bf16.mxu0 %vm440_vm1, %v439_v8  ;;  %p370_p0 = scmp.ne.s32.totalorder %s269_s11, %s369_s3  ;;  %p375_p2 = scmp.lt.s32.totalorder %s369_s3, %s369_s3 }
   0xb   :  { %340 = vmatprep.mubr.msk.bf16.mxu1 %vm440_vm1, %v439_v8 }
   0xc   :  { %331 = vmatpush3.bf16.msra.mxu0 %v361_v9  ;;  %339 = vmatpush3.bf16.msra.mxu1 %v362_v10  ;;  %p376_p3 = por %p375_p2, %p374_p1 }
   0xd   :  { %344 = vmatprep.subr.bf16.mxu0 %v439_v8 }
   0xe   :  { %p377_p4 = pnand %p376_p3, %p370_p0 }
  0x92   :  { %v30_v11 = vpop.xlane.xlu0 %29 }
  0x93   :  { %v35_v12 = vmul.f32 0.03125, %v30_v11 }
  0x95   :  { %v37_v13 = vadd.f32 1e-05, %v35_v12 }
  0x96   :  { %v33_v14 = vpop.xlane.xlu0 %32 }
  0x97   :  { %v36_v15 = vmul.f32 0.03125, %v33_v14  ;;  %365 = vrsqrt.f32 %v37_v13 }
  0x99   :  { %v38_v16 = vadd.f32 1e-05, %v36_v15 }
  0x9b   :  { %367 = vrsqrt.f32 %v38_v16 }
  0xa1   :  { %v366_v17 = vpop.eup %365 }
  0xa2   :  { %v41_v19 = vmul.f32 %v366_v17, %v23_v0 }
  0xa5   :  { %v368_v18 = vpop.eup %367 }
  0xa6   :  { %v42_v20 = vmul.f32 %v368_v18, %v24_v1 }
  0xa8   :  { %v43_v22 = vpack.c.bf16 %v42_v20, %v41_v19 }
  0xaa   :  { %333 = vmatmul.mubr.msk.bf16.vlgmr.msra.gmra.mrb[0].mxu0 %vm27_vm0, %v43_v22  ;;  %341 = vmatmul.mubr.msk.bf16.vlgmr.msra.gmra.mrb[0].mxu1 %vm27_vm0, %v43_v22 }
  0xab   :  { %345 = vmatpush3.bf16.msra.mxu0 %v363_v21  ;;  %348 = vmatprep.mubr.msk.bf16.mxu0 %vm440_vm1, %v439_v8 }
  0xac   :  { %346 = vmatprep.subr.bf16.mxu0 %v439_v8 }
  0xaf   :  { %347 = vmatpush3.bf16.msra.mxu0 %v364_v23 }
  0xb2   :  { %349 = vmatmul.mubr.msk.bf16.vlgmr.msra.gmra.mrb[4].mxu0 %vm27_vm0, %v43_v22 }
 0x17d   :  { %v97_v24 = vpop.f32.mrb[0].mxu0  ;;  %v156_v25 = vpop.f32.mrb[0].mxu1 }
 0x17e   :  { %v104_v26 = vmul.f32 0.35355338, %v97_v24  ;;  %v315_v27 = vpack.c.bf16 %v156_v25, %v156_v25  ;;  %v334_v28 = vpop.f32.mrb[1].mxu0  ;;  %v342_v29 = vpop.f32.mrb[1].mxu1 }
 0x17f   :  { %v100_v30 = vpop.f32.mrb[2].mxu0  ;;  %v159_v31 = vpop.f32.mrb[2].mxu1 }
 0x180   :  { %v313_v32 = vpack.c.bf16 %v104_v26, %v104_v26  ;;  %239 = vst.msk [vmem:[#allocation4] sm:$0xf] %vm228_vm2, %v315_v27  ;;  %v105_v33 = vmul.f32 0.35355338, %v100_v30  ;;  %v316_v34 = vpack.c.bf16 %v159_v31, %v159_v31  ;;  %v335_v35 = vpop.f32.mrb[3].mxu0  ;;  %v343_v36 = vpop.f32.mrb[3].mxu1 }
 0x182   :  { %229 = vst.msk [vmem:[#allocation2] sm:$0xf] %vm228_vm2, %v313_v32  ;;  %v314_v37 = vpack.c.bf16 %v105_v33, %v105_v33  ;;  %240 = vst.msk [vmem:[#allocation4 + $0x4] sm:$0xf] %vm228_vm2, %v316_v34 }
 0x183   :  { %380 = shalt.err (!%p377_p4)
}
 0x184   :  { %s381_s16 = scalar_lea.hbm %s576_s5, 128 }
 0x185   :  { %p382_p5 = scmp.ne.s32.totalorder %s576_s5, %s381_s16  ;;  %p385_p6 = scmp.lt.u32.totalorder %s381_s16, %s576_s5 }
 0x187   :  { %p387_p7 = pnand %p385_p6, %p382_p5 }
 0x189   :  { %390 = shalt.err (!%p387_p7)
}
 0x18a   :  { %s443_s21 = smov 64   ;;  %s444_s22 = smov 4   ;;  %230 = vst.msk [vmem:[#allocation2 + $0x4] sm:$0xf] %vm228_vm2, %v314_v37  ;;  %v213_v38 = vpop.f32.mrb[4].mxu0 }
 0x18b   :  { %274 = dma.vmem_to_hbm [thread:$0]  %s269_s11, 128, %s576_s5, [#allocation5], %s443_s21, %s443_s21, %s444_s22  }
 0x18c   :  { %s445_s25 = smov [#allocation6]   ;;  %s391_s27 = scalar_lea.vmem %s516_s13, 128 }
 0x18d   :  { %s280_s26 = sshll.u32 %s445_s25, 4  ;;  %p392_p8 = scmp.ne.s32.totalorder %s516_s13, %s391_s27  ;;  %s281_s26 = int_to_ptr.vmem [resolvable:$true] %s280_s26 }
 0x18e   :  { %p396_p9 = scmp.lt.s32.totalorder %s516_s13, %s516_s13  ;;  %p397_p10 = scmp.lt.s32.totalorder %s391_s27, %s391_s27 }
 0x190   :  { %p398_p11 = por %p397_p10, %p396_p9 }
 0x192   :  { %p399_p12 = pnand %p398_p11, %p392_p8 }
 0x194   :  { %402 = shalt.err (!%p399_p12)
}
 0x195   :  { %s403_s29 = scalar_lea.hbm %s575_s4, 128 }
 0x196   :  { %p404_p13 = scmp.ne.s32.totalorder %s575_s4, %s403_s29  ;;  %p407_p0 = scmp.lt.u32.totalorder %s403_s29, %s575_s4 }
 0x198   :  { %p409_p1 = pnand %p407_p0, %p404_p13 }
 0x19a   :  { %412 = shalt.err (!%p409_p1)
}
 0x19b   :  { %262 = dma.vmem_to_hbm [thread:$0]  %s516_s13, 128, %s575_s4, [#allocation3], %s443_s21, %s443_s21, %s444_s22   ;;  %v317_v39 = vpack.c.bf16 %v213_v38, %v213_v38  ;;  %v350_v40 = vpop.f32.mrb[5].mxu0 }
 0x19c   :  { %v216_v41 = vpop.f32.mrb[6].mxu0  ;;  %s413_s9 = scalar_lea.vmem %s281_s26, 128  ;;  %p418_p3 = scmp.lt.s32.totalorder %s281_s26, %s281_s26 }
 0x19d   :  { %249 = vst.msk [vmem:[#allocation6] sm:$0xf] %vm228_vm2, %v317_v39  ;;  %v318_v42 = vpack.c.bf16 %v216_v41, %v216_v41  ;;  %v351_v43 = vpop.f32.mrb[7].mxu0  ;;  %p414_p2 = scmp.ne.s32.totalorder %s281_s26, %s413_s9  ;;  %p419_p4 = scmp.lt.s32.totalorder %s413_s9, %s413_s9 }
 0x19f   :  { %250 = vst.msk [vmem:[#allocation6 + $0x4] sm:$0xf] %vm228_vm2, %v318_v42  ;;  %p420_p5 = por %p419_p4, %p418_p3 }
 0x1a1   :  { %p421_p6 = pnand %p420_p5, %p414_p2 }
 0x1a3   :  { %424 = shalt.err (!%p421_p6)
}
 0x1a4   :  { %s425_s4 = scalar_lea.hbm %s577_s6, 128 }
 0x1a5   :  { %p426_p7 = scmp.ne.s32.totalorder %s577_s6, %s425_s4  ;;  %p429_p8 = scmp.lt.u32.totalorder %s425_s4, %s577_s6 }
 0x1a7   :  { %p431_p9 = pnand %p429_p8, %p426_p7 }
 0x1a9   :  { %434 = shalt.err (!%p431_p9)
}
 0x1aa   :  { %286 = dma.vmem_to_hbm [thread:$0]  %s281_s26, 128, %s577_s6, [#allocation5], %s443_s21, %s443_s21, %s444_s22  }
 0x1ab   :  { %435 = dma.done.wait [#allocation3], 128  }
 0x1ac   :  { %436 = vsyncadd [#allocation3], 4294967168 }
 0x1ad   :  { %437 = dma.done.wait [#allocation5], 256  }
 0x1ae   :  { %438 = vsyncadd [#allocation5], 4294967040 }
 0x1af   :  { %296 = vsyncpa [#allocation3], 1 }
 0x1b0   :  { %297 = vsyncpa [#allocation5], 1 }

// kernel: dyblock_forward.6
= control target key start
LH: loop header
LB: loop body
LE: loop exit
PB: predicated region body
PF: predicated region fallthrough
CT: control target
= control target key end

     0   :  { %15 = vsyncpa [#allocation3], 0  ;;  %s1116_s0 = inlined_call_operand.hbm [shape: f32[16,32], index: 0, kind: input, shape index: {}]   ;;  %s1117_s1 = inlined_call_operand.hbm [shape: bf16[32,32], index: 1, kind: input, shape index: {}]   ;;  %s1118_s2 = inlined_call_operand.hbm [shape: bf16[32,32], index: 2, kind: input, shape index: {}]   ;;  %s1119_s3 = inlined_call_operand.hbm [shape: f32[1,32], index: 3, kind: input, shape index: {}]   ;;  %s1120_s4 = inlined_call_operand.hbm [shape: f32[1,32], index: 4, kind: input, shape index: {}]   ;;  %s1121_s5 = inlined_call_operand.hbm [shape: bf16[32,32], index: 5, kind: input, shape index: {}]   ;;  %s1122_s6 = inlined_call_operand.hbm [shape: bf16[32,32], index: 6, kind: input, shape index: {}]   ;;  %s1123_s7 = inlined_call_operand.hbm [shape: f32[16,32], index: 7, kind: output, shape index: {0}]   ;;  %s1124_s8 = inlined_call_operand.hbm [shape: bf16[16,32], index: 8, kind: output, shape index: {1}]   ;;  %s1125_s9 = inlined_call_operand.hbm [shape: bf16[16,32], index: 9, kind: output, shape index: {2}]  }
   0x1   :  { %16 = vsyncpa [#allocation6], 0 }
   0x2   :  { %17 = vsyncpa [#allocation9], 0 }
   0x3   :  { %18 = vsyncpa [#allocation12], 0 }
   0x4   :  { %19 = vsyncpa [#allocation4], 0 }
   0x5   :  { %20 = vsyncpa [#allocation16], 0  ;;  %s855_s30 = smov [#allocation5]   ;;  %s623_s13 = scalar_lea.hbm %s1117_s1, 256 }
   0x6   :  { %s38_s10 = sshll.u32 %s855_s30, 4  ;;  %p624_p0 = scmp.ne.s32.totalorder %s1117_s1, %s623_s13  ;;  %s39_s10 = int_to_ptr.vmem [resolvable:$true] %s38_s10 }
   0x7   :  { %p627_p1 = scmp.lt.u32.totalorder %s623_s13, %s1117_s1 }
   0x9   :  { %p629_p2 = pnand %p627_p1, %p624_p0 }
   0xb   :  { %632 = shalt.err (!%p629_p2)
}
   0xc   :  { %s633_s18 = scalar_lea.vmem %s39_s10, 256  ;;  %p638_p4 = scmp.lt.s32.totalorder %s39_s10, %s39_s10 }
   0xd   :  { %p634_p3 = scmp.ne.s32.totalorder %s39_s10, %s633_s18  ;;  %p639_p5 = scmp.lt.s32.totalorder %s633_s18, %s633_s18 }
   0xf   :  { %p640_p6 = por %p639_p5, %p638_p4 }
  0x11   :  { %p641_p7 = pnand %p640_p6, %p634_p3 }
  0x13   :  { %644 = shalt.err (!%p641_p7)
}
  0x14   :  { %s856_s19 = smov 64   ;;  %s857_s20 = smov 4  }
  0x15   :  { %44 = dma.hbm_to_vmem [thread:$0]  %s1117_s1, 256, %s39_s10, [#allocation6], %s856_s19, %s856_s19, %s857_s20  }
  0x16   :  { %s858_s23 = smov [#allocation8]   ;;  %s859_s25 = smov [#allocation11]  }
  0x17   :  { %s63_s24 = sshll.u32 %s858_s23, 4  ;;  %s82_s26 = sshll.u32 %s859_s25, 4  ;;  %s64_s24 = int_to_ptr.vmem [resolvable:$true] %s63_s24  ;;  %s83_s26 = int_to_ptr.vmem [resolvable:$true] %s82_s26 }
  0x18   :  { %s645_s29 = scalar_lea.hbm %s1119_s3, 16 }
  0x19   :  { %p646_p8 = scmp.ne.s32.totalorder %s1119_s3, %s645_s29  ;;  %p649_p9 = scmp.lt.u32.totalorder %s645_s29, %s1119_s3 }
  0x1b   :  { %p651_p10 = pnand %p649_p9, %p646_p8 }
  0x1d   :  { %654 = shalt.err (!%p651_p10)
}
  0x1e   :  { %s655_s1 = scalar_lea.vmem %s64_s24, 16  ;;  %s659_s10 = scalar_lea.vmem %s64_s24, 32 }
  0x1f   :  { %p656_p11 = scmp.ne.s32.totalorder %s64_s24, %s655_s1  ;;  %p660_p12 = scmp.lt.s32.totalorder %s64_s24, %s64_s24 }
  0x20   :  { %p661_p13 = scmp.lt.s32.totalorder %s659_s10, %s655_s1 }
  0x22   :  { %p662_p0 = por %p661_p13, %p660_p12 }
  0x24   :  { %p663_p1 = pnand %p662_p0, %p656_p11 }
  0x26   :  { %666 = shalt.err (!%p663_p1)
}
  0x27   :  { %66 = dma.hbm_to_vmem [thread:$0]  %s1119_s3, 16, %s64_s24, [#allocation9]  }
  0x28   :  { %s667_s18 = scalar_lea.hbm %s1121_s5, 256 }
  0x29   :  { %p668_p2 = scmp.ne.s32.totalorder %s1121_s5, %s667_s18  ;;  %p671_p3 = scmp.lt.u32.totalorder %s667_s18, %s1121_s5 }
  0x2b   :  { %p673_p4 = pnand %p671_p3, %p668_p2 }
  0x2d   :  { %676 = shalt.err (!%p673_p4)
}
  0x2e   :  { %s677_s27 = scalar_lea.vmem %s83_s26, 256  ;;  %p682_p6 = scmp.lt.s32.totalorder %s83_s26, %s83_s26 }
  0x2f   :  { %p678_p5 = scmp.ne.s32.totalorder %s83_s26, %s677_s27  ;;  %p683_p7 = scmp.lt.s32.totalorder %s677_s27, %s677_s27 }
  0x31   :  { %p684_p8 = por %p683_p7, %p682_p6 }
  0x33   :  { %p685_p9 = pnand %p684_p8, %p678_p5 }
  0x35   :  { %688 = shalt.err (!%p685_p9)
}
  0x36   :  { %88 = dma.hbm_to_vmem [thread:$0]  %s1121_s5, 256, %s83_s26, [#allocation12], %s856_s19, %s856_s19, %s857_s20  }
  0x37   :  { %s860_s28 = smov [#allocation2]   ;;  %s689_s12 = scalar_lea.hbm %s1116_s0, 256 }
  0x38   :  { %s26_s29 = sshll.u32 %s860_s28, 4  ;;  %p690_p10 = scmp.ne.s32.totalorder %s1116_s0, %s689_s12  ;;  %s27_s29 = int_to_ptr.vmem [resolvable:$true] %s26_s29 }
  0x39   :  { %p693_p11 = scmp.lt.u32.totalorder %s689_s12, %s1116_s0 }
  0x3b   :  { %p695_p12 = pnand %p693_p11, %p690_p10 }
  0x3d   :  { %698 = shalt.err (!%p695_p12)
}
  0x3e   :  { %s699_s15 = scalar_lea.vmem %s27_s29, 256  ;;  %p704_p0 = scmp.lt.s32.totalorder %s27_s29, %s27_s29 }
  0x3f   :  { %p700_p13 = scmp.ne.s32.totalorder %s27_s29, %s699_s15  ;;  %p705_p1 = scmp.lt.s32.totalorder %s699_s15, %s699_s15 }
  0x41   :  { %p706_p2 = por %p705_p1, %p704_p0 }
  0x43   :  { %p707_p3 = pnand %p706_p2, %p700_p13 }
  0x45   :  { %710 = shalt.err (!%p707_p3)
}
  0x46   :  { %s861_s5 = smov 128   ;;  %s862_s26 = smov 8  }
  0x47   :  { %32 = dma.hbm_to_vmem [thread:$0]  %s1116_s0, 256, %s27_s29, [#allocation3], %s861_s5, %s861_s5, %s862_s26  }
  0x48   :  { %s863_s18 = smov [#allocation7]   ;;  %s864_s22 = smov [#allocation10]  }
  0x49   :  { %s50_s21 = sshll.u32 %s863_s18, 4  ;;  %s73_s23 = sshll.u32 %s864_s22, 4  ;;  %s51_s21 = int_to_ptr.vmem [resolvable:$true] %s50_s21  ;;  %s74_s23 = int_to_ptr.vmem [resolvable:$true] %s73_s23 }
  0x4a   :  { %s711_s3 = scalar_lea.hbm %s1118_s2, 256 }
  0x4b   :  { %p712_p4 = scmp.ne.s32.totalorder %s1118_s2, %s711_s3  ;;  %p715_p5 = scmp.lt.u32.totalorder %s711_s3, %s1118_s2 }
  0x4d   :  { %p717_p6 = pnand %p715_p5, %p712_p4 }
  0x4f   :  { %720 = shalt.err (!%p717_p6)
}
  0x50   :  { %s721_s0 = scalar_lea.vmem %s51_s21, 256  ;;  %p726_p8 = scmp.lt.s32.totalorder %s51_s21, %s51_s21 }
  0x51   :  { %p722_p7 = scmp.ne.s32.totalorder %s51_s21, %s721_s0  ;;  %p727_p9 = scmp.lt.s32.totalorder %s721_s0, %s721_s0 }
  0x53   :  { %p728_p10 = por %p727_p9, %p726_p8 }
  0x55   :  { %p729_p11 = pnand %p728_p10, %p722_p7 }
  0x57   :  { %732 = shalt.err (!%p729_p11)
}
  0x58   :  { %56 = dma.hbm_to_vmem [thread:$0]  %s1118_s2, 256, %s51_s21, [#allocation6], %s856_s19, %s856_s19, %s857_s20  }
  0x59   :  { %s733_s10 = scalar_lea.hbm %s1120_s4, 16 }
  0x5a   :  { %p734_p12 = scmp.ne.s32.totalorder %s1120_s4, %s733_s10  ;;  %p737_p13 = scmp.lt.u32.totalorder %s733_s10, %s1120_s4 }
  0x5c   :  { %p739_p0 = pnand %p737_p13, %p734_p12 }
  0x5e   :  { %742 = shalt.err (!%p739_p0)
}
  0x5f   :  { %s743_s18 = scalar_lea.vmem %s74_s23, 16  ;;  %s747_s22 = scalar_lea.vmem %s74_s23, 32 }
  0x60   :  { %p744_p1 = scmp.ne.s32.totalorder %s74_s23, %s743_s18  ;;  %p748_p2 = scmp.lt.s32.totalorder %s74_s23, %s74_s23 }
  0x61   :  { %p749_p3 = scmp.lt.s32.totalorder %s747_s22, %s743_s18 }
  0x63   :  { %p750_p4 = por %p749_p3, %p748_p2 }
  0x65   :  { %p751_p5 = pnand %p750_p4, %p744_p1 }
  0x67   :  { %754 = shalt.err (!%p751_p5)
}
  0x68   :  { %76 = dma.hbm_to_vmem [thread:$0]  %s1120_s4, 16, %s74_s23, [#allocation9]  }
  0x69   :  { %s865_s25 = smov [#allocation13]   ;;  %s755_s28 = scalar_lea.hbm %s1122_s6, 256 }
  0x6a   :  { %s94_s27 = sshll.u32 %s865_s25, 4  ;;  %p756_p6 = scmp.ne.s32.totalorder %s1122_s6, %s755_s28  ;;  %s95_s27 = int_to_ptr.vmem [resolvable:$true] %s94_s27 }
  0x6b   :  { %p759_p7 = scmp.lt.u32.totalorder %s755_s28, %s1122_s6 }
  0x6d   :  { %p761_p8 = pnand %p759_p7, %p756_p6 }
  0x6f   :  { %764 = shalt.err (!%p761_p8)
}
  0x70   :  { %s765_s12 = scalar_lea.vmem %s95_s27, 256  ;;  %p770_p10 = scmp.lt.s32.totalorder %s95_s27, %s95_s27 }
  0x71   :  { %p766_p9 = scmp.ne.s32.totalorder %s95_s27, %s765_s12  ;;  %p771_p11 = scmp.lt.s32.totalorder %s765_s12, %s765_s12 }
  0x73   :  { %p772_p12 = por %p771_p11, %p770_p10 }
  0x75   :  { %p773_p13 = pnand %p772_p12, %p766_p9 }
  0x77   :  { %776 = shalt.err (!%p773_p13)
}
  0x78   :  { %100 = dma.hbm_to_vmem [thread:$0]  %s1122_s6, 256, %s95_s27, [#allocation12], %s856_s19, %s856_s19, %s857_s20  }
  0x79   :  { %843 = dma.done.wait [#allocation3], 256  }
  0x7a   :  { %844 = vsyncadd [#allocation3], 4294967040 }
  0x7b   :  { %845 = dma.done.wait [#allocation6], 512  }
  0x7c   :  { %846 = vsyncadd [#allocation6], 4294966784 }
  0x7d   :  { %847 = dma.done.wait [#allocation9], 32  }
  0x7e   :  { %848 = vsyncadd [#allocation9], 4294967264 }
  0x7f   :  { %849 = dma.done.wait [#allocation12], 512  }
  0x80   :  { %850 = vsyncadd [#allocation12], 4294966784  ;;  %v1020_v0 = vld [vmem:[#allocation2] sm:$0xff]  ;;  %vm127_vm0 = vcmask 261120   ;;  %v1022_v1 = vld [vmem:[#allocation2 + $0x8] sm:$0xff]  ;;  %v866_v8 = vmov 0.0  }
  0x81   :  { %v125_v2 = vmul.f32 %v1020_v0, %v1020_v0  ;;  %v126_v3 = vmul.f32 %v1022_v1, %v1022_v1  ;;  %v599_v6 = vld [vmem:[#allocation5] sm:$0xff]   ;;  %v600_v7 = vld [vmem:[#allocation7] sm:$0xff]   ;;  %551 = vmatprep.subr.bf16.mxu0 %v866_v8  ;;  %559 = vmatprep.subr.bf16.mxu1 %v866_v8  ;;  %v601_v9 = vld [vmem:[#allocation5 + $0x8] sm:$0xff]   ;;  %vm867_vm1 = vmmov 0   ;;  %s868_s6 = smov [#allocation14]  }
  0x82   :  { %552 = vmatpush3.bf16.msra.mxu0 %v599_v6  ;;  %560 = vmatpush3.bf16.msra.mxu1 %v600_v7  ;;  %v602_v10 = vld [vmem:[#allocation7 + $0x8] sm:$0xff]   ;;  %v603_v56 = vld [vmem:[#allocation11] sm:$0xff]   ;;  %v605_v58 = vld [vmem:[#allocation11 + $0x8] sm:$0xff]   ;;  %s469_s13 = sshll.u32 %s868_s6, 4  ;;  %s470_s13 = int_to_ptr.vmem [resolvable:$true] %s469_s13 }
  0x83   :  { %v128_v4 = vsel %vm127_vm0, %v125_v2, 0.0  ;;  %v131_v5 = vsel %vm127_vm0, %v126_v3, 0.0  ;;  %553 = vmatprep.subr.bf16.mxu0 %v866_v8  ;;  %561 = vmatprep.subr.bf16.mxu1 %v866_v8  ;;  %v604_v57 = vld [vmem:[#allocation13] sm:$0xff]   ;;  %v606_v59 = vld [vmem:[#allocation13 + $0x8] sm:$0xff]   ;;  %s777_s1 = scalar_lea.vmem %s470_s13, 256  ;;  %p782_p1 = scmp.lt.s32.totalorder %s470_s13, %s470_s13 }
  0x84   :  { %129 = vadd.xlane.f32.xlu0 %v128_v4  ;;  %555 = vmatprep.mubr.msk.bf16.mxu0 %vm867_vm1, %v866_v8  ;;  %v523_v4 = vld [vmem:[#allocation8] ss:$0 sm:$0xff]  ;;  %p778_p0 = scmp.ne.s32.totalorder %s470_s13, %s777_s1  ;;  %p783_p2 = scmp.lt.s32.totalorder %s777_s1, %s777_s1 }
  0x85   :  { %563 = vmatprep.mubr.msk.bf16.mxu1 %vm867_vm1, %v866_v8 }
  0x86   :  { %554 = vmatpush3.bf16.msra.mxu0 %v601_v9  ;;  %562 = vmatpush3.bf16.msra.mxu1 %v602_v10  ;;  %v524_v9 = vld [vmem:[#allocation10] ss:$0 sm:$0xff]  ;;  %p784_p3 = por %p783_p2, %p782_p1 }
  0x87   :  { %567 = vmatprep.subr.bf16.mxu0 %v866_v8  ;;  %575 = vmatprep.subr.bf16.mxu1 %v866_v8 }
  0x88   :  { %132 = vadd.xlane.f32.xlu0 %v131_v5  ;;  %p785_p4 = pnand %p784_p3, %p778_p0 }
 0x111   :  { %v130_v11 = vpop.xlane.xlu0 %129 }
 0x112   :  { %v135_v12 = vmul.f32 0.03125, %v130_v11 }
 0x114   :  { %v137_v13 = vadd.f32 1e-05, %v135_v12 }
 0x115   :  { %v133_v14 = vpop.xlane.xlu0 %132 }
 0x116   :  { %v136_v15 = vmul.f32 0.03125, %v133_v14  ;;  %607 = vrsqrt.f32 %v137_v13 }
 0x118   :  { %v138_v16 = vadd.f32 1e-05, %v136_v15 }
 0x11a   :  { %609 = vrsqrt.f32 %v138_v16 }
 0x120   :  { %v608_v17 = vpop.eup %607 }
 0x121   :  { %v141_v19 = vmul.f32 %v608_v17, %v1020_v0 }
 0x124   :  { %v610_v18 = vpop.eup %609 }
 0x125   :  { %v142_v20 = vmul.f32 %v610_v18, %v1022_v1 }
 0x127   :  { %v143_v21 = vpack.c.bf16 %v142_v20, %v141_v19 }
 0x129   :  { %556 = vmatmul.mubr.msk.bf16.vlgmr.msra.gmra.mrb[0].mxu0 %vm127_vm0, %v143_v21  ;;  %564 = vmatmul.mubr.msk.bf16.vlgmr.msra.gmra.mrb[0].mxu1 %vm127_vm0, %v143_v21 }
 0x12a   :  { %571 = vmatprep.mubr.msk.bf16.mxu0 %vm867_vm1, %v866_v8  ;;  %579 = vmatprep.mubr.msk.bf16.mxu1 %vm867_vm1, %v866_v8 }
 0x12b   :  { %568 = vmatpush3.bf16.msra.mxu0 %v603_v56  ;;  %576 = vmatpush3.bf16.msra.mxu1 %v604_v57 }
 0x12c   :  { %569 = vmatprep.subr.bf16.mxu0 %v866_v8  ;;  %577 = vmatprep.subr.bf16.mxu1 %v866_v8 }
 0x12f   :  { %570 = vmatpush3.bf16.msra.mxu0 %v605_v58  ;;  %578 = vmatpush3.bf16.msra.mxu1 %v606_v59 }
 0x1fc   :  { %v197_v22 = vpop.f32.mrb[0].mxu0  ;;  %v254_v23 = vpop.f32.mrb[0].mxu1 }
 0x1fd   :  { %v521_v24 = vmul.f32 -1.442695, %v254_v23  ;;  %v557_v25 = vpop.f32.mrb[1].mxu0  ;;  %v565_v26 = vpop.f32.mrb[1].mxu1 }
 0x1fe   :  { %v200_v27 = vpop.f32.mrb[2].mxu0  ;;  %v257_v28 = vpop.f32.mrb[2].mxu1 }
 0x1ff   :  { %611 = vpow2.f32 %v521_v24  ;;  %v522_v29 = vmul.f32 -1.442695, %v257_v28  ;;  %v558_v30 = vpop.f32.mrb[3].mxu0  ;;  %v566_v31 = vpop.f32.mrb[3].mxu1 }
 0x201   :  { %613 = vpow2.f32 %v522_v29 }
 0x209   :  { %v612_v32 = vpop.eup %611 }
 0x20a   :  { %v267_v33 = vadd.f32 1.0, %v612_v32 }
 0x20b   :  { %v614_v34 = vpop.eup %613 }
 0x20c   :  { %615 = vrcp.f32 %v267_v33  ;;  %v268_v35 = vadd.f32 1.0, %v614_v34 }
 0x20e   :  { %617 = vrcp.f32 %v268_v35 }
 0x216   :  { %v616_v36 = vpop.eup %615 }
 0x217   :  { %v273_v37 = vmul.f32 %v616_v36, %v254_v23 }
 0x218   :  { %v618_v38 = vpop.eup %617 }
 0x219   :  { %v275_v39 = vmul.f32 %v273_v37, %v197_v22  ;;  %v274_v40 = vmul.f32 %v618_v38, %v257_v28 }
 0x21b   :  { %v276_v41 = vmul.f32 %v274_v40, %v200_v27  ;;  %v277_v42 = vadd.f32 %v275_v39, %v1020_v0 }
 0x21d   :  { %v281_v43 = vsel %vm127_vm0, %v277_v42, 0.0  ;;  %279 = vst.msk [vmem:[#allocation14] sm:$0xff] %vm127_vm0, %v277_v42  ;;  %v278_v44 = vadd.f32 %v276_v41, %v1022_v1 }
 0x21e   :  { %282 = vadd.xlane.f32.xlu1 %v281_v43 }
 0x21f   :  { %280 = vst.msk [vmem:[#allocation14 + $0x8] sm:$0xff] %vm127_vm0, %v278_v44  ;;  %v284_v45 = vsel %vm127_vm0, %v278_v44, 0.0 }
 0x222   :  { %285 = vadd.xlane.f32.xlu1 %v284_v45 }
 0x2ab   :  { %v283_v46 = vpop.xlane.xlu1 %282 }
 0x2ac   :  { %v287_v47 = vmul.f32 0.03125, %v283_v46 }
 0x2ae   :  { %v289_v48 = vsub.f32 %v277_v42, %v287_v47 }
 0x2af   :  { %v286_v49 = vpop.xlane.xlu1 %285 }
 0x2b0   :  { %v288_v50 = vmul.f32 0.03125, %v286_v49  ;;  %v291_v51 = vmul.f32 %v289_v48, %v289_v48 }
 0x2b2   :  { %v290_v52 = vsub.f32 %v278_v44, %v288_v50  ;;  %v293_v53 = vsel %vm127_vm0, %v291_v51, 0.0 }
 0x2b3   :  { %294 = vadd.xlane.f32.xlu0 %v293_v53 }
 0x2b4   :  { %v292_v54 = vmul.f32 %v290_v52, %v290_v52 }
 0x2b6   :  { %v296_v55 = vsel %vm127_vm0, %v292_v54, 0.0 }
 0x2b7   :  { %297 = vadd.xlane.f32.xlu1 %v296_v55 }
 0x340   :  { %v295_v60 = vpop.xlane.xlu0 %294 }
 0x341   :  { %v299_v61 = vmul.f32 0.03125, %v295_v60 }
 0x343   :  { %v301_v62 = vadd.f32 1e-05, %v299_v61 }
 0x344   :  { %v298_v63 = vpop.xlane.xlu1 %297 }
 0x345   :  { %619 = vrsqrt.f32 %v301_v62  ;;  %v300_v0 = vmul.f32 0.03125, %v298_v63 }
 0x347   :  { %v302_v1 = vadd.f32 1e-05, %v300_v0 }
 0x349   :  { %621 = vrsqrt.f32 %v302_v1 }
 0x34f   :  { %v620_v2 = vpop.eup %619 }
 0x350   :  { %v305_v3 = vmul.f32 %v620_v2, %v289_v48 }
 0x352   :  { %v314_v6 = vmul.f32 %v523_v4, %v305_v3 }
 0x353   :  { %v622_v5 = vpop.eup %621 }
 0x354   :  { %v306_v7 = vmul.f32 %v622_v5, %v290_v52  ;;  %v323_v8 = vadd.f32 %v524_v9, %v314_v6 }
 0x356   :  { %v315_v10 = vmul.f32 %v523_v4, %v306_v7 }
 0x358   :  { %v324_v11 = vadd.f32 %v524_v9, %v315_v10 }
 0x35a   :  { %v325_v12 = vpack.c.bf16 %v324_v11, %v323_v8 }
 0x35c   :  { %572 = vmatmul.mubr.msk.bf16.vlgmr.msra.gmra.mrb[4].mxu0 %vm127_vm0, %v325_v12  ;;  %580 = vmatmul.mubr.msk.bf16.vlgmr.msra.gmra.mrb[4].mxu1 %vm127_vm0, %v325_v12 }
 0x35d   :  { %788 = shalt.err (!%p785_p4)
}
 0x35e   :  { %s789_s15 = scalar_lea.hbm %s1123_s7, 256 }
 0x35f   :  { %p790_p5 = scmp.ne.s32.totalorder %s1123_s7, %s789_s15  ;;  %p793_p6 = scmp.lt.u32.totalorder %s789_s15, %s1123_s7 }
 0x361   :  { %p795_p7 = pnand %p793_p6, %p790_p5 }
 0x363   :  { %798 = shalt.err (!%p795_p7)
}
 0x364   :  { %475 = dma.vmem_to_hbm [thread:$0]  %s470_s13, 256, %s1123_s7, [#allocation4], %s861_s5, %s861_s5, %s862_s26   ;;  %vm394_vm2 = vcmask 257024  }
 0x365   :  { %s869_s25 = smov [#allocation15]   ;;  %s870_s3 = smov [#allocation17]  }
 0x366   :  { %s481_s27 = sshll.u32 %s869_s25, 4  ;;  %s493_s24 = sshll.u32 %s870_s3, 4  ;;  %s482_s27 = int_to_ptr.vmem [resolvable:$true] %s481_s27  ;;  %s1077_s24 = int_to_ptr.vmem [resolvable:$true] %s493_s24 }
 0x367   :  { %s799_s7 = scalar_lea.vmem %s482_s27, 128  ;;  %p804_p9 = scmp.lt.s32.totalorder %s482_s27, %s482_s27 }
 0x368   :  { %p800_p8 = scmp.ne.s32.totalorder %s482_s27, %s799_s7  ;;  %p805_p10 = scmp.lt.s32.totalorder %s799_s7, %s799_s7 }
 0x36a   :  { %p806_p11 = por %p805_p10, %p804_p9 }
 0x36c   :  { %p807_p12 = pnand %p806_p11, %p800_p8 }
 0x42f   :  { %v379_v13 = vpop.f32.mrb[4].mxu0  ;;  %v447_v14 = vpop.f32.mrb[4].mxu1 }
 0x430   :  { %v535_v15 = vpack.c.bf16 %v379_v13, %v379_v13  ;;  %v537_v16 = vpack.c.bf16 %v447_v14, %v447_v14  ;;  %v573_v17 = vpop.f32.mrb[5].mxu0  ;;  %v581_v18 = vpop.f32.mrb[5].mxu1 }
 0x431   :  { %v382_v19 = vpop.f32.mrb[6].mxu0  ;;  %v450_v20 = vpop.f32.mrb[6].mxu1 }
 0x432   :  { %462 = vst.msk [vmem:[#allocation17] sm:$0xf] %vm394_vm2, %v537_v16  ;;  %395 = vst.msk [vmem:[#allocation15] sm:$0xf] %vm394_vm2, %v535_v15  ;;  %v536_v21 = vpack.c.bf16 %v382_v19, %v382_v19  ;;  %v538_v22 = vpack.c.bf16 %v450_v20, %v450_v20  ;;  %v574_v23 = vpop.f32.mrb[7].mxu0  ;;  %v582_v24 = vpop.f32.mrb[7].mxu1 }
 0x434   :  { %396 = vst.msk [vmem:[#allocation15 + $0x4] sm:$0xf] %vm394_vm2, %v536_v21  ;;  %463 = vst.msk [vmem:[#allocation17 + $0x4] sm:$0xf] %vm394_vm2, %v538_v22 }
 0x435   :  { %810 = shalt.err (!%p807_p12)
}
 0x436   :  { %s811_s28 = scalar_lea.hbm %s1124_s8, 128 }
 0x437   :  { %p812_p13 = scmp.ne.s32.totalorder %s1124_s8, %s811_s28  ;;  %p815_p0 = scmp.lt.u32.totalorder %s811_s28, %s1124_s8 }
 0x439   :  { %p817_p1 = pnand %p815_p0, %p812_p13 }
 0x43b   :  { %820 = shalt.err (!%p817_p1)
}
 0x43c   :  { %487 = dma.vmem_to_hbm [thread:$0]  %s482_s27, 128, %s1124_s8, [#allocation16], %s856_s19, %s856_s19, %s857_s20  }
 0x43d   :  { %s821_s23 = scalar_lea.vmem %s1077_s24, 128  ;;  %p826_p3 = scmp.lt.s32.totalorder %s1077_s24, %s1077_s24 }
 0x43e   :  { %p822_p2 = scmp.ne.s32.totalorder %s1077_s24, %s821_s23  ;;  %p827_p4 = scmp.lt.s32.totalorder %s821_s23, %s821_s23 }
 0x440   :  { %p828_p5 = por %p827_p4, %p826_p3 }
 0x442   :  { %p829_p6 = pnand %p828_p5, %p822_p2 }
 0x444   :  { %832 = shalt.err (!%p829_p6)
}
 0x445   :  { %s833_s1 = scalar_lea.hbm %s1125_s9, 128 }
 0x446   :  { %p834_p7 = scmp.ne.s32.totalorder %s1125_s9, %s833_s1  ;;  %p837_p8 = scmp.lt.u32.totalorder %s833_s1, %s1125_s9 }
 0x448   :  { %p839_p9 = pnand %p837_p8, %p834_p7 }
 0x44a   :  { %842 = shalt.err (!%p839_p9)
}
 0x44b   :  { %499 = dma.vmem_to_hbm [thread:$0]  %s1077_s24, 128, %s1125_s9, [#allocation16], %s856_s19, %s856_s19, %s857_s20  }
 0x44c   :  { %851 = dma.done.wait [#allocation4], 256  }
 0x44d   :  { %852 = vsyncadd [#allocation4], 4294967040 }
 0x44e   :  { %853 = dma.done.wait [#allocation16], 256  }
 0x44f   :  { %854 = vsyncadd [#allocation16], 4294967040 }
 0x450   :  { %509 = vsyncpa [#allocation3], 1 }
 0x451   :  { %510 = vsyncpa [#allocation6], 1 }
 0x452   :  { %511 = vsyncpa [#allocation9], 1 }
 0x453   :  { %512 = vsyncpa [#allocation12], 1 }
 0x454   :  { %513 = vsyncpa [#allocation4], 1 }
 0x455   :  { %514 = vsyncpa [#allocation16], 1 }

// kernel: dyblock_forward.5
= control target key start
LH: loop header
LB: loop body
LE: loop exit
PB: predicated region body
PF: predicated region fallthrough
CT: control target
= control target key end

     0   :  { %s2647_s0 = inlined_call_operand.<no memory space> [shape: f32[1], index: 0, kind: input, shape index: {}]   ;;  %s2648_s1 = inlined_call_operand.hbm [shape: bf16[2,8,32], index: 1, kind: input, shape index: {}]   ;;  %s2649_s2 = inlined_call_operand.hbm [shape: bf16[2,8,32], index: 2, kind: input, shape index: {}]   ;;  %s2650_s3 = inlined_call_operand.hbm [shape: bf16[2,8,32], index: 3, kind: input, shape index: {}]   ;;  %s2651_s4 = inlined_call_operand.hbm [shape: f32[2,4,8,8], index: 4, kind: input, shape index: {}]   ;;  %s2652_s5 = inlined_call_operand.hbm [shape: f32[2,8,32], index: 5, kind: input, shape index: {}]   ;;  %s2653_s6 = inlined_call_operand.hbm [shape: bf16[32,32], index: 6, kind: input, shape index: {}]   ;;  %s2654_s7 = inlined_call_operand.hbm [shape: f32[1,16], index: 7, kind: input, shape index: {}]   ;;  %s2655_s8 = inlined_call_operand.hbm [shape: f32[2,8,32], index: 8, kind: output, shape index: {}]  }
   0x1   :  { %2677 = sst [smem:[#allocation31_spill]] %s2649_s2 }
   0x2   :  { %2678 = sst [smem:[#allocation32_spill]] %s2651_s4 }
   0x3   :  { %2679 = sst [smem:[#allocation33_spill]] %s2653_s6 }
   0x4   :  { %2680 = sst [smem:[#allocation34_spill]] %s2655_s8 }
   0x5   :  { %13 = sst [smem:[#allocation5]] %s2647_s0 }
   0x6   :  { %14 = vsyncpa [#allocation7], 0 }
   0x7   :  { %16 = vsyncpa [#allocation7 + $0x1], 0 }
   0x8   :  { %17 = vsyncpa [#allocation10], 0 }
   0x9   :  { %19 = vsyncpa [#allocation10 + $0x1], 0 }
   0xa   :  { %20 = vsyncpa [#allocation13], 0 }
   0xb   :  { %22 = vsyncpa [#allocation13 + $0x1], 0 }
   0xc   :  { %23 = vsyncpa [#allocation16], 0 }
   0xd   :  { %24 = vsyncpa [#allocation8], 0 }
   0xe   :  { %26 = vsyncpa [#allocation8 + $0x1], 0  ;;  %s2105_s29 = smov 0   ;;  %s2107_s30 = smov 0  }
   0xf   :  { %s2109_s9 = smov 0   ;;  %s2111_s10 = smov 0  }
  0x10   :  { %s2113_s11 = smov 0   ;;  %s2115_s0 = smov 0  }
  0x11 LB: > { %2681 = sst [smem:[#allocation24_spill]] %s2015_s29  ;;  %s2136_s12 = sadd.s32 4294967295, %s2035_s0   ;;  %s2035_s0 = sphi %s2115_s0, %s32_s0   ;;  %s2031_s11 = sphi %s2113_s11, %s2727_s11   ;;  %s2027_s10 = sphi %s2111_s10, %s2726_s10   ;;  %s2023_s9 = sphi %s2109_s9, %s2722_s9   ;;  %s2019_s30 = sphi %s2107_s30, %s2725_s30   ;;  %s2015_s29 = sphi %s2105_s29, %s2724_s29  }
  0x12   : > { %2682 = sst [smem:[#allocation25_spill]] %s2023_s9  ;;  %s1464_s13 = sadd.s32 4294967294, %s2035_s0  }
  0x13   : > { %2683 = sst [smem:[#allocation26_spill]] %s2035_s0  ;;  %p94_p0 = scmp.ne.s32.totalorder %s2019_s30, %s2015_s29 }
  0x14   : > { %p2656_p1 = scmp.eq.s32.totalorder %s2136_s12, 0  ;;  %p282_p3 = scmp.eq.s32.totalorder %s1464_s13, 1 }
  0x15   : > { %p1465_p5 = scmp.ge.s32.totalorder %s2035_s0, 1  ;;  %p289_p7 = scmp.lt.s32.totalorder %s2035_s0, 3 }
  0x16   : > { %p2145_p4 = por %p2656_p1, %p94_p0  ;;  %p2150_p6 = por %p282_p3, %p94_p0 }
  0x17   : > { %p2155_p8 = pnand %p1465_p5, %p289_p7  ;;  %s2037_s17 = smov [#allocation15]  }
  0x18   : > { %s2684_s14 = scalar_select %p2145_p4, 1, 0 }
  0x19   : > { %s2685_s15 = scalar_select %p2150_p6, 1, 0 }
  0x1a   : > { %s2687_s16 = scalar_select %p2155_p8, 1, 0 }
  0x1b   : > { %2686 = sst [smem:[#allocation27_spill]] %s2685_s15  ;;  %s304_s18 = sshll.u32 %s2037_s17, 4  ;;  %s305_s18 = int_to_ptr.vmem [resolvable:$true] %s304_s18 }
  0x1c   : > { %p1604_p9 = pneg %p2155_p8  ;;  %s51_s20 = sadd.s32 1, %s2031_s11 }
  0x1d   : > { %s2689_s6 = sld [smem:[#allocation33_spill]] }
  0x1e   : > { %p2164_p11 = pnand %p1604_p9, %p2656_p1 }
  0x20   : > { %s2688_s19 = scalar_select %p2164_p11, 1, 0 }
  0x21   : > { %p2664_p13 = pneg %p2164_p11 }
  0x23   : > { %s1735_s23 = scalar_lea.hbm %s2689_s6, 256 }
  0x24   : > { %p1736_p12 = scmp.ne.s32.totalorder %s2689_s6, %s1735_s23  ;;  %p1742_p5 = scmp.lt.u32.totalorder %s1735_s23, %s2689_s6 }
  0x26   : > { %p1738_p0 = pnand %p2664_p13, %p1736_p12 }
  0x28   : > { %p1739_p3 = pneg %p1738_p0 }
  0x2a   : > { %p1744_p7 = pnand %p1742_p5, %p1739_p3 }
  0x2c   : > { %1747 = shalt.err (!%p1744_p7)
}
  0x2d   : > { %s1748_s28 = scalar_lea.vmem %s305_s18, 256  ;;  %p1756_p2 = scmp.lt.s32.totalorder %s305_s18, %s305_s18 }
  0x2e   : > { %p1749_p9 = scmp.ne.s32.totalorder %s305_s18, %s1748_s28  ;;  %p1757_p6 = scmp.lt.s32.totalorder %s1748_s28, %s1748_s28 }
  0x30   : > { %p1751_p10 = pnand %p1749_p9, %p2664_p13  ;;  %p1758_p4 = por %p1757_p6, %p1756_p2 }
  0x32   : > { %p1752_p1 = pneg %p1751_p10 }
  0x34   : > { %p1759_p8 = pnand %p1758_p4, %p1752_p1 }
  0x36   : > { %1762 = shalt.err (!%p1759_p8)
}
  0x37   : > { %s2038_s13 = smov 64   ;;  %s2039_s17 = smov 4  }
  0x38   : > { %1607 = dma.hbm_to_vmem [thread:$0]  (!%p2164_p11), %s2689_s6, 256, %s305_s18, [#allocation16], %s2038_s13, %s2038_s13, %s2039_s17  }
  0x39   : > { %p53_p1 = scmp.ge.s32.totalorder %s51_s20, 2  ;;  %s81_s23 = sadd.s32 1, %s2023_s9 }
  0x3a   : > { %p88_p2 = scmp.ne.s32.totalorder %s2023_s9, %s2019_s30  ;;  %p89_p4 = scmp.eq.s32.totalorder %s2035_s0, 0 }
  0x3b   : > { %s2729_s20 = smov (%p53_p1, %s51_s20), 0  ;;  %p2691_p8 = scmp.eq.s32.totalorder %s2136_s12, 1 }
  0x3c   : > { %2690 = sst [smem:[#allocation28_spill]] %s2729_s20  ;;  %p90_p6 = por %p89_p4, %p88_p2 }
  0x3d   : > { %p2199_p10 = por %p2691_p8, %p88_p2  ;;  %s76_s25 = ssub.s32 %s2031_s11, %s2729_s20 }
  0x3e   : > { %p1633_p12 = scmp.lt.s32.totalorder %s2035_s0, 2  ;;  %p79_p0 = scmp.eq.s32.totalorder %s76_s25, 0 }
  0x3f   : > { %s2692_s24 = scalar_select %p2199_p10, 1, 0 }
  0x40   : > { %s2207_s26 = sand.u32 1, %s2023_s9   ;;  %s2213_s27 = sshll.u32 %s2031_s11, 6 }
  0x41   : > { %2693 = sst [smem:[#allocation29_spill]] %s2692_s24  ;;  %s2210_s18 = sshll.u32 %s2207_s26, 2 }
  0x42   : > { %s2216_s28 = scalar_select %p79_p0, %s2023_s9, %s81_s23  }
  0x43   : > { %p2218_p3 = pnand %p1633_p12, %p90_p6  ;;  %s2663_s17 = sand.u32 1, %s2035_s0  }
  0x44   : > { %2694 = sst [smem:[#allocation30_spill]] %s2216_s28  ;;  %s2696_s2 = sld [smem:[#allocation31_spill]] }
  0x45   : > { %s2695_s13 = scalar_select %p2218_p3, 1, 0 }
  0x46   : > { %s352_s6 = scalar_lea.vmem [#allocation9], %s2210_s18  ;;  %s2235_s28 = scalar_lea.sflag [#allocation10], %s2663_s17 }
  0x47   : > { %s360_s20 = sshll.u32 %s352_s6, 4  ;;  %p2241_p7 = pneg %p2218_p3  ;;  %s2230_s20 = int_to_ptr.vmem [resolvable:$true] %s360_s20 }
  0x49   : > { %s2697_s15 = scalar_select %p2241_p7, 1, 0 }
  0x4a   : > { %s2227_s25 = scalar_lea.hbm %s2696_s2, %s2213_s27  ;;  %s1768_s6 = scalar_lea.hbm %s2696_s2, 128 }
  0x4b   : > { %s1763_s9 = scalar_lea.hbm %s2227_s25, 64  ;;  %p1769_p2 = scmp.lt.u32.totalorder %s2227_s25, %s2696_s2 }
  0x4c   : > { %p1764_p5 = scmp.ne.s32.totalorder %s2227_s25, %s1763_s9  ;;  %p1770_p4 = scmp.lt.u32.totalorder %s1768_s6, %s1763_s9 }
  0x4d   : > { %p1772_p8 = scmp.lt.u32.totalorder %s1763_s9, %s2227_s25 }
  0x4e   : > { %p1766_p9 = pnand %p2241_p7, %p1764_p5  ;;  %p1771_p6 = por %p1770_p4, %p1769_p2 }
  0x50   : > { %p1767_p1 = pneg %p1766_p9  ;;  %p1773_p12 = por %p1772_p8, %p1771_p6 }
  0x52   : > { %p1774_p0 = pnand %p1773_p12, %p1767_p1 }
  0x54   : > { %1777 = shalt.err (!%p1774_p0)
}
  0x55   : > { %s1778_s17 = scalar_lea.vmem %s2230_s20, 64  ;;  %s2040_s21 = smov [#allocation9]  }
  0x56   : > { %p1779_p5 = scmp.ne.s32.totalorder %s2230_s20, %s1778_s17  ;;  %s1783_s22 = sshll.u32 %s2040_s21, 4  ;;  %s1784_s22 = int_to_ptr.vmem [resolvable:$false] %s1783_s22 }
  0x57   : > { %s1785_s29 = scalar_lea.vmem %s1784_s22, 128  ;;  %p1786_p10 = scmp.lt.s32.totalorder %s2230_s20, %s1784_s22 }
  0x58   : > { %p1781_p9 = pnand %p1779_p5, %p2241_p7  ;;  %p1787_p11 = scmp.lt.s32.totalorder %s1785_s29, %s1778_s17 }
  0x5a   : > { %p1782_p13 = pneg %p1781_p9  ;;  %p1788_p2 = por %p1787_p11, %p1786_p10 }
  0x5c   : > { %p1789_p4 = pnand %p1788_p2, %p1782_p13 }
  0x5e   : > { %1792 = shalt.err (!%p1789_p4)
}
  0x5f   : > { %1617 = dma.hbm_to_vmem [thread:$0]  (!%p2218_p3), %s2227_s25, 64, %s2230_s20, %s2235_s28  }
  0x60   : > { %s1508_s9 = sshll.u32 %s2031_s11, 9  ;;  %s2698_s4 = sld [smem:[#allocation32_spill]] }
  0x61   : > { %s2699_s17 = sshll.u32 %s2207_s26, 5  ;;  %s2700_s2 = sand.u32 1, %s2035_s0  }
  0x62   : > { %s390_s22 = scalar_lea.vmem [#allocation12], %s2699_s17  ;;  %s2277_s8 = scalar_lea.sflag [#allocation13], %s2700_s2 }
  0x63   : > { %s399_s29 = sshll.u32 %s390_s22, 4  ;;  %s2273_s29 = int_to_ptr.vmem [resolvable:$true] %s399_s29 }
  0x66   : > { %s2269_s21 = scalar_lea.hbm %s2698_s4, %s1508_s9  ;;  %s1798_s9 = scalar_lea.hbm %s2698_s4, 1024 }
  0x67   : > { %s1793_s24 = scalar_lea.hbm %s2269_s21, 512  ;;  %p1799_p1 = scmp.lt.u32.totalorder %s2269_s21, %s2698_s4 }
  0x68   : > { %p1794_p11 = scmp.ne.s32.totalorder %s2269_s21, %s1793_s24  ;;  %p1800_p6 = scmp.lt.u32.totalorder %s1798_s9, %s1793_s24 }
  0x69   : > { %p1802_p12 = scmp.lt.u32.totalorder %s1793_s24, %s2269_s21 }
  0x6a   : > { %p1796_p13 = pnand %p1794_p11, %p2241_p7  ;;  %p1801_p8 = por %p1800_p6, %p1799_p1 }
  0x6c   : > { %p1797_p10 = pneg %p1796_p13  ;;  %p1803_p0 = por %p1802_p12, %p1801_p8 }
  0x6e   : > { %p1804_p5 = pnand %p1803_p0, %p1797_p10 }
  0x70   : > { %1807 = shalt.err (!%p1804_p5)
}
  0x71   : > { %s1808_s2 = scalar_lea.vmem %s2273_s29, 512  ;;  %s2041_s17 = smov [#allocation12]  }
  0x72   : > { %p1809_p9 = scmp.ne.s32.totalorder %s2273_s29, %s1808_s2  ;;  %s1813_s22 = sshll.u32 %s2041_s17, 4  ;;  %s1814_s22 = int_to_ptr.vmem [resolvable:$false] %s1813_s22 }
  0x73   : > { %s1815_s20 = scalar_lea.vmem %s1814_s22, 1024  ;;  %p1816_p11 = scmp.lt.s32.totalorder %s2273_s29, %s1814_s22 }
  0x74   : > { %p1811_p2 = pnand %p1809_p9, %p2241_p7  ;;  %p1817_p13 = scmp.lt.s32.totalorder %s1815_s20, %s1808_s2 }
  0x76   : > { %p1812_p4 = pneg %p1811_p2  ;;  %p1818_p1 = por %p1817_p13, %p1816_p11 }
  0x78   : > { %p1819_p6 = pnand %p1818_p1, %p1812_p4 }
  0x7a   : > { %1822 = shalt.err (!%p1819_p6)
}
  0x7b   : > { %s2042_s24 = smov 128   ;;  %s2043_s25 = smov 8  }
  0x7c   : > { %1623 = dma.hbm_to_vmem [thread:$0]  (!%p2218_p3), %s2269_s21, 512, %s2273_s29, %s2277_s8, %s2042_s24, %s2042_s24, %s2043_s25  }
  0x7d   : > { %s2044_s9 = smov [#allocation17]   ;;  %s1823_s22 = scalar_lea.hbm %s2654_s7, 16 }
  0x7e   : > { %s318_s23 = sshll.u32 %s2044_s9, 4  ;;  %p1824_p10 = scmp.ne.s32.totalorder %s2654_s7, %s1823_s22  ;;  %s319_s23 = int_to_ptr.vmem [resolvable:$true] %s318_s23 }
  0x7f   : > { %p2701_p8 = scmp.ne.s32.totalorder %s2688_s19, 0  ;;  %p1830_p9 = scmp.lt.u32.totalorder %s1823_s22, %s2654_s7 }
  0x81   : > { %p2702_p12 = pneg %p2701_p8 }
  0x83   : > { %p1826_p0 = pnand %p1824_p10, %p2702_p12 }
  0x85   : > { %p1827_p5 = pneg %p1826_p0 }
  0x87   : > { %p1832_p2 = pnand %p1830_p9, %p1827_p5 }
  0x89   : > { %1835 = shalt.err (!%p1832_p2)
}
  0x8a   : > { %s1836_s21 = scalar_lea.vmem %s319_s23, 16  ;;  %p2703_p11 = pmov %p2702_p12 }
  0x8b   : > { %p1837_p4 = scmp.ne.s32.totalorder %s319_s23, %s1836_s21  ;;  %s1843_s29 = scalar_lea.vmem %s319_s23, 32 }
  0x8c   : > { %p1844_p6 = scmp.lt.s32.totalorder %s319_s23, %s319_s23  ;;  %p1845_p3 = scmp.lt.s32.totalorder %s1843_s29, %s1836_s21 }
  0x8d   : > { %p1839_p13 = pnand %p1837_p4, %p2703_p11 }
  0x8e   : > { %p1846_p7 = por %p1845_p3, %p1844_p6 }
  0x8f   : > { %p1840_p1 = pneg %p1839_p13 }
  0x91   : > { %p1847_p10 = pnand %p1846_p7, %p1840_p1 }
  0x93   : > { %1850 = shalt.err (!%p1847_p10)
}
  0x94   : > { %1610 = dma.hbm_to_vmem [thread:$0]  (!%p2701_p8), %s2654_s7, 16, %s319_s23, [#allocation16]  }
  0x95   : > { %s2325_s9 = scalar_lea.hbm %s2648_s1, %s2213_s27  ;;  %s333_s6 = scalar_lea.vmem [#allocation6], %s2210_s18 }
  0x96   : > { %s341_s17 = sshll.u32 %s333_s6, 4  ;;  %s330_s19 = scalar_lea.sflag [#allocation7], %s2207_s26  ;;  %s342_s17 = int_to_ptr.vmem [resolvable:$true] %s341_s17 }
  0x97   : > { %s1851_s22 = scalar_lea.hbm %s2325_s9, 64  ;;  %p2704_p7 = scmp.ne.s32.totalorder %s2697_s15, 0 }
  0x98   : > { %p1852_p3 = scmp.ne.s32.totalorder %s2325_s9, %s1851_s22  ;;  %s1856_s20 = scalar_lea.hbm %s2648_s1, 128 }
  0x99   : > { %p1857_p8 = scmp.lt.u32.totalorder %s2325_s9, %s2648_s1  ;;  %p1858_p5 = scmp.lt.u32.totalorder %s1856_s20, %s1851_s22 }
  0x9a   : > { %p1854_p12 = pnand %p1852_p3, %p2704_p7  ;;  %p1860_p2 = scmp.lt.u32.totalorder %s1851_s22, %s2325_s9 }
  0x9b   : > { %p1859_p9 = por %p1858_p5, %p1857_p8 }
  0x9c   : > { %p1855_p0 = pneg %p1854_p12 }
  0x9d   : > { %p1861_p4 = por %p1860_p2, %p1859_p9 }
  0x9f   : > { %p1862_p11 = pnand %p1861_p4, %p1855_p0 }
  0xa1   : > { %1865 = shalt.err (!%p1862_p11)
}
  0xa2   : > { %s1866_s24 = scalar_lea.vmem %s342_s17, 64  ;;  %s2045_s4 = smov [#allocation6]  }
  0xa3   : > { %p1867_p13 = scmp.ne.s32.totalorder %s342_s17, %s1866_s24  ;;  %s1871_s0 = sshll.u32 %s2045_s4, 4  ;;  %s1872_s0 = int_to_ptr.vmem [resolvable:$false] %s1871_s0 }
  0xa4   : > { %s1873_s25 = scalar_lea.vmem %s1872_s0, 128  ;;  %p1874_p10 = scmp.lt.s32.totalorder %s342_s17, %s1872_s0 }
  0xa5   : > { %p1869_p1 = pnand %p1867_p13, %p2704_p7  ;;  %p1875_p3 = scmp.lt.s32.totalorder %s1873_s25, %s1866_s24 }
  0xa7   : > { %p1870_p6 = pneg %p1869_p1  ;;  %p1876_p12 = por %p1875_p3, %p1874_p10 }
  0xa9   : > { %p1877_p5 = pnand %p1876_p12, %p1870_p6 }
  0xab   : > { %1880 = shalt.err (!%p1877_p5)
}
  0xac   : > { %p2705_p8 = scmp.ne.s32.totalorder %s2695_s13, 0  ;;  %s2350_s2 = scalar_lea.hbm %s2650_s3, %s2213_s27 }
  0xad   : > { %s371_s23 = scalar_lea.vmem [#allocation11], %s2210_s18  ;;  %s1478_s21 = sshll.u32 %s2207_s26, 3 }
  0xae   : > { %1614 = dma.hbm_to_vmem [thread:$0]  (!%p2705_p8), %s2325_s9, 64, %s342_s17, %s330_s19  }
  0xaf   : > { %s379_s20 = sshll.u32 %s371_s23, 4  ;;  %s1881_s29 = scalar_lea.hbm %s2350_s2, 64  ;;  %s380_s20 = int_to_ptr.vmem [resolvable:$true] %s379_s20 }
  0xb0   : > { %p1882_p0 = scmp.ne.s32.totalorder %s2350_s2, %s1881_s29  ;;  %s1886_s17 = scalar_lea.hbm %s2650_s3, 128 }
  0xb1   : > { %p1887_p4 = scmp.lt.u32.totalorder %s2350_s2, %s2650_s3  ;;  %p1888_p11 = scmp.lt.u32.totalorder %s1886_s17, %s1881_s29 }
  0xb2   : > { %p1884_p9 = pnand %p1882_p0, %p2704_p7  ;;  %p1890_p1 = scmp.lt.u32.totalorder %s1881_s29, %s2350_s2 }
  0xb3   : > { %p1889_p13 = por %p1888_p11, %p1887_p4 }
  0xb4   : > { %p1885_p2 = pneg %p1884_p9 }
  0xb5   : > { %p1891_p6 = por %p1890_p1, %p1889_p13 }
  0xb7   : > { %p1892_p10 = pnand %p1891_p6, %p1885_p2 }
  0xb9   : > { %1895 = shalt.err (!%p1892_p10)
}
  0xba   : > { %s1896_s18 = scalar_lea.vmem %s380_s20, 64  ;;  %s2046_s4 = smov [#allocation11]  }
  0xbb   : > { %p1897_p3 = scmp.ne.s32.totalorder %s380_s20, %s1896_s18  ;;  %s1901_s0 = sshll.u32 %s2046_s4, 4  ;;  %s1902_s0 = int_to_ptr.vmem [resolvable:$false] %s1901_s0 }
  0xbc   : > { %s1903_s25 = scalar_lea.vmem %s1902_s0, 128  ;;  %p1904_p0 = scmp.lt.s32.totalorder %s380_s20, %s1902_s0 }
  0xbd   : > { %p1899_p12 = pnand %p1897_p3, %p2704_p7  ;;  %p1905_p9 = scmp.lt.s32.totalorder %s1903_s25, %s1896_s18 }
  0xbf   : > { %p1900_p5 = pneg %p1899_p12  ;;  %p1906_p8 = por %p1905_p9, %p1904_p0 }
  0xc1   : > { %p1907_p4 = pnand %p1906_p8, %p1900_p5 }
  0xc3   : > { %1910 = shalt.err (!%p1907_p4)
}
  0xc4   : > { %p2706_p11 = scmp.ne.s32.totalorder %s2695_s13, 0  ;;  %s1479_s6 = sshll.u32 %s2031_s11, 7 }
  0xc5   : > { %s2376_s29 = scalar_lea.hbm %s2652_s5, %s1479_s6  ;;  %s413_s24 = scalar_lea.vmem [#allocation14], %s1478_s21 }
  0xc6   : > { %1620 = dma.hbm_to_vmem [thread:$0]  (!%p2706_p11), %s2350_s2, 64, %s380_s20, %s2235_s28  }
  0xc7   : > { %s421_s9 = sshll.u32 %s413_s24, 4  ;;  %s1911_s17 = scalar_lea.hbm %s2376_s29, 128  ;;  %s422_s9 = int_to_ptr.vmem [resolvable:$true] %s421_s9 }
  0xc8   : > { %p1912_p8 = scmp.ne.s32.totalorder %s2376_s29, %s1911_s17  ;;  %s1916_s20 = scalar_lea.hbm %s2652_s5, 256 }
  0xc9   : > { %p1917_p1 = scmp.lt.u32.totalorder %s2376_s29, %s2652_s5  ;;  %p1918_p6 = scmp.lt.u32.totalorder %s1916_s20, %s1911_s17 }
  0xca   : > { %p1914_p2 = pnand %p1912_p8, %p2704_p7  ;;  %p1920_p3 = scmp.lt.u32.totalorder %s1911_s17, %s2376_s29 }
  0xcb   : > { %p1919_p10 = por %p1918_p6, %p1917_p1 }
  0xcc   : > { %p1915_p13 = pneg %p1914_p2 }
  0xcd   : > { %p1921_p12 = por %p1920_p3, %p1919_p10 }
  0xcf   : > { %p1922_p5 = pnand %p1921_p12, %p1915_p13 }
  0xd1   : > { %1925 = shalt.err (!%p1922_p5)
}
  0xd2   : > { %s1926_s26 = scalar_lea.vmem %s422_s9, 128  ;;  %s2047_s21 = smov [#allocation14]  }
  0xd3   : > { %p1927_p0 = scmp.ne.s32.totalorder %s422_s9, %s1926_s26  ;;  %s1931_s18 = sshll.u32 %s2047_s21, 4  ;;  %s1932_s18 = int_to_ptr.vmem [resolvable:$false] %s1931_s18 }
  0xd4   : > { %s1933_s4 = scalar_lea.vmem %s1932_s18, 256  ;;  %p1934_p8 = scmp.lt.s32.totalorder %s422_s9, %s1932_s18 }
  0xd5   : > { %p1929_p9 = pnand %p1927_p0, %p2704_p7  ;;  %p1935_p2 = scmp.lt.s32.totalorder %s1933_s4, %s1926_s26 }
  0xd7   : > { %p1930_p4 = pneg %p1929_p9  ;;  %p1936_p11 = por %p1935_p2, %p1934_p8 }
  0xd9   : > { %p1937_p1 = pnand %p1936_p11, %p1930_p4 }
  0xdb   : > { %1940 = shalt.err (!%p1937_p1)
}
  0xdc   : > { %p2707_p6 = scmp.ne.s32.totalorder %s2695_s13, 0  ;;  %p2708_p13 = scmp.ne.s32.totalorder %s2687_s16, 0 }
  0xdd   : > { %s2401_s15 = sand.u32 (!%p2708_p13), 1, %s2019_s30   ;;  %p2709_p7 = scmp.ne.s32.totalorder (!%p2708_p13), %s2684_s14, 0 }
  0xde   : > { %1626 = dma.hbm_to_vmem [thread:$0]  (!%p2707_p6), %s2376_s29, 128, %s422_s9, %s2277_s8  }
  0xdf   : > { %430 = sbr.rel (%p2708_p13) target bundleno = 2090 (0x82a), region = 52  ;;  %s2404_s0 = sshll.u32 (!%p2708_p13), %s2401_s15, 2 }
  0xe0   : > { %s433_s25 = scalar_lea.sflag (!%p2708_p13), [#allocation7], %s2401_s15  ;;  %s436_s6 = scalar_lea.vmem (!%p2708_p13), [#allocation6], %s2404_s0 }
  0xe6   : > { %1994 = dma.done.wait (%p2709_p7), %s433_s25, 64  }
  0xe7   : > { %1996 = vsyncadd (%p2709_p7), %s433_s25, 4294967232  ;;  %s441_s8 = sand.u32 1, %s2136_s12   ;;  %s445_s13 = scalar_lea.vmem [#allocation9], %s2404_s0 }
  0xe8   : > { %s442_s16 = scalar_lea.sflag [#allocation10], %s441_s8 }
  0xe9   : > { %1998 = dma.done.wait (%p2709_p7), %s442_s16, 128  }
  0xea   : > { %2000 = vsyncadd (%p2709_p7), %s442_s16, 4294967168  ;;  %s1484_s22 = sshll.u32 %s2401_s15, 5  ;;  %s454_s23 = scalar_lea.vmem [#allocation11], %s2404_s0 }
  0xeb   : > { %s460_s29 = scalar_lea.sflag [#allocation13], %s441_s8  ;;  %s2420_s24 = scalar_lea.vmem [#allocation12], %s1484_s22 }
  0xec   : > { %2002 = dma.done.wait (%p2709_p7), %s460_s29, 640  }
  0xed   : > { %2004 = vsyncadd (%p2709_p7), %s460_s29, 4294966656  ;;  %s1485_s9 = sshll.u32 %s2401_s15, 3  ;;  %p2710_p11 = scmp.eq.s32.totalorder %s2136_s12, 0 }
  0xee   : > { %s2429_s17 = scalar_lea.vmem [#allocation14], %s1485_s9 }
  0xef   : > { %2006 = dma.done.wait (%p2710_p11), [#allocation16], 272   ;;  %p2711_p10 = pmov %p2710_p11 }
  0xf0   : > { %v2048_v0 = vmov 0.0   ;;  %vm2049_vm0 = vmmov 0   ;;  %vm563_vm1 = vcmask 64512   ;;  %v553_v1 = vld [vmem:[%s445_s13] sm:$0xf]  ;;  %vm538_vm2 = vcmask 7168  }
  0xf1   : > { %2008 = vsyncadd (%p2711_p10), [#allocation16], 4294967024  ;;  %1528 = vmatprep.subr.bf16.mxu0 %v2048_v0  ;;  %1530 = vmatprep.mubr.msk.bf16.mxu0 %vm2049_vm0, %v2048_v0  ;;  %v580_v2 = vsel %vm563_vm1, %v553_v1, 0  ;;  %v552_v3 = vld [vmem:[%s436_s6] sm:$0xf]  ;;  %v2050_v4 = vmov -inf   ;;  %v1492_v31 = vcombine.low %v553_v1, %v553_v1 }
  0xf2   : > { %1534 = vmatprep.subr.bf16.mxu1 %v2048_v0  ;;  %1536 = vmatprep.mubr.msk.bf16.mxu1 %vm2049_vm0, %v2048_v0  ;;  %539 = vst.msk [vmem:[#allocation2] sm:$0xff] %vm538_vm2, %v2050_v4  ;;  %540 = vst.msk [vmem:[#allocation2 + $0x8] sm:$0xff] %vm538_vm2, %v2050_v4  ;;  %v555_v5 = vld [vmem:[%s2420_s24] sm:$0xff]  ;;  %v2460_v6 = vld [vmem:[%s2420_s24 + $0x8] sm:$0xff]  ;;  %v2051_v30 = vmov 0   ;;  %s2052_s12 = smov 120   ;;  %v1491_v32 = vcombine.low %v552_v3, %v552_v3 }
  0xf3   : > { %1529 = vmatpush3.bf16.xpose.msra.mxu0 %v580_v2  ;;  %541 = vst.msk [vmem:[#allocation2 + $0x10] sm:$0xff] %vm538_vm2, %v2050_v4  ;;  %542 = vst.msk [vmem:[#allocation2 + $0x18] sm:$0xff] %vm538_vm2, %v2050_v4  ;;  %v559_v7 = vmul.f32 %v555_v5, %v555_v5  ;;  %v560_v8 = vmul.f32 %v2460_v6, %v2460_v6  ;;  %v2465_v9 = vld [vmem:[%s2420_s24 + $0x10] sm:$0xff]  ;;  %v2472_v13 = vld [vmem:[%s2420_s24 + $0x18] sm:$0xff]  ;;  %1699 = vset.pattern.permute.xlu0 %v2051_v30  ;;  %s2053_s14 = smov 112   ;;  %s2054_s28 = smov 104  }
  0xf4   : > { %1546 = vmatprep.subr.bf16.mxu0 %v2048_v0  ;;  %543 = vst.msk [vmem:[#allocation3] sm:$0xff] %vm538_vm2, %v2048_v0  ;;  %544 = vst.msk [vmem:[#allocation3 + $0x8] sm:$0xff] %vm538_vm2, %v2048_v0  ;;  %v561_v10 = vmul.f32 %v2465_v9, %v2465_v9  ;;  %v562_v15 = vmul.f32 %v2472_v13, %v2472_v13  ;;  %1700 = vset.pattern.permute.xlu1 %v2051_v30  ;;  %v2496_v37 = vld [vmem:[%s454_s23] sm:$0xf]  ;;  %vm657_vm3 = vcmask 1043456   ;;  %vm547_vm4 = vcmask 130048  }
  0xf5   : > { %545 = vst.msk [vmem:[#allocation3 + $0x10] sm:$0xff] %vm538_vm2, %v2048_v0  ;;  %546 = vst.msk [vmem:[#allocation3 + $0x18] sm:$0xff] %vm538_vm2, %v2048_v0  ;;  %v564_v11 = vsel %vm563_vm1, %v559_v7, 0.0  ;;  %v565_v12 = vsel %vm563_vm1, %v560_v8, 0.0  ;;  %714 = vrot.lane.b32.xlu1 %v1492_v31, %s2052_s12  ;;  %v659_v38 = vsel %vm657_vm3, %v2496_v37, 0  ;;  %s1115_s2 = sld [smem:[#allocation5]] }
  0xf6   : > { %v566_v14 = vadd.f32 %v565_v12, %v564_v11  ;;  %v567_v16 = vsel %vm563_vm1, %v561_v10, 0.0  ;;  %v569_v18 = vsel %vm563_vm1, %v562_v15, 0.0  ;;  %1535 = vmatpush3.bf16.msra.mxu1 %v659_v38  ;;  %551 = vst.msk [vmem:[#allocation4 + $0x18] sm:$0xff] %vm547_vm4, %v2048_v0  ;;  %548 = vst.msk [vmem:[#allocation4] sm:$0xff] %vm547_vm4, %v2048_v0  ;;  %s2055_s20 = smov 16   ;;  %vm1208_vm5 = vcmask 261120  }
  0xf7   : > { %1540 = vmatprep.subr.bf16.mxu1 %v2048_v0  ;;  %549 = vst.msk [vmem:[#allocation4 + $0x8] sm:$0xff] %vm547_vm4, %v2048_v0  ;;  %550 = vst.msk [vmem:[#allocation4 + $0x10] sm:$0xff] %vm547_vm4, %v2048_v0  ;;  %s2712_s19 = sld [smem:[#allocation29_spill]]  ;;  %s1505_s27 = sshll.u32 %s2027_s10, 7 }
  0xf8   : > { %v568_v17 = vadd.f32 %v567_v16, %v566_v14  ;;  %s532_s26 = scalar_lea.vmem [#allocation18], %s1485_s9  ;;  %s2713_s0 = sld [smem:[#allocation34_spill]] }
  0xf9   : > { %709 = vrot.lane.b32.xlu1 %v1491_v32, %s2052_s12  ;;  %v2484_v33 = vld [vmem:[#allocation2] sm:$0xff]  ;;  %s1269_s21 = sshll.u32 %s532_s26, 4  ;;  %s1255_s10 = scalar_lea.sflag [#allocation8], %s2401_s15  ;;  %s2600_s21 = int_to_ptr.vmem [resolvable:$true] %s1269_s21 }
  0xfa   : > { %1531 = vmatmul.mubr.msk.bf16.vlgmr.msra.gmra.mrb[0].mxu0 %vm563_vm1, %v552_v3  ;;  %v570_v19 = vadd.f32 %v569_v18, %v568_v17  ;;  %s1941_s8 = scalar_lea.vmem %s2600_s21, 128  ;;  %s2056_s16 = smov [#allocation18]  }
  0xfb   : > { %1548 = vmatprep.mubr.msk.bf16.mxu0 %vm2049_vm0, %v2048_v0  ;;  %1547 = vmatpush3.bf16.msra.mxu0 %v659_v38  ;;  %p1942_p3 = scmp.ne.s32.totalorder %s2600_s21, %s1941_s8  ;;  %s1945_s13 = sshll.u32 %s2056_s16, 4  ;;  %s1946_s13 = int_to_ptr.vmem [resolvable:$false] %s1945_s13 }
  0xfc   : > { %v572_v20 = vmul.f32 0.25, %v570_v19  ;;  %1558 = vmatprep.subr.bf16.mxu0 %v2048_v0  ;;  %s1947_s22 = scalar_lea.vmem %s1946_s13, 256  ;;  %p1948_p9 = scmp.lt.s32.totalorder %s2600_s21, %s1946_s13 }
  0xfd   : > { %845 = vrot.lane.b32.xlu1 %v1492_v31, %s2053_s14  ;;  %p2715_p12 = scmp.ne.s32.totalorder %s2712_s19, 0  ;;  %p1949_p4 = scmp.lt.s32.totalorder %s1947_s22, %s1941_s8 }
  0xfe   : > { %v573_v21 = vadd.f32 1e-05, %v572_v20  ;;  %s2714_s25 = smov %s2713_s0  ;;  %s2598_s6 = scalar_lea.hbm %s2713_s0, %s1505_s27 }
  0xff   : > { %p1943_p5 = pnand %p1942_p3, %p2715_p12  ;;  %p1950_p8 = por %p1949_p4, %p1948_p9 }
 0x100   : > { %1705 = vrsqrt.f32 %v573_v21 }
 0x101   : > { %843 = vrot.lane.b32.xlu1 %v1491_v32, %s2053_s14  ;;  %p1944_p0 = pneg %p1943_p5 }
 0x103   : > { %p1951_p2 = pnand %p1950_p8, %p1944_p0 }
 0x105   : > { %984 = vrot.lane.b32.xlu1 %v1492_v31, %s2054_s28 }
 0x109   : > { %982 = vrot.lane.b32.xlu1 %v1491_v32, %s2054_s28 }
 0x10a   : > { %v2478_v22 = vpop.eup %1705 }
 0x10b   : > { %v575_v23 = vmul.f32 %v2478_v22, %v555_v5  ;;  %v705_v57 = vmul.f32 %v2478_v22, %v2460_v6  ;;  %v842_v1 = vmul.f32 %v2478_v22, %v2465_v9  ;;  %v981_v6 = vmul.f32 %v2478_v22, %v2472_v13  ;;  %v2535_v9 = vld [vmem:[#allocation2 + $0x8] sm:$0xff]  ;;  %v894_v13 = vld [vmem:[#allocation2 + $0x10] sm:$0xff] }
 0x167   : > { %v715_v42 = vpop.permute.xlu1 %714 }
 0x168   : > { %v720_v45 = vsel %vm563_vm1, %v715_v42, 0 }
 0x16b   : > { %v710_v43 = vpop.permute.xlu1 %709 }
 0x16f   : > { %v846_v47 = vpop.permute.xlu1 %845 }
 0x170   : > { %v851_v49 = vsel %vm563_vm1, %v846_v47, 0 }
 0x173   : > { %v844_v48 = vpop.permute.xlu1 %843 }
 0x177   : > { %v985_v50 = vpop.permute.xlu1 %984 }
 0x178   : > { %v990_v51 = vsel %vm563_vm1, %v985_v50, 0 }
 0x17b   : > { %v983_v52 = vpop.permute.xlu1 %982 }
 0x1cd   : > { %v616_v24 = vpop.f32.mrb[0].mxu0 }
 0x1ce   : > { %v617_v25 = vadd.f32 %v616_v24, %v575_v23  ;;  %v1532_v26 = vpop.f32.mrb[1].mxu0  ;;  %v1033_v23 = vld [vmem:[#allocation2 + $0x18] sm:$0xff] }
 0x1cf   : > { %v619_v27 = vpop.f32.mrb[2].mxu0  ;;  %v1496_v26 = vcombine.low %v2496_v37, %v2496_v37 }
 0x1d0   : > { %v1533_v28 = vpop.f32.mrb[3].mxu0  ;;  %v623_v29 = vsel %vm563_vm1, %v617_v25, -inf }
 0x1d1   : > { %624 = vmax.xlane.f32.xlu0 %v623_v29 }
 0x25e   : > { %v625_v34 = vpop.xlane.xlu0 %624 }
 0x25f   : > { %v2487_v35 = vmax.f32 %v2484_v33, %v625_v34 }
 0x261   : > { %v627_v36 = vsub.f32 %v2484_v33, %v2487_v35  ;;  %704 = vst.msk [vmem:[#allocation2] sm:$0xff] %vm538_vm2, %v2487_v35  ;;  %632 = vperm.xlu0 %1699, %v2487_v35  }
 0x2e0   : > { %v633_v39 = vpop.permute.xlu0 %632 }
 0x2e1   : > { %v635_v40 = vsub.f32 %v617_v25, %v633_v39 }
 0x2e3   : > { %v636_v41 = vmul.f32 1.442695, %v635_v40 }
 0x2e5   : > { %1707 = vpow2.f32 %v636_v41 }
 0x2ef   : > { %v2502_v44 = vpop.eup %1707 }
 0x2f0   : > { %v653_v46 = vpack.c.bf16 %v2502_v44, %v2502_v44 }
 0x2f2   : > { %1537 = vmatmul.mubr.msk.bf16.vlgmr.msra.gmra.mrb[0].mxu1 %vm563_vm1, %v653_v46 }
 0x2f3   : > { %1541 = vmatpush3.bf16.xpose.msra.mxu1 %v720_v45  ;;  %1542 = vmatprep.mubr.msk.bf16.mxu1 %vm2049_vm0, %v2048_v0 }
 0x2f4   : > { %1552 = vmatprep.subr.bf16.mxu1 %v2048_v0 }
 0x2fa   : > { %1543 = vmatmul.mubr.msk.bf16.vlgmr.msra.gmra.mrb[4].mxu1 %vm563_vm1, %v710_v43 }
 0x2fb   : > { %1553 = vmatpush3.bf16.xpose.msra.mxu1 %v851_v49  ;;  %1554 = vmatprep.mubr.msk.bf16.mxu1 %vm2049_vm0, %v2048_v0 }
 0x2fc   : > { %1564 = vmatprep.subr.bf16.mxu1 %v2048_v0 }
 0x302   : > { %1555 = vmatmul.mubr.msk.bf16.vlgmr.msra.gmra.mrb[8].mxu1 %vm563_vm1, %v844_v48 }
 0x303   : > { %1565 = vmatpush3.bf16.xpose.msra.mxu1 %v990_v51  ;;  %1566 = vmatprep.mubr.msk.bf16.mxu1 %vm2049_vm0, %v2048_v0 }
 0x304   : > { %1576 = vmatprep.subr.bf16.mxu1 %v2048_v0 }
 0x30a   : > { %1567 = vmatmul.mubr.msk.bf16.vlgmr.msra.gmra.mrb[12].mxu1 %vm563_vm1, %v983_v52 }
 0x30b   : > { %1580 = vmatprep.mubr.msk.bf16.mxu1 %vm2049_vm0, %v2048_v0 }
 0x3c5   : > { %v2524_v53 = vpop.f32.mrb[0].mxu1 }
 0x3c6   : > { %v1538_v54 = vpop.f32.mrb[1].mxu1 }
 0x3c7   : > { %v698_v55 = vpop.f32.mrb[2].mxu1  ;;  %v640_v54 = vsel %vm563_vm1, %v2502_v44, 0.0 }
 0x3c8   : > { %v1539_v56 = vpop.f32.mrb[3].mxu1 }
 0x3cd   : > { %v756_v58 = vpop.f32.mrb[4].mxu1 }
 0x3ce   : > { %v757_v59 = vadd.f32 %v756_v58, %v705_v57  ;;  %v1544_v60 = vpop.f32.mrb[5].mxu1 }
 0x3cf   : > { %v759_v61 = vpop.f32.mrb[6].mxu1  ;;  %v628_v60 = vmul.f32 1.442695, %v627_v36  ;;  %v638_v36 = vld [vmem:[#allocation3] sm:$0xff] }
 0x3d0   : > { %v1545_v62 = vpop.f32.mrb[7].mxu1  ;;  %v764_v63 = vsel %vm563_vm1, %v757_v59, -inf }
 0x3d1   : > { %765 = vmax.xlane.f32.xlu1 %v764_v63  ;;  %v1050_v63 = vld [vmem:[#allocation3 + $0x18] sm:$0xff] }
 0x3d5   : > { %v887_v2 = vpop.f32.mrb[8].mxu1 }
 0x3d6   : > { %v888_v3 = vadd.f32 %v887_v2, %v842_v1  ;;  %v1556_v4 = vpop.f32.mrb[9].mxu1 }
 0x3d7   : > { %v890_v5 = vpop.f32.mrb[10].mxu1  ;;  %v780_v4 = vld [vmem:[#allocation3 + $0x8] sm:$0xff] }
 0x3d8   : > { %v1557_v7 = vpop.f32.mrb[11].mxu1  ;;  %v895_v8 = vsel %vm563_vm1, %v888_v3, -inf }
 0x3d9   : > { %896 = vmax.xlane.f32.xlu0 %v895_v8 }
 0x3dd   : > { %v1026_v10 = vpop.f32.mrb[12].mxu1 }
 0x3de   : > { %v1027_v11 = vadd.f32 %v1026_v10, %v981_v6  ;;  %v1568_v12 = vpop.f32.mrb[13].mxu1 }
 0x3df   : > { %v1029_v14 = vpop.f32.mrb[14].mxu1 }
 0x3e0   : > { %v1569_v15 = vpop.f32.mrb[15].mxu1  ;;  %v1034_v16 = vsel %vm563_vm1, %v1027_v11, -inf }
 0x3e1   : > { %1035 = vmax.xlane.f32.xlu1 %v1034_v16 }
 0x45e   : > { %v766_v17 = vpop.xlane.xlu1 %765 }
 0x45f   : > { %v2538_v18 = vmax.f32 %v2535_v9, %v766_v17 }
 0x461   : > { %v768_v19 = vsub.f32 %v2535_v9, %v2538_v18  ;;  %841 = vst.msk [vmem:[#allocation2 + $0x8] sm:$0xff] %vm538_vm2, %v2538_v18  ;;  %773 = vperm.xlu1 %1700, %v2538_v18  }
 0x463   : > { %v769_v58 = vmul.f32 1.442695, %v768_v19 }
 0x466   : > { %v897_v20 = vpop.xlane.xlu0 %896 }
 0x467   : > { %v898_v21 = vmax.f32 %v894_v13, %v897_v20 }
 0x469   : > { %v899_v22 = vsub.f32 %v894_v13, %v898_v21  ;;  %980 = vst.msk [vmem:[#allocation2 + $0x10] sm:$0xff] %vm538_vm2, %v898_v21  ;;  %904 = vperm.xlu0 %1699, %v898_v21  }
 0x46b   : > { %v900_v55 = vmul.f32 1.442695, %v899_v22 }
 0x46e   : > { %v1036_v24 = vpop.xlane.xlu1 %1035 }
 0x46f   : > { %v1037_v25 = vmax.f32 %v1033_v23, %v1036_v24 }
 0x471   : > { %v1038_v27 = vsub.f32 %v1033_v23, %v1037_v25  ;;  %1111 = vst.msk [vmem:[#allocation2 + $0x18] sm:$0xff] %vm538_vm2, %v1037_v25  ;;  %1043 = vperm.xlu1 %1700, %v1037_v25   ;;  %v919_v23 = vld [vmem:[#allocation4 + $0x10] sm:$0xff] }
 0x473   : > { %v1039_v49 = vmul.f32 1.442695, %v1038_v27 }
 0x475   : > { %930 = vrot.lane.b32.xlu1 %v1496_v26, %s2053_s14 }
 0x4e0   : > { %v774_v28 = vpop.permute.xlu1 %773 }
 0x4e1   : > { %v776_v29 = vsub.f32 %v757_v59, %v774_v28  ;;  %v911_v59 = vld [vmem:[#allocation3 + $0x10] sm:$0xff] }
 0x4e3   : > { %v777_v30 = vmul.f32 1.442695, %v776_v29 }
 0x4e5   : > { %1709 = vpow2.f32 %v777_v30 }
 0x4e8   : > { %v905_v31 = vpop.permute.xlu0 %904 }
 0x4e9   : > { %v907_v32 = vsub.f32 %v888_v3, %v905_v31  ;;  %v1058_v31 = vld [vmem:[#allocation4 + $0x18] sm:$0xff] }
 0x4eb   : > { %v908_v34 = vmul.f32 1.442695, %v907_v32 }
 0x4ed   : > { %1711 = vpow2.f32 %v908_v34 }
 0x4ef   : > { %v1710_v38 = vpop.eup %1709 }
 0x4f0   : > { %v1044_v39 = vpop.permute.xlu1 %1043  ;;  %v795_v40 = vpack.c.bf16 %v1710_v38, %v1710_v38  ;;  %v782_v52 = vsel %vm563_vm1, %v1710_v38, 0.0 }
 0x4f1   : > { %v1046_v41 = vsub.f32 %v1027_v11, %v1044_v39 }
 0x4f2   : > { %1549 = vmatmul.mubr.msk.bf16.vlgmr.msra.gmra.mrb[4].mxu0 %vm563_vm1, %v795_v40 }
 0x4f3   : > { %v1047_v37 = vmul.f32 1.442695, %v1046_v41  ;;  %1560 = vmatprep.mubr.msk.bf16.mxu0 %vm2049_vm0, %v2048_v0 }
 0x4f4   : > { %v931_v42 = vpop.permute.xlu1 %930 }
 0x4f5   : > { %1713 = vpow2.f32 %v1047_v37  ;;  %v936_v43 = vsel %vm657_vm3, %v931_v42, 0 }
 0x4f6   : > { %1559 = vmatpush3.bf16.msra.mxu0 %v936_v43  ;;  %1715 = vpow2.f32 %v1039_v49 }
 0x4f7   : > { %v1712_v45 = vpop.eup %1711  ;;  %1570 = vmatprep.subr.bf16.mxu0 %v2048_v0  ;;  %1717 = vpow2.f32 %v900_v55 }
 0x4f8   : > { %v913_v46 = vsel %vm563_vm1, %v1712_v45, 0.0  ;;  %v926_v47 = vpack.c.bf16 %v1712_v45, %v1712_v45  ;;  %1719 = vpow2.f32 %v769_v58 }
 0x4f9   : > { %914 = vadd.xlane.f32.xlu0 %v913_v46  ;;  %1721 = vpow2.f32 %v628_v60 }
 0x4fa   : > { %1561 = vmatmul.mubr.msk.bf16.vlgmr.msra.gmra.mrb[8].mxu0 %vm563_vm1, %v926_v47 }
 0x4fb   : > { %1571 = vmatpush3.bf16.msra.mxu0 %v936_v43  ;;  %1572 = vmatprep.mubr.msk.bf16.mxu0 %vm2049_vm0, %v2048_v0  ;;  %v646_v43 = vld [vmem:[#allocation4] sm:$0xff] }
 0x4ff   : > { %v1714_v48 = vpop.eup %1713 }
 0x500   : > { %v1052_v50 = vsel %vm563_vm1, %v1714_v48, 0.0  ;;  %v1065_v51 = vpack.c.bf16 %v1714_v48, %v1714_v48  ;;  %v1716_v56 = vpop.eup %1715  ;;  %v1134_v48 = vstv %s1115_s2 }
 0x501   : > { %1053 = vadd.xlane.f32.xlu1 %v1052_v50  ;;  %v1718_v57 = vpop.eup %1717  ;;  %v1051_v1 = vmul.f32 %v1716_v56, %v1050_v63 }
 0x502   : > { %1573 = vmatmul.mubr.msk.bf16.vlgmr.msra.gmra.mrb[12].mxu0 %vm563_vm1, %v1065_v51  ;;  %v912_v61 = vmul.f32 %v1718_v57, %v911_v59  ;;  %v1720_v2 = vpop.eup %1719 }
 0x503   : > { %v781_v8 = vmul.f32 %v1720_v2, %v780_v4  ;;  %v1722_v33 = vpop.eup %1721 }
 0x504   : > { %v639_v10 = vmul.f32 %v1722_v33, %v638_v36 }
 0x505   : > { %783 = vadd.xlane.f32.xlu1 %v782_v52 }
 0x509   : > { %641 = vadd.xlane.f32.xlu1 %v640_v54  ;;  %v788_v54 = vld [vmem:[#allocation4 + $0x8] sm:$0xff] }
 0x50f   : > { %1061 = vperm.xlu0 %1699, %v1716_v56  }
 0x51a   : > { %922 = vperm.xlu1 %1700, %v1718_v57  }
 0x586   : > { %v915_v62 = vpop.xlane.xlu0 %914 }
 0x587   : > { %v916_v44 = vadd.f32 %v915_v62, %v912_v61 }
 0x589   : > { %917 = vst.msk [vmem:[#allocation3 + $0x10] sm:$0xff] %vm538_vm2, %v916_v44 }
 0x58e   : > { %v1054_v3 = vpop.xlane.xlu1 %1053  ;;  %v1062_v32 = vpop.permute.xlu0 %1061 }
 0x58f   : > { %v1055_v5 = vadd.f32 %v1054_v3, %v1051_v1  ;;  %v1064_v34 = vmul.f32 %v1062_v32, %v1058_v31 }
 0x590   : > { %v1156_v7 = vld [vmem:[#allocation3 + $0x10] sm:$0xff] }
 0x591   : > { %1056 = vst.msk [vmem:[#allocation3 + $0x18] sm:$0xff] %vm538_vm2, %v1055_v5  ;;  %1723 = vrcp.f32 %v1156_v7 }
 0x592   : > { %v784_v35 = vpop.xlane.xlu1 %783 }
 0x593   : > { %v785_v6 = vadd.f32 %v784_v35, %v781_v8  ;;  %v1704_v35 = vld [vmem:[#allocation15 + $0x8] sm:$0xff]  }
 0x595   : > { %786 = vst.msk [vmem:[#allocation3 + $0x8] sm:$0xff] %vm538_vm2, %v785_v6 }
 0x596   : > { %v642_v11 = vpop.xlane.xlu1 %641 }
 0x597   : > { %v643_v12 = vadd.f32 %v642_v11, %v639_v10 }
 0x598   : > { %v1165_v14 = vld [vmem:[#allocation3 + $0x18] sm:$0xff] }
 0x599   : > { %645 = vst.msk [vmem:[#allocation3] sm:$0xff] %vm538_vm2, %v643_v12  ;;  %1725 = vrcp.f32 %v1165_v14  ;;  %v1500_v12 = vld [vmem:[#allocation17] ss:$0 sm:$0xff] }
 0x59a   : > { %v923_v24 = vpop.permute.xlu1 %922 }
 0x59b   : > { %v1724_v15 = vpop.eup %1723  ;;  %v925_v25 = vmul.f32 %v923_v24, %v919_v23  ;;  %v1191_v24 = vld [vmem:[%s2429_s17] sm:$0xff] }
 0x59c   : > { %1160 = vperm.xlu0 %1699, %v1724_v15   ;;  %v1126_v16 = vld [vmem:[#allocation3 + $0x8] sm:$0xff] }
 0x59d   : > { %1727 = vrcp.f32 %v1126_v16 }
 0x5a0   : > { %649 = vperm.xlu0 %1699, %v1722_v33   ;;  %v1117_v9 = vld [vmem:[#allocation3] sm:$0xff]  ;;  %v1703_v33 = vld [vmem:[#allocation15] sm:$0xff]  }
 0x5a1   : > { %1729 = vrcp.f32 %v1117_v9  ;;  %1577 = vmatpush3.bf16.msra.mxu1 %v1703_v33 }
 0x5a2   : > { %1578 = vmatprep.subr.bf16.mxu1 %v2048_v0 }
 0x5a3   : > { %v1726_v17 = vpop.eup %1725 }
 0x5a4   : > { %1169 = vperm.xlu1 %1700, %v1726_v17  }
 0x5a5   : > { %1579 = vmatpush3.bf16.msra.mxu1 %v1704_v35 }
 0x5a7   : > { %v1728_v18 = vpop.eup %1727 }
 0x5a8   : > { %791 = vperm.xlu1 %1700, %v1720_v2  }
 0x5ab   : > { %v1730_v19 = vpop.eup %1729 }
 0x5ac   : > { %1130 = vperm.xlu1 %1700, %v1728_v18   ;;  %1121 = vperm.xlu0 %1699, %v1730_v19  }
 0x5c5   : > { %v833_v13 = vpop.f32.mrb[4].mxu0 }
 0x5c6   : > { %v1550_v20 = vpop.f32.mrb[5].mxu0 }
 0x5c7   : > { %v836_v21 = vpop.f32.mrb[6].mxu0 }
 0x5c8   : > { %v1551_v22 = vpop.f32.mrb[7].mxu0 }
 0x5cd   : > { %v972_v26 = vpop.f32.mrb[8].mxu0 }
 0x5ce   : > { %v978_v27 = vadd.f32 %v972_v26, %v925_v25  ;;  %v1562_v28 = vpop.f32.mrb[9].mxu0 }
 0x5cf   : > { %v975_v29 = vpop.f32.mrb[10].mxu0 }
 0x5d0   : > { %979 = vst.msk [vmem:[#allocation4 + $0x10] sm:$0xff] %vm547_vm4, %v978_v27  ;;  %v1563_v30 = vpop.f32.mrb[11].mxu0 }
 0x5d5   : > { %v1103_v38 = vpop.f32.mrb[12].mxu0 }
 0x5d6   : > { %v1109_v39 = vadd.f32 %v1103_v38, %v1064_v34  ;;  %v1574_v40 = vpop.f32.mrb[13].mxu0 }
 0x5d7   : > { %v1106_v41 = vpop.f32.mrb[14].mxu0  ;;  %v1155_v52 = vld [vmem:[#allocation4 + $0x10] sm:$0xff] }
 0x5d8   : > { %1110 = vst.msk [vmem:[#allocation4 + $0x18] sm:$0xff] %vm547_vm4, %v1109_v39  ;;  %v1575_v37 = vpop.f32.mrb[15].mxu0 }
 0x5df   : > { %v1164_v49 = vld [vmem:[#allocation4 + $0x18] sm:$0xff] }
 0x61b   : > { %v1161_v42 = vpop.permute.xlu0 %1160 }
 0x61c   : > { %v1163_v55 = vmul.f32 %v1161_v42, %v1155_v52 }
 0x61f   : > { %v650_v45 = vpop.permute.xlu0 %649 }
 0x620   : > { %v652_v46 = vmul.f32 %v650_v45, %v646_v43 }
 0x622   : > { %v701_v47 = vadd.f32 %v2524_v53, %v652_v46 }
 0x623   : > { %v1170_v50 = vpop.permute.xlu1 %1169 }
 0x624   : > { %703 = vst.msk [vmem:[#allocation4] sm:$0xff] %vm547_vm4, %v701_v47  ;;  %v1172_v51 = vmul.f32 %v1170_v50, %v1164_v49 }
 0x626   : > { %v1173_v56 = vmul.f32 %v1172_v51, %v1134_v48 }
 0x627   : > { %v792_v57 = vpop.permute.xlu1 %791 }
 0x628   : > { %v794_v58 = vmul.f32 %v792_v57, %v788_v54  ;;  %v1174_v59 = vsub.f32 %v1163_v55, %v1173_v56 }
 0x62a   : > { %v839_v60 = vadd.f32 %v833_v13, %v794_v58  ;;  %v1175_v61 = vmul.f32 %v1174_v59, %v1174_v59 }
 0x62b   : > { %v1131_v44 = vpop.permute.xlu1 %1130  ;;  %v1116_v63 = vld [vmem:[#allocation4] sm:$0xff]  ;;  %v1122_v1 = vpop.permute.xlu0 %1121 }
 0x62c   : > { %840 = vst.msk [vmem:[#allocation4 + $0x8] sm:$0xff] %vm547_vm4, %v839_v60  ;;  %v1176_v62 = vsel %vm547_vm4, %v1175_v61, 0.0  ;;  %v1124_v4 = vmul.f32 %v1122_v1, %v1116_v63 }
 0x62d   : > { %1177 = vadd.xlane.f32.xlu1 %v1176_v62 }
 0x633   : > { %v1125_v53 = vld [vmem:[#allocation4 + $0x8] sm:$0xff] }
 0x634   : > { %v1133_v2 = vmul.f32 %v1131_v44, %v1125_v53 }
 0x636   : > { %v1135_v3 = vmul.f32 %v1134_v48, %v1133_v2 }
 0x638   : > { %v1136_v5 = vsub.f32 %v1124_v4, %v1135_v3 }
 0x63a   : > { %v1137_v7 = vmul.f32 %v1136_v5, %v1136_v5 }
 0x63c   : > { %v1138_v8 = vsel %vm547_vm4, %v1137_v7, 0.0 }
 0x63d   : > { %1139 = vadd.xlane.f32.xlu0 %v1138_v8 }
 0x6ba   : > { %v1178_v36 = vpop.xlane.xlu1 %1177 }
 0x6bb   : > { %v1179_v6 = vmul.f32 0.0625, %v1178_v36 }
 0x6bd   : > { %v1180_v10 = vadd.f32 1e-05, %v1179_v6 }
 0x6bf   : > { %1731 = vrsqrt.f32 %v1180_v10 }
 0x6c9   : > { %v1732_v11 = vpop.eup %1731 }
 0x6ca   : > { %v1182_v14 = vmul.f32 %v1732_v11, %v1174_v59  ;;  %v1140_v9 = vpop.xlane.xlu0 %1139 }
 0x6cb   : > { %v1142_v17 = vmul.f32 0.0625, %v1140_v9 }
 0x6cc   : > { %v1183_v15 = vmul.f32 %v1500_v12, %v1182_v14 }
 0x6cd   : > { %v1143_v18 = vadd.f32 1e-05, %v1142_v17 }
 0x6ce   : > { %v1184_v16 = vmul.f32 0.64449096, %v1183_v15 }
 0x6cf   : > { %1733 = vrsqrt.f32 %v1143_v18 }
 0x6d0   : > { %1186 = vrot.lane.b32.xlu0 %v1184_v16, %s2055_s20 }
 0x6d9   : > { %v1734_v0 = vpop.eup %1733 }
 0x6da   : > { %v1145_v19 = vmul.f32 %v1734_v0, %v1136_v5 }
 0x6dc   : > { %v1153_v13 = vmul.f32 %v1500_v12, %v1145_v19 }
 0x6de   : > { %v1154_v20 = vmul.f32 0.64449096, %v1153_v13 }
 0x742   : > { %v1187_v21 = vpop.permute.xlu0 %1186 }
 0x743   : > { %v1189_v22 = vsel %vm547_vm4, %v1154_v20, %v1187_v21 }
 0x744   : > { %v1190_v23 = vpack.c.bf16 %v1189_v22, %v1189_v22 }
 0x746   : > { %1581 = vmatmul.mubr.msk.bf16.vlgmr.msra.gmra.mrb[16].mxu1 %vm1208_vm5, %v1190_v23 }
 0x819   : > { %v1246_v25 = vpop.f32.mrb[16].mxu1 }
 0x81a   : > { %v1252_v26 = vadd.f32 %v1246_v25, %v1191_v24  ;;  %v1582_v27 = vpop.f32.mrb[17].mxu1 }
 0x81b   : > { %v1249_v28 = vpop.f32.mrb[18].mxu1 }
 0x81c   : > { %v1583_v29 = vpop.f32.mrb[19].mxu1  ;;  %1253 = vst.msk [vmem:[%s532_s26] sm:$0xff] %vm1208_vm5, %v1252_v26 }
 0x81d   : > { %1954 = shalt.err (!%p1951_p2)
}
 0x81e   : > { %s1955_s15 = scalar_lea.hbm %s2598_s6, 128  ;;  %s1959_s24 = scalar_lea.hbm %s2714_s25, 256 }
 0x81f   : > { %p1956_p1 = scmp.ne.s32.totalorder %s2598_s6, %s1955_s15  ;;  %p1960_p7 = scmp.lt.u32.totalorder %s2598_s6, %s2714_s25 }
 0x820   : > { %p1961_p11 = scmp.lt.u32.totalorder %s1959_s24, %s1955_s15  ;;  %p1963_p3 = scmp.lt.u32.totalorder %s1955_s15, %s2598_s6 }
 0x821   : > { %p1957_p6 = pnand %p1956_p1, %p2715_p12 }
 0x822   : > { %p1962_p10 = por %p1961_p11, %p1960_p7 }
 0x823   : > { %p1958_p13 = pneg %p1957_p6 }
 0x824   : > { %p1964_p5 = por %p1963_p3, %p1962_p10 }
 0x826   : > { %p1965_p0 = pnand %p1964_p5, %p1958_p13 }
 0x828   : > { %1968 = shalt.err (!%p1965_p0)
}
 0x829   : > { %1602 = dma.vmem_to_hbm [thread:$0]  (%p2715_p12), %s2600_s21, 128, %s2598_s6, %s1255_s10  }
 0x82a PF: > { %s2716_s12 = sld [smem:[#allocation24_spill]]  ;;  %s2717_s14 = sld [smem:[#allocation27_spill]] }
 0x82b   : > { %s2718_s28 = sld [smem:[#allocation26_spill]] }
 0x830   : > { %s1281_s2 = sand.u32 1, %s2716_s12   ;;  %p2719_p9 = scmp.ne.s32.totalorder %s2717_s14, 0 }
 0x831   : > { %p2720_p4 = scmp.ge.s32.totalorder %s2718_s28, 2  ;;  %s1282_s20 = scalar_lea.sflag [#allocation8], %s1281_s2 }
 0x833   : > { %p1628_p8 = pnand %p2720_p4, %p2719_p9 }
 0x835   : > { %2010 = dma.done.wait (!%p1628_p8), %s1282_s20, 128  }
 0x836   : > { %2012 = vsyncadd (!%p1628_p8), %s1282_s20, 4294967168  ;;  %s32_s0 = sadd.s32 1, %s2718_s28   ;;  %s2721_s27 = sld [smem:[#allocation25_spill]] }
 0x837   : > { %p29_p2 = scmp.ge.s32.totalorder %s32_s0, 4   ;;  %s2722_s9 = sld [smem:[#allocation30_spill]] }
 0x838   : > { %s2723_s19 = sld [smem:[#allocation28_spill]]  ;;  %s2724_s29 = smov %s2019_s30 }
 0x839   : > { %s2726_s10 = smov %s2031_s11  ;;  %31 = sbr.rel (!%p29_p2) target bundleno = 17 (0x11), region = 170 }
 0x83c   : > { %s2725_s30 = smov %s2721_s27 }
 0x83e   : > { %s2727_s11 = smov %s2723_s19 }
 0x840   :  { %1287 = vsyncpa [#allocation7], 1 }
 0x841   :  { %1289 = vsyncpa [#allocation7 + $0x1], 1 }
 0x842   :  { %1290 = vsyncpa [#allocation10], 1 }
 0x843   :  { %1292 = vsyncpa [#allocation10 + $0x1], 1 }
 0x844   :  { %1293 = vsyncpa [#allocation13], 1 }
 0x845   :  { %1295 = vsyncpa [#allocation13 + $0x1], 1 }
 0x846   :  { %1296 = vsyncpa [#allocation16], 1 }
 0x847   :  { %1297 = vsyncpa [#allocation8], 1 }
 0x848   :  { %1299 = vsyncpa [#allocation8 + $0x1], 1 }

// kernel: dyblock_forward.7
= control target key start
LH: loop header
LB: loop body
LE: loop exit
PB: predicated region body
PF: predicated region fallthrough
CT: control target
= control target key end

     0   :  { %s1640_s0 = inlined_call_operand.hbm [shape: f32[4], index: 0, kind: input, shape index: {}]   ;;  %s1641_s1 = inlined_call_operand.hbm [shape: bf16[2,8,32], index: 1, kind: input, shape index: {}]   ;;  %s1642_s2 = inlined_call_operand.hbm [shape: bf16[2,8,32], index: 2, kind: input, shape index: {}]   ;;  %s1643_s3 = inlined_call_operand.hbm [shape: bf16[32,128], index: 3, kind: input, shape index: {}]   ;;  %s1644_s4 = inlined_call_operand.hbm [shape: f32[2,4,8,8], index: 4, kind: input, shape index: {}]   ;;  %s1645_s5 = inlined_call_operand.hbm [shape: f32[2,4,8,8], index: 5, kind: output, shape index: {}]  }
   0x1   :  { %1655 = sst [smem:[#allocation22_spill]] %s1640_s0 }
   0x2   :  { %1656 = sst [smem:[#allocation23_spill]] %s1641_s1 }
   0x3   :  { %1657 = sst [smem:[#allocation24_spill]] %s1643_s3 }
   0x4   :  { %10 = vsyncpa [#allocation5], 0 }
   0x5   :  { %11 = vsyncpa [#allocation3], 0 }
   0x6   :  { %13 = vsyncpa [#allocation3 + $0x1], 0 }
   0x7   :  { %14 = vsyncpa [#allocation8], 0 }
   0x8   :  { %16 = vsyncpa [#allocation8 + $0x1], 0 }
   0x9   :  { %17 = vsyncpa [#allocation11], 0 }
   0xa   :  { %19 = vsyncpa [#allocation11 + $0x1], 0 }
   0xb   :  { %20 = vsyncpa [#allocation4], 0 }
   0xc   :  { %22 = vsyncpa [#allocation4 + $0x1], 0  ;;  %s1289_s18 = smov 0   ;;  %s1291_s19 = smov 0  }
   0xd   :  { %s1293_s20 = smov 0   ;;  %s1295_s21 = smov 0  }
   0xe   :  { %s1297_s22 = smov 0   ;;  %s1299_s23 = smov 0  }
   0xf LB: > { %1658 = sst [smem:[#allocation19_spill]] %s1228_s20  ;;  %s1320_s24 = sadd.s32 4294967295, %s1240_s23   ;;  %s1240_s23 = sphi %s1299_s23, %s28_s23   ;;  %s1236_s22 = sphi %s1297_s22, %s1690_s22   ;;  %s1232_s21 = sphi %s1295_s21, %s1689_s21   ;;  %s1228_s20 = sphi %s1293_s20, %s1688_s20   ;;  %s1224_s19 = sphi %s1291_s19, %s1687_s19   ;;  %s1220_s18 = sphi %s1289_s18, %s1686_s18  }
  0x10   : > { %s821_s25 = sadd.s32 4294967294, %s1240_s23   ;;  %p83_p0 = scmp.ne.s32.totalorder %s1224_s19, %s1220_s18 }
  0x11   : > { %p1646_p1 = scmp.eq.s32.totalorder %s1320_s24, 0  ;;  %p190_p3 = scmp.eq.s32.totalorder %s821_s25, 1 }
  0x12   : > { %p822_p5 = scmp.ge.s32.totalorder %s1240_s23, 1  ;;  %p197_p7 = scmp.lt.s32.totalorder %s1240_s23, 3 }
  0x13   : > { %p1329_p4 = por %p1646_p1, %p83_p0  ;;  %p1334_p6 = por %p190_p3, %p83_p0 }
  0x14   : > { %p1339_p8 = pnand %p822_p5, %p197_p7  ;;  %s1242_s29 = smov [#allocation9]  }
  0x15   : > { %s1659_s26 = scalar_select %p1329_p4, 1, 0 }
  0x16   : > { %s1660_s27 = scalar_select %p1334_p6, 1, 0 }
  0x17   : > { %s1661_s28 = scalar_select %p1339_p8, 1, 0 }
  0x18   : > { %s218_s30 = sshll.u32 %s1242_s29, 4  ;;  %p919_p9 = pneg %p1339_p8  ;;  %s219_s30 = int_to_ptr.vmem [resolvable:$true] %s218_s30 }
  0x19   : > { %s1663_s3 = sld [smem:[#allocation24_spill]] }
  0x1a   : > { %p1348_p11 = pnand %p919_p9, %p1646_p1 }
  0x1c   : > { %p1013_p13 = pneg %p1348_p11 }
  0x1f   : > { %s1011_s9 = scalar_lea.hbm %s1663_s3, 256 }
  0x20   : > { %p1012_p12 = scmp.ne.s32.totalorder %s1663_s3, %s1011_s9  ;;  %p1018_p5 = scmp.lt.u32.totalorder %s1011_s9, %s1663_s3 }
  0x22   : > { %p1014_p0 = pnand %p1013_p13, %p1012_p12 }
  0x24   : > { %p1015_p3 = pneg %p1014_p0 }
  0x26   : > { %p1020_p7 = pnand %p1018_p5, %p1015_p3 }
  0x28   : > { %1023 = shalt.err (!%p1020_p7)
}
  0x29   : > { %s1024_s14 = scalar_lea.vmem %s219_s30, 256  ;;  %p1032_p2 = scmp.lt.s32.totalorder %s219_s30, %s219_s30 }
  0x2a   : > { %p1025_p9 = scmp.ne.s32.totalorder %s219_s30, %s1024_s14  ;;  %p1033_p6 = scmp.lt.s32.totalorder %s1024_s14, %s1024_s14 }
  0x2c   : > { %p1027_p10 = pnand %p1025_p9, %p1013_p13  ;;  %p1034_p4 = por %p1033_p6, %p1032_p2 }
  0x2e   : > { %p1028_p1 = pneg %p1027_p10 }
  0x30   : > { %p1035_p8 = pnand %p1034_p4, %p1028_p1 }
  0x32   : > { %1038 = shalt.err (!%p1035_p8)
}
  0x33   : > { %s1243_s15 = smov 64   ;;  %s1244_s16 = smov 4  }
  0x34   : > { %925 = dma.hbm_to_vmem [thread:$0]  (!%p1348_p11), %s1663_s3, 256, %s219_s30, [#allocation8], %s1243_s15, %s1243_s15, %s1244_s16  }
  0x35   : > { %s1664_s0 = sld [smem:[#allocation22_spill]] }
  0x3b   : > { %s1039_s8 = scalar_lea.hbm %s1664_s0, 16 }
  0x3c   : > { %p1040_p10 = scmp.ne.s32.totalorder %s1664_s0, %s1039_s8  ;;  %p1046_p4 = scmp.lt.u32.totalorder %s1039_s8, %s1664_s0 }
  0x3e   : > { %p1042_p1 = pnand %p1040_p10, %p1013_p13 }
  0x40   : > { %p1043_p2 = pneg %p1042_p1 }
  0x42   : > { %p1048_p6 = pnand %p1046_p4, %p1043_p2 }
  0x44   : > { %1051 = shalt.err (!%p1048_p6)
}
  0x45   : > { %s1245_s13 = smov [#allocation2]   ;;  %s40_s15 = sadd.s32 1, %s1236_s22 }
  0x46   : > { %922 = dma.hbm_to_smem (!%p1348_p11), %s1664_s0, 16, %s1245_s13, [#allocation5]  }
  0x47   : > { %s70_s16 = sadd.s32 1, %s1228_s20  ;;  %p42_p8 = scmp.ge.s32.totalorder %s40_s15, 2 }
  0x48   : > { %p77_p12 = scmp.ne.s32.totalorder %s1228_s20, %s1224_s19  ;;  %p78_p13 = scmp.eq.s32.totalorder %s1240_s23, 0 }
  0x49   : > { %p942_p0 = scmp.lt.s32.totalorder %s1240_s23, 2  ;;  %s1692_s15 = smov (%p42_p8, %s40_s15), 0 }
  0x4a   : > { %1665 = sst [smem:[#allocation20_spill]] %s1692_s15  ;;  %p79_p3 = por %p78_p13, %p77_p12 }
  0x4b   : > { %p1666_p5 = scmp.eq.s32.totalorder %s1320_s24, 1  ;;  %s65_s17 = ssub.s32 %s1236_s22, %s1692_s15 }
  0x4c   : > { %s1408_s25 = sand.u32 1, %s1228_s20   ;;  %p68_p11 = scmp.eq.s32.totalorder %s65_s17, 0 }
  0x4d   : > { %p1401_p7 = por %p1666_p5, %p77_p12  ;;  %s1649_s29 = sshll.u32 %s1408_s25, 2 }
  0x4e   : > { %s827_s7 = sshll.u32 %s1236_s22, 6  ;;  %s1669_s1 = sld [smem:[#allocation23_spill]] }
  0x4f   : > { %s1667_s6 = scalar_select %p1401_p7, 1, 0 }
  0x50   : > { %s1413_s8 = scalar_select %p68_p11, %s1228_s20, %s70_s16  }
  0x51   : > { %s236_s12 = scalar_lea.vmem [#allocation6], %s1649_s29  ;;  %p1424_p9 = pnand %p942_p0, %p79_p3 }
  0x52   : > { %1668 = sst [smem:[#allocation21_spill]] %s1413_s8  ;;  %s244_s13 = sshll.u32 %s236_s12, 4  ;;  %s1428_s13 = int_to_ptr.vmem [resolvable:$true] %s244_s13 }
  0x53   : > { %s1670_s30 = scalar_select %p1424_p9, 1, 0 }
  0x54   : > { %s1418_s11 = scalar_lea.hbm %s1669_s1, %s827_s7  ;;  %s1433_s17 = scalar_lea.hbm %s1642_s2, %s827_s7 }
  0x55   : > { %s233_s9 = scalar_lea.sflag [#allocation3], %s1408_s25  ;;  %s1052_s10 = scalar_lea.hbm %s1418_s11, 64 }
  0x56   : > { %p1053_p10 = scmp.ne.s32.totalorder %s1418_s11, %s1052_s10  ;;  %p1440_p1 = pneg %p1424_p9 }
  0x57   : > { %s1057_s3 = scalar_lea.hbm %s1669_s1, 128  ;;  %p1058_p6 = scmp.lt.u32.totalorder %s1418_s11, %s1669_s1 }
  0x58   : > { %p1055_p2 = pnand %p1440_p1, %p1053_p10  ;;  %p1059_p8 = scmp.lt.u32.totalorder %s1057_s3, %s1052_s10 }
  0x59   : > { %p1061_p13 = scmp.lt.u32.totalorder %s1052_s10, %s1418_s11 }
  0x5a   : > { %p1056_p4 = pneg %p1055_p2  ;;  %p1060_p12 = por %p1059_p8, %p1058_p6 }
  0x5c   : > { %p1062_p0 = por %p1061_p13, %p1060_p12 }
  0x5e   : > { %p1063_p3 = pnand %p1062_p0, %p1056_p4 }
  0x60   : > { %1066 = shalt.err (!%p1063_p3)
}
  0x61   : > { %s1067_s7 = scalar_lea.vmem %s1428_s13, 64  ;;  %s1246_s0 = smov [#allocation6]  }
  0x62   : > { %p1068_p5 = scmp.ne.s32.totalorder %s1428_s13, %s1067_s7  ;;  %s1072_s16 = sshll.u32 %s1246_s0, 4  ;;  %s1073_s16 = int_to_ptr.vmem [resolvable:$false] %s1072_s16 }
  0x63   : > { %s1074_s15 = scalar_lea.vmem %s1073_s16, 128  ;;  %p1075_p2 = scmp.lt.s32.totalorder %s1428_s13, %s1073_s16 }
  0x64   : > { %p1070_p11 = pnand %p1068_p5, %p1440_p1  ;;  %p1076_p7 = scmp.lt.s32.totalorder %s1074_s15, %s1067_s7 }
  0x66   : > { %p1071_p10 = pneg %p1070_p11  ;;  %p1077_p6 = por %p1076_p7, %p1075_p2 }
  0x68   : > { %p1078_p8 = pnand %p1077_p6, %p1071_p10 }
  0x6a   : > { %1081 = shalt.err (!%p1078_p8)
}
  0x6b   : > { %929 = dma.hbm_to_vmem [thread:$0]  (!%p1424_p9), %s1418_s11, 64, %s1428_s13, %s233_s9  }
  0x6c   : > { %s251_s3 = sand.u32 1, %s1240_s23   ;;  %s1672_s10 = sshll.u32 %s1408_s25, 2 }
  0x6d   : > { %s255_s12 = scalar_lea.vmem [#allocation7], %s1672_s10  ;;  %s252_s7 = scalar_lea.sflag [#allocation8], %s251_s3 }
  0x6e   : > { %s262_s14 = sshll.u32 %s255_s12, 4  ;;  %s1082_s0 = scalar_lea.hbm %s1433_s17, 64  ;;  %s263_s14 = int_to_ptr.vmem [resolvable:$true] %s262_s14 }
  0x6f   : > { %p1083_p7 = scmp.ne.s32.totalorder %s1433_s17, %s1082_s0  ;;  %s1087_s1 = scalar_lea.hbm %s1642_s2, 128 }
  0x70   : > { %p1088_p13 = scmp.lt.u32.totalorder %s1433_s17, %s1642_s2  ;;  %p1089_p0 = scmp.lt.u32.totalorder %s1087_s1, %s1082_s0 }
  0x71   : > { %p1085_p4 = pnand %p1083_p7, %p1440_p1  ;;  %p1091_p5 = scmp.lt.u32.totalorder %s1082_s0, %s1433_s17 }
  0x72   : > { %p1090_p3 = por %p1089_p0, %p1088_p13 }
  0x73   : > { %p1086_p12 = pneg %p1085_p4 }
  0x74   : > { %p1092_p11 = por %p1091_p5, %p1090_p3 }
  0x76   : > { %p1093_p10 = pnand %p1092_p11, %p1086_p12 }
  0x78   : > { %1096 = shalt.err (!%p1093_p10)
}
  0x79   : > { %s1097_s11 = scalar_lea.vmem %s263_s14, 64  ;;  %s1247_s13 = smov [#allocation7]  }
  0x7a   : > { %p1098_p2 = scmp.ne.s32.totalorder %s263_s14, %s1097_s11  ;;  %s1102_s9 = sshll.u32 %s1247_s13, 4  ;;  %s1103_s9 = int_to_ptr.vmem [resolvable:$false] %s1102_s9 }
  0x7b   : > { %s1104_s3 = scalar_lea.vmem %s1103_s9, 128  ;;  %p1105_p7 = scmp.lt.s32.totalorder %s263_s14, %s1103_s9 }
  0x7c   : > { %p1100_p6 = pnand %p1098_p2, %p1440_p1  ;;  %p1106_p4 = scmp.lt.s32.totalorder %s1104_s3, %s1097_s11 }
  0x7e   : > { %p1101_p8 = pneg %p1100_p6  ;;  %p1107_p9 = por %p1106_p4, %p1105_p7 }
  0x80   : > { %p1108_p0 = pnand %p1107_p9, %p1101_p8 }
  0x82   : > { %1111 = shalt.err (!%p1108_p0)
}
  0x83   : > { %p1673_p13 = scmp.ne.s32.totalorder %s1670_s30, 0  ;;  %s830_s1 = sshll.u32 %s1408_s25, 5 }
  0x84   : > { %s858_s20 = sshll.u32 %s1236_s22, 9  ;;  %s273_s0 = scalar_lea.vmem [#allocation10], %s830_s1 }
  0x85   : > { %932 = dma.hbm_to_vmem [thread:$0]  (!%p1673_p13), %s1433_s17, 64, %s263_s14, %s252_s7  }
  0x86   : > { %s1488_s12 = scalar_lea.hbm %s1644_s4, %s858_s20  ;;  %s281_s16 = sshll.u32 %s273_s0, 4  ;;  %s1490_s16 = int_to_ptr.vmem [resolvable:$true] %s281_s16 }
  0x87   : > { %s270_s15 = scalar_lea.sflag [#allocation11], %s1408_s25  ;;  %s1112_s11 = scalar_lea.hbm %s1488_s12, 512 }
  0x88   : > { %p1113_p9 = scmp.ne.s32.totalorder %s1488_s12, %s1112_s11  ;;  %s1117_s7 = scalar_lea.hbm %s1644_s4, 1024 }
  0x89   : > { %p1118_p5 = scmp.lt.u32.totalorder %s1488_s12, %s1644_s4  ;;  %p1119_p11 = scmp.lt.u32.totalorder %s1117_s7, %s1112_s11 }
  0x8a   : > { %p1115_p12 = pnand %p1113_p9, %p1440_p1  ;;  %p1121_p2 = scmp.lt.u32.totalorder %s1112_s11, %s1488_s12 }
  0x8b   : > { %p1120_p10 = por %p1119_p11, %p1118_p5 }
  0x8c   : > { %p1116_p3 = pneg %p1115_p12 }
  0x8d   : > { %p1122_p6 = por %p1121_p2, %p1120_p10 }
  0x8f   : > { %p1123_p8 = pnand %p1122_p6, %p1116_p3 }
  0x91   : > { %1126 = shalt.err (!%p1123_p8)
}
  0x92   : > { %s1127_s3 = scalar_lea.vmem %s1490_s16, 512  ;;  %s1248_s1 = smov [#allocation10]  }
  0x93   : > { %p1128_p7 = scmp.ne.s32.totalorder %s1490_s16, %s1127_s3  ;;  %s1132_s20 = sshll.u32 %s1248_s1, 4  ;;  %s1133_s20 = int_to_ptr.vmem [resolvable:$false] %s1132_s20 }
  0x94   : > { %s1134_s8 = scalar_lea.vmem %s1133_s20, 1024  ;;  %p1135_p9 = scmp.lt.s32.totalorder %s1490_s16, %s1133_s20 }
  0x95   : > { %p1130_p4 = pnand %p1128_p7, %p1440_p1  ;;  %p1136_p12 = scmp.lt.s32.totalorder %s1134_s8, %s1127_s3 }
  0x97   : > { %p1131_p0 = pneg %p1130_p4  ;;  %p1137_p5 = por %p1136_p12, %p1135_p9 }
  0x99   : > { %p1138_p11 = pnand %p1137_p5, %p1131_p0 }
  0x9b   : > { %1141 = shalt.err (!%p1138_p11)
}
  0x9c   : > { %s1249_s10 = smov 128   ;;  %s1250_s0 = smov 8  }
  0x9d   : > { %935 = dma.hbm_to_vmem [thread:$0]  (!%p1673_p13), %s1488_s12, 512, %s1490_s16, %s270_s15, %s1249_s10, %s1249_s10, %s1250_s0  }
  0x9e   : > { %p1674_p1 = scmp.ne.s32.totalorder %s1661_s28, 0 }
  0x9f   : > { %p1675_p3 = scmp.eq.s32.totalorder (!%p1674_p1), %s1320_s24, 0 }
  0xa0   : > { %293 = sbr.rel (%p1674_p1) target bundleno = 760 (0x2f8), region = 40 }
  0xa7   : > { %1195 = dma.done.wait (%p1675_p3), [#allocation5], 16   ;;  %p1676_p10 = pmov %p1675_p3 }
  0xa8   : > { %s1523_s29 = sand.u32 1, %s1224_s19   ;;  %p1677_p13 = scmp.ne.s32.totalorder %s1659_s26, 0 }
  0xa9   : > { %1197 = vsyncadd (%p1676_p10), [#allocation5], 4294967280  ;;  %s835_s11 = sshll.u32 %s1523_s29, 2  ;;  %s300_s17 = scalar_lea.sflag [#allocation3], %s1523_s29 }
  0xaa   : > { %s1527_s30 = scalar_lea.vmem [#allocation6], %s835_s11 }
  0xab   : > { %1199 = dma.done.wait (%p1677_p13), %s300_s17, 64  }
  0xac   : > { %1201 = vsyncadd (%p1677_p13), %s300_s17, 4294967232  ;;  %s308_s28 = sand.u32 1, %s1320_s24   ;;  %s312_s12 = scalar_lea.vmem [#allocation7], %s835_s11 }
  0xad   : > { %s309_s25 = scalar_lea.sflag [#allocation8], %s308_s28 }
  0xae   : > { %1203 = dma.done.wait (%p1677_p13), %s309_s25, 64  }
  0xaf   : > { %1205 = vsyncadd (%p1677_p13), %s309_s25, 4294967232  ;;  %p1678_p2 = pmov %p1675_p3 }
  0xb1   : > { %1207 = dma.done.wait (%p1678_p2), [#allocation8], 256   ;;  %p1679_p6 = pmov %p1678_p2 }
  0xb2   : > { %s838_s16 = sshll.u32 %s1523_s29, 5  ;;  %s322_s15 = scalar_lea.sflag [#allocation11], %s1523_s29 }
  0xb3   : > { %1209 = vsyncadd (%p1679_p6), [#allocation8], 4294967040  ;;  %s1546_s14 = scalar_lea.vmem [#allocation10], %s838_s16 }
  0xb4   : > { %1211 = dma.done.wait (%p1677_p13), %s322_s15, 512  }
  0xb5   : > { %1213 = vsyncadd (%p1677_p13), %s322_s15, 4294966784 }
  0xb6   : > { %330 = sfence }
  0xb7   : > { %v1007_v0 = vld [vmem:[#allocation9] sm:$0xff]   ;;  %v1251_v1 = vmov 0.0   ;;  %v1008_v2 = vld [vmem:[#allocation9 + $0x8] sm:$0xff]   ;;  %vm1252_vm0 = vmmov 0   ;;  %vm382_vm1 = vcmask 261120   ;;  %s1253_s24 = smov 32  }
  0xb8   : > { %871 = vmatprep.subr.bf16.mxu0 %v1251_v1  ;;  %879 = vmatprep.subr.bf16.mxu1 %v1251_v1  ;;  %v365_v3 = vld [vmem:[%s312_s12] sm:$0xf]  ;;  %v364_v5 = vld [vmem:[%s1527_s30] sm:$0xf]  ;;  %s1254_s26 = smov 96   ;;  %s1255_s7 = smov 64  }
  0xb9   : > { %872 = vmatpush3.bf16.msra.mxu0 %v1007_v0  ;;  %875 = vmatprep.mubr.msk.bf16.mxu0 %vm1252_vm0, %v1251_v1  ;;  %v453_v4 = vsel %vm382_vm1, %v365_v3, 0  ;;  %v427_v14 = vld [vmem:[%s1546_s14] sm:$0xff]  ;;  %v428_v15 = vld [vmem:[%s1546_s14 + $0x8] sm:$0xff]  ;;  %v429_v18 = vld [vmem:[%s1546_s14 + $0x10] sm:$0xff]  ;;  %vm435_vm2 = vcmask 64512   ;;  %s447_s13 = sld [smem:[#allocation2]] }
  0xba   : > { %873 = vmatprep.subr.bf16.mxu0 %v1251_v1  ;;  %881 = vmatprep.mubr.msk.bf16.mxu1 %vm1252_vm0, %v1251_v1  ;;  %v431_v16 = vmul.f32 %v427_v14, %v427_v14  ;;  %v432_v17 = vmul.f32 %v428_v15, %v428_v15  ;;  %v433_v19 = vmul.f32 %v429_v18, %v429_v18  ;;  %v430_v22 = vld [vmem:[%s1546_s14 + $0x18] sm:$0xff]  ;;  %s1574_s9 = scalar_lea.vmem [#allocation12], %s838_s16  ;;  %s844_s3 = sld [smem:[#allocation2 + $0x1]] }
  0xbb   : > { %880 = vmatpush3.bf16.xpose.msra.mxu1 %v453_v4  ;;  %v434_v24 = vmul.f32 %v430_v22, %v430_v22  ;;  %s847_s1 = sld [smem:[#allocation2 + $0x2]]  ;;  %s850_s20 = sld [smem:[#allocation2 + $0x3]] }
  0xbc   : > { %891 = vmatprep.subr.bf16.mxu1 %v1251_v1  ;;  %v436_v20 = vsel %vm435_vm2, %v431_v16, 0.0  ;;  %v437_v21 = vsel %vm435_vm2, %v432_v17, 0.0  ;;  %v439_v25 = vsel %vm435_vm2, %v433_v19, 0.0  ;;  %s667_s8 = sshll.u32 %s1574_s9, 4  ;;  %s859_s10 = sshll.u32 %s1232_s21, 9  ;;  %s1589_s8 = int_to_ptr.vmem [resolvable:$true] %s667_s8 }
  0xbd   : > { %874 = vmatpush3.bf16.msra.mxu0 %v1008_v2  ;;  %v438_v23 = vadd.f32 %v437_v21, %v436_v20  ;;  %v441_v27 = vsel %vm435_vm2, %v434_v24, 0.0  ;;  %s1587_s17 = scalar_lea.hbm %s1645_s5, %s859_s10  ;;  %s653_s21 = scalar_lea.sflag [#allocation4], %s1523_s29 }
  0xbe   : > { %885 = vmatprep.subr.bf16.mxu0 %v1251_v1  ;;  %s1142_s30 = scalar_lea.vmem %s1589_s8, 512  ;;  %p1680_p7 = scmp.ne.s32.totalorder %s1667_s6, 0 }
  0xbf   : > { %v440_v26 = vadd.f32 %v439_v25, %v438_v23  ;;  %v448_v32 = vstv %s447_s13  ;;  %p1143_p8 = scmp.ne.s32.totalorder %s1589_s8, %s1142_s30  ;;  %s1256_s28 = smov [#allocation12]  }
  0xc0   : > { %876 = vmatmul.mubr.msk.bf16.vlgmr.msra.gmra.mrb[0].mxu0 %vm382_vm1, %v364_v5  ;;  %v499_v40 = vstv %s844_s3  ;;  %s1146_s25 = sshll.u32 %s1256_s28, 4  ;;  %s1147_s25 = int_to_ptr.vmem [resolvable:$false] %s1146_s25 }
  0xc1   : > { %887 = vmatprep.mubr.msk.bf16.mxu0 %vm1252_vm0, %v1251_v1  ;;  %v442_v28 = vadd.f32 %v441_v27, %v440_v26  ;;  %v551_v46 = vstv %s847_s1  ;;  %v602_v54 = vstv %s850_s20  ;;  %p1144_p4 = pnand %p1143_p8, %p1680_p7  ;;  %s1148_s12 = scalar_lea.vmem %s1147_s25, 1024 }
  0xc2   : > { %p1149_p9 = scmp.lt.s32.totalorder %s1589_s8, %s1147_s25  ;;  %p1150_p12 = scmp.lt.s32.totalorder %s1148_s12, %s1142_s30 }
  0xc3   : > { %v444_v29 = vmul.f32 0.25, %v442_v28  ;;  %p1145_p0 = pneg %p1144_p4 }
  0xc4   : > { %p1151_p5 = por %p1150_p12, %p1149_p9 }
  0xc5   : > { %v445_v30 = vadd.f32 1e-05, %v444_v29 }
  0xc6   : > { %886 = vmatpush3.bf16.xpose.msra.mxu0 %v453_v4  ;;  %p1152_p11 = pnand %p1151_p5, %p1145_p0 }
  0xc7   : > { %897 = vmatprep.subr.bf16.mxu0 %v1251_v1  ;;  %1009 = vrsqrt.f32 %v445_v30 }
  0xd1   : > { %v1010_v31 = vpop.eup %1009 }
  0xd2   : > { %v495_v33 = vmul.f32 %v1010_v31, %v427_v14  ;;  %v546_v41 = vmul.f32 %v1010_v31, %v428_v15  ;;  %v597_v49 = vmul.f32 %v1010_v31, %v429_v18  ;;  %v648_v57 = vmul.f32 %v1010_v31, %v430_v22 }
 0x193   : > { %v420_v6 = vpop.f32.mrb[0].mxu0 }
 0x194   : > { %v426_v7 = vpack.c.bf16 %v420_v6, %v420_v6  ;;  %v877_v8 = vpop.f32.mrb[1].mxu0 }
 0x195   : > { %v423_v9 = vpop.f32.mrb[2].mxu0 }
 0x196   : > { %603 = vrot.lane.b32.xlu1 %v426_v7, %s1253_s24  ;;  %501 = vrot.lane.b32.xlu0 %v426_v7, %s1254_s26  ;;  %v878_v10 = vpop.f32.mrb[3].mxu0 }
 0x197   : > { %882 = vmatmul.mubr.msk.bf16.vlgmr.msra.gmra.mrb[0].mxu1 %vm382_vm1, %v426_v7 }
 0x198   : > { %892 = vmatpush3.bf16.xpose.msra.mxu1 %v453_v4  ;;  %893 = vmatprep.mubr.msk.bf16.mxu1 %vm1252_vm0, %v1251_v1 }
 0x19a   : > { %552 = vrot.lane.b32.xlu0 %v426_v7, %s1255_s7 }
 0x208   : > { %v502_v11 = vpop.permute.xlu0 %501  ;;  %v604_v13 = vpop.permute.xlu1 %603 }
 0x209   : > { %888 = vmatmul.mubr.msk.bf16.vlgmr.msra.gmra.mrb[4].mxu0 %vm382_vm1, %v502_v11 }
 0x20a   : > { %898 = vmatpush3.bf16.xpose.msra.mxu0 %v453_v4  ;;  %899 = vmatprep.mubr.msk.bf16.mxu0 %vm1252_vm0, %v1251_v1 }
 0x20c   : > { %v553_v12 = vpop.permute.xlu0 %552 }
 0x20d   : > { %894 = vmatmul.mubr.msk.bf16.vlgmr.msra.gmra.mrb[4].mxu1 %vm382_vm1, %v553_v12 }
 0x211   : > { %900 = vmatmul.mubr.msk.bf16.vlgmr.msra.gmra.mrb[8].mxu0 %vm382_vm1, %v604_v13 }
 0x26a   : > { %v489_v34 = vpop.f32.mrb[0].mxu1 }
 0x26b   : > { %v490_v35 = vadd.f32 %v489_v34, %v448_v32  ;;  %v883_v36 = vpop.f32.mrb[1].mxu1 }
 0x26c   : > { %v492_v37 = vpop.f32.mrb[2].mxu1 }
 0x26d   : > { %v496_v38 = vadd.f32 %v495_v33, %v490_v35  ;;  %v884_v39 = vpop.f32.mrb[3].mxu1 }
 0x26f   : > { %497 = vst.msk [vmem:[%s1574_s9] sm:$0xff] %vm435_vm2, %v496_v38 }
 0x2dc   : > { %v540_v42 = vpop.f32.mrb[4].mxu0 }
 0x2dd   : > { %v541_v43 = vadd.f32 %v540_v42, %v499_v40  ;;  %v889_v44 = vpop.f32.mrb[5].mxu0 }
 0x2de   : > { %v543_v45 = vpop.f32.mrb[6].mxu0 }
 0x2df   : > { %v547_v47 = vadd.f32 %v546_v41, %v541_v43  ;;  %v890_v48 = vpop.f32.mrb[7].mxu0 }
 0x2e0   : > { %v591_v50 = vpop.f32.mrb[4].mxu1 }
 0x2e1   : > { %846 = vst.msk [vmem:[%s1574_s9 + $0x8] sm:$0xff] %vm435_vm2, %v547_v47  ;;  %v592_v51 = vadd.f32 %v591_v50, %v551_v46  ;;  %v895_v52 = vpop.f32.mrb[5].mxu1 }
 0x2e2   : > { %v594_v53 = vpop.f32.mrb[6].mxu1 }
 0x2e3   : > { %v598_v55 = vadd.f32 %v597_v49, %v592_v51  ;;  %v896_v56 = vpop.f32.mrb[7].mxu1 }
 0x2e4   : > { %v642_v58 = vpop.f32.mrb[8].mxu0 }
 0x2e5   : > { %849 = vst.msk [vmem:[%s1574_s9 + $0x10] sm:$0xff] %vm435_vm2, %v598_v55  ;;  %v643_v59 = vadd.f32 %v642_v58, %v602_v54  ;;  %v901_v60 = vpop.f32.mrb[9].mxu0 }
 0x2e6   : > { %v645_v61 = vpop.f32.mrb[10].mxu0 }
 0x2e7   : > { %v649_v62 = vadd.f32 %v648_v57, %v643_v59  ;;  %v902_v63 = vpop.f32.mrb[11].mxu0 }
 0x2e9   : > { %852 = vst.msk [vmem:[%s1574_s9 + $0x18] sm:$0xff] %vm435_vm2, %v649_v62 }
 0x2ea   : > { %1155 = shalt.err (!%p1152_p11)
}
 0x2eb   : > { %s1156_s16 = scalar_lea.hbm %s1587_s17, 512  ;;  %s1160_s24 = scalar_lea.hbm %s1645_s5, 1024 }
 0x2ec   : > { %p1157_p1 = scmp.ne.s32.totalorder %s1587_s17, %s1156_s16  ;;  %p1161_p13 = scmp.lt.u32.totalorder %s1587_s17, %s1645_s5 }
 0x2ed   : > { %p1162_p2 = scmp.lt.u32.totalorder %s1160_s24, %s1156_s16  ;;  %p1164_p8 = scmp.lt.u32.totalorder %s1156_s16, %s1587_s17 }
 0x2ee   : > { %p1158_p3 = pnand %p1157_p1, %p1680_p7 }
 0x2ef   : > { %p1163_p6 = por %p1162_p2, %p1161_p13 }
 0x2f0   : > { %p1159_p10 = pneg %p1158_p3 }
 0x2f1   : > { %p1165_p4 = por %p1164_p8, %p1163_p6 }
 0x2f3   : > { %p1166_p0 = pnand %p1165_p4, %p1159_p10 }
 0x2f5   : > { %1169 = shalt.err (!%p1166_p0)
}
 0x2f6   : > { %s1257_s13 = smov 128   ;;  %s1258_s9 = smov 8  }
 0x2f7   : > { %917 = dma.vmem_to_hbm [thread:$0]  (%p1680_p7), %s1589_s8, 512, %s1587_s17, %s653_s21, %s1257_s13, %s1257_s13, %s1258_s9  }
 0x2f8 PF: > { %s682_s3 = sand.u32 1, %s1220_s18   ;;  %p1681_p9 = scmp.ne.s32.totalorder %s1660_s27, 0 }
 0x2f9   : > { %p1682_p12 = scmp.ge.s32.totalorder %s1240_s23, 2  ;;  %s683_s1 = scalar_lea.sflag [#allocation4], %s682_s3 }
 0x2fb   : > { %p937_p5 = pnand %p1682_p12, %p1681_p9 }
 0x2fd   : > { %1215 = dma.done.wait (!%p937_p5), %s683_s1, 512  }
 0x2fe   : > { %1217 = vsyncadd (!%p937_p5), %s683_s1, 4294966784  ;;  %s28_s23 = sadd.s32 1, %s1240_s23   ;;  %s1683_s20 = sld [smem:[#allocation19_spill]] }
 0x2ff   : > { %p25_p11 = scmp.ge.s32.totalorder %s28_s23, 4   ;;  %s1684_s10 = sld [smem:[#allocation21_spill]] }
 0x300   : > { %s1685_s6 = sld [smem:[#allocation20_spill]]  ;;  %s1686_s18 = smov %s1224_s19 }
 0x301   : > { %s1689_s21 = smov %s1236_s22  ;;  %27 = sbr.rel (!%p25_p11) target bundleno = 15 (0xf), region = 123 }
 0x304   : > { %s1687_s19 = smov %s1683_s20 }
 0x305   : > { %s1688_s20 = smov %s1684_s10 }
 0x306   : > { %s1690_s22 = smov %s1685_s6 }
 0x308   :  { %688 = vsyncpa [#allocation3], 1 }
 0x309   :  { %690 = vsyncpa [#allocation3 + $0x1], 1 }
 0x30a   :  { %691 = vsyncpa [#allocation8], 1 }
 0x30b   :  { %693 = vsyncpa [#allocation8 + $0x1], 1 }
 0x30c   :  { %694 = vsyncpa [#allocation11], 1 }
 0x30d   :  { %696 = vsyncpa [#allocation11 + $0x1], 1 }
 0x30e   :  { %697 = vsyncpa [#allocation4], 1 }
 0x30f   :  { %699 = vsyncpa [#allocation4 + $0x1], 1 }
 0x310   :  { %700 = vsyncpa [#allocation5], 1 }
 0x311   :  { %702 = vsyncpa [#allocation5 + $0x1], 1 }

</bundles_post_ra>
